<compile_context>
chip_gen: v5e
topology: v5e:2x2
jax: 0.10.0
libtpu: 0.0.40
codegen_flags: <defaults>
</compile_context>

<pallas_src>
import math
from functools import partial

import jax
import jax.numpy as jnp
from jax.experimental import pallas as pl
from jax.experimental.pallas import tpu as pltpu


# ----------------------------------------------------------------------------
# Static helpers (trace-time only)
# ----------------------------------------------------------------------------

def _round_up(x, m):
    return ((x + m - 1) // m) * m


def _pick_tile(dim, align, max_tile):
    """Return (tile, padded_dim). tile is a multiple of `align`, <= max_tile,
    and divides padded_dim (= dim rounded up to `align`)."""
    d = _round_up(dim, align)
    if d <= max_tile:
        return d, d
    best = align
    t = align
    while t <= max_tile:
        if d % t == 0:
            best = t
        t += align
    return best, d


def _pad_to(a, shape):
    pads = [(0, s - d) for d, s in zip(a.shape, shape)]
    if any(p != (0, 0) for p in pads):
        a = jnp.pad(a, pads)
    return a


def _erf(x):
    # Abramowitz & Stegun 7.1.26 (max abs err 1.5e-7): matches PyTorch's
    # exact-erf nn.GELU to f32 precision using only exp/mul/add (safe to lower).
    p_ = 0.3275911
    a1, a2, a3, a4, a5 = (0.254829592, -0.284496736, 1.421413741,
                          -1.453152027, 1.061405429)
    s = jnp.where(x >= 0.0, 1.0, -1.0)
    z = jnp.abs(x)
    t = 1.0 / (1.0 + p_ * z)
    poly = t * (a1 + t * (a2 + t * (a3 + t * (a4 + t * a5))))
    return s * (1.0 - poly * jnp.exp(-z * z))


def _gelu(x):
    # exact (erf-based) GELU, like PyTorch nn.GELU default
    return 0.5 * x * (1.0 + _erf(x * 0.7071067811865476))


# ----------------------------------------------------------------------------
# Pallas kernels
# ----------------------------------------------------------------------------

def _linear_kernel(*refs, activation, has_residual):
    # y = act(x @ w + b) (+ residual), tiled over (M, N, K); K is the last
    # (arbitrary) grid axis, f32 accumulator in VMEM scratch.
    if has_residual:
        x_ref, w_ref, b_ref, r_ref, o_ref, acc_ref = refs
    else:
        x_ref, w_ref, b_ref, o_ref, acc_ref = refs
        r_ref = None
    k = pl.program_id(2)

    @pl.when(k == 0)
    def _():
        acc_ref[...] = jnp.zeros_like(acc_ref)

    acc_ref[...] += jnp.dot(
        x_ref[...].astype(jnp.bfloat16),
        w_ref[...].astype(jnp.bfloat16),
        preferred_element_type=jnp.float32,
    )

    @pl.when(k == pl.num_programs(2) - 1)
    def _():
        y = acc_ref[...] + b_ref[...].astype(jnp.float32)
        if activation == "gelu":
            y = _gelu(y)
        if has_residual:
            y = y + r_ref[...].astype(jnp.float32)
        o_ref[...] = y.astype(o_ref.dtype)


def _layernorm_kernel(x_ref, g_ref, b_ref, o_ref):
    # PyTorch nn.LayerNorm over last dim (biased variance, eps=1e-5), f32 math.
    x = x_ref[...].astype(jnp.float32)
    mean = jnp.mean(x, axis=-1, keepdims=True)
    var = jnp.mean(jnp.square(x - mean), axis=-1, keepdims=True)
    inv = jax.lax.rsqrt(var + 1e-5)
    o_ref[...] = ((x - mean) * inv * g_ref[...] + b_ref[...]).astype(o_ref.dtype)


def _l2norm_kernel(x_ref, g_ref, o_ref):
    # row-wise  g * x / max(||x||_2, 1e-12)
    x = x_ref[...].astype(jnp.float32)
    n = jnp.sqrt(jnp.sum(x * x, axis=-1, keepdims=True))
    o_ref[...] = (x * (g_ref[...].astype(jnp.float32)
                       / jnp.maximum(n, 1e-12))).astype(o_ref.dtype)


def _attn_kernel(q_ref, k_ref, v_ref, o_ref, *, scale, heads):
    # One batch element per grid step, all heads (unrolled head loop).
    for h in range(heads):
        q = (q_ref[0, h].astype(jnp.float32) * scale).astype(jnp.bfloat16)
        k = k_ref[0, h].astype(jnp.bfloat16)
        v = v_ref[0, h].astype(jnp.bfloat16)
        # q @ k^T without materializing a transpose: contract last dims.
        s = jax.lax.dot_general(q, k, (((1,), (1,)), ((), ())),
                                preferred_element_type=jnp.float32)
        s = s - jnp.max(s, axis=-1, keepdims=True)
        p = jnp.exp(s)
        p = p * pl.reciprocal(jnp.sum(p, axis=-1, keepdims=True), approx=True)
        o = jnp.dot(p.astype(jnp.bfloat16), v,
                    preferred_element_type=jnp.float32)
        o_ref[0, h] = o.astype(o_ref.dtype)


# ----------------------------------------------------------------------------
# Pallas wrappers
# ----------------------------------------------------------------------------

def linear(x, w, b, *, activation=None, residual=None, tm=256, tn=256, tk=512):
    """act(x @ w + b) (+ residual). x: [..., K], w: [K, N], b: [N]."""
    lead = x.shape[:-1]
    K = x.shape[-1]
    N = w.shape[-1]
    x2 = x.reshape(-1, K)
    M = x2.shape[0]

    tm, Mp = _pick_tile(M, 8, tm)
    tn, Np = _pick_tile(N, 128, tn)
    tk, Kp = _pick_tile(K, 128, tk)

    x2p = _pad_to(x2, (Mp, Kp))
    wp = _pad_to(w, (Kp, Np))
    bp = _pad_to(b.reshape(1, N).astype(jnp.float32), (1, Np))

    operands = [x2p, wp, bp]
    in_specs = [
        pl.BlockSpec((tm, tk), lambda i, j, k: (i, k)),
        pl.BlockSpec((tk, tn), lambda i, j, k: (k, j)),
        pl.BlockSpec((1, tn), lambda i, j, k: (0, j)),
    ]
    has_residual = residual is not None
    if has_residual:
        r2 = _pad_to(residual.reshape(-1, N).astype(jnp.float32), (Mp, Np))
        operands.append(r2)
        in_specs.append(pl.BlockSpec((tm, tn), lambda i, j, k: (i, j)))

    y = pl.pallas_call(
        partial(_linear_kernel, activation=activation,
                has_residual=has_residual),
        out_shape=jax.ShapeDtypeStruct((Mp, Np), jnp.float32),
        grid=(Mp // tm, Np // tn, Kp // tk),
        in_specs=in_specs,
        out_specs=pl.BlockSpec((tm, tn), lambda i, j, k: (i, j)),
        scratch_shapes=[pltpu.VMEM((tm, tn), jnp.float32)],
        compiler_params=pltpu.CompilerParams(
            dimension_semantics=("parallel", "parallel", "arbitrary"),
            vmem_limit_bytes=64 * 1024 * 1024,
        ),
    )(*operands)
    return y[:M, :N].reshape(*lead, N)


def layernorm(x, g, b, *, tm=512):
    lead = x.shape[:-1]
    D = x.shape[-1]
    x2 = x.reshape(-1, D)
    M = x2.shape[0]
    tm, Mp = _pick_tile(M, 8, tm)
    x2p = _pad_to(x2, (Mp, D))
    y = pl.pallas_call(
        _layernorm_kernel,
        out_shape=jax.ShapeDtypeStruct((Mp, D), jnp.float32),
        grid=(Mp // tm,),
        in_specs=[
            pl.BlockSpec((tm, D), lambda i: (i, 0)),
            pl.BlockSpec((1, D), lambda i: (0, 0)),
            pl.BlockSpec((1, D), lambda i: (0, 0)),
        ],
        out_specs=pl.BlockSpec((tm, D), lambda i: (i, 0)),
        compiler_params=pltpu.CompilerParams(
            dimension_semantics=("parallel",)),
    )(x2p, g.reshape(1, D).astype(jnp.float32),
      b.reshape(1, D).astype(jnp.float32))
    return y[:M].reshape(*lead, D)


def l2norm_rows(x, g=None, *, out_dtype=jnp.float32, tm=512):
    """g * x / max(||x||, 1e-12): covers F.normalize (g=1) and weight_norm."""
    lead = x.shape[:-1]
    D = x.shape[-1]
    x2 = x.reshape(-1, D)
    M = x2.shape[0]
    g2 = (jnp.ones((M, 1), jnp.float32) if g is None
          else g.reshape(M, 1).astype(jnp.float32))
    tm, Mp = _pick_tile(M, 8, tm)
    x2p = _pad_to(x2, (Mp, D))
    g2p = _pad_to(g2, (Mp, 1))
    y = pl.pallas_call(
        _l2norm_kernel,
        out_shape=jax.ShapeDtypeStruct((Mp, D), out_dtype),
        grid=(Mp // tm,),
        in_specs=[
            pl.BlockSpec((tm, D), lambda i: (i, 0)),
            pl.BlockSpec((tm, 1), lambda i: (i, 0)),
        ],
        out_specs=pl.BlockSpec((tm, D), lambda i: (i, 0)),
        compiler_params=pltpu.CompilerParams(
            dimension_semantics=("parallel",)),
    )(x2p, g2p)
    return y[:M].reshape(*lead, D)


def attention(q, k, v):
    """q, k, v: [B, H, S, Dh] -> [B, H, S, Dh]; one batch element per step."""
    B, H, S, Dh = q.shape
    scale = 1.0 / math.sqrt(Dh)
    spec = pl.BlockSpec((1, H, S, Dh), lambda b: (b, 0, 0, 0))
    return pl.pallas_call(
        partial(_attn_kernel, scale=scale, heads=H),
        out_shape=jax.ShapeDtypeStruct((B, H, S, Dh), jnp.float32),
        grid=(B,),
        in_specs=[spec, spec, spec],
        out_specs=pl.BlockSpec((1, H, S, Dh), lambda b: (b, 0, 0, 0)),
        compiler_params=pltpu.CompilerParams(
            dimension_semantics=("parallel",)),
    )(q, k, v)


# ----------------------------------------------------------------------------
# Model (reshape / concat glue in plain JAX; all heavy math in Pallas)
# ----------------------------------------------------------------------------

def vit_backbone(p, x, *, patch_size, heads):
    B, C, H, W = x.shape
    P = patch_size
    hh, ww = H // P, W // P
    # b c (h p1) (w p2) -> b (h w) (p1 p2 c)
    patches = (x.reshape(B, C, hh, P, ww, P)
                .transpose(0, 2, 4, 3, 5, 1)
                .reshape(B, hh * ww, P * P * C))
    tok = linear(patches, p["patch_w"], p["patch_b"])          # [B, N, D]
    D = tok.shape[-1]
    cls = jnp.broadcast_to(p["cls"], (B, 1, D))
    tok = jnp.concatenate([cls, tok], axis=1) + p["pos"]       # [B, S, D]

    Dh = D // heads
    for blk in p["blocks"]:
        # --- MHSA (pre-norm; residual fused into the out-projection) ---
        hln = layernorm(tok, blk["ln1_g"], blk["ln1_b"])
        qkv = linear(hln, blk["wqkv"], blk["bqkv"])            # [B, S, 3D]
        Bs, S, _ = qkv.shape
        # TODO(synk): head-split transpose kept in XLA; per-head BlockSpec
        # slabs would need Dh >= 128 to satisfy the (8,128) block rule.
        qkv = qkv.reshape(Bs, S, 3, heads, Dh).transpose(2, 0, 3, 1, 4)
        o = attention(qkv[0], qkv[1], qkv[2])                  # [B, H, S, Dh]
        o = o.transpose(0, 2, 1, 3).reshape(Bs, S, D)
        tok = linear(o, blk["wo"], blk["bo"], residual=tok)
        # --- MLP (pre-norm; bias+GELU and residual fused into the matmuls) ---
        hln = layernorm(tok, blk["ln2_g"], blk["ln2_b"])
        hmid = linear(hln, blk["w1"], blk["b1"], activation="gelu")
        tok = linear(hmid, blk["w2"], blk["b2"], residual=tok)

    tok = layernorm(tok, p["lnf_g"], p["lnf_b"])
    return tok[:, 0]                                           # cls token [B, D]


def dino_head(p, x):
    h = linear(x, p["h_w1"], p["h_b1"], activation="gelu")
    h = linear(h, p["h_w2"], p["h_b2"], activation="gelu")
    h = linear(h, p["h_w3"], p["h_b3"])                        # bottleneck
    h = l2norm_rows(h)                                         # F.normalize
    # weight_norm last layer: w = g * v / ||v|| (g filled with 1), no bias.
    wn = l2norm_rows(p["last_v"], g=p["last_g"], out_dtype=jnp.bfloat16)
    out_dim = p["last_v"].shape[0]
    return linear(h, wn.T, jnp.zeros((out_dim,), jnp.float32))


def vit_dino_forward(p, x, *, patch_size, heads):
    return dino_head(p, vit_backbone(p, x, patch_size=patch_size, heads=heads))


# ----------------------------------------------------------------------------
# Deterministic parameter init (trunc_normal std=0.02 approximated by normal)
# ----------------------------------------------------------------------------

def init_params(key, *, C, IMG, P, DIM, DEPTH, HEADS, MLP_DIM,
                HIDDEN, BOTTLENECK, OUT):
    N = (IMG // P) ** 2
    patch_dim = C * P * P
    keys = iter(jax.random.split(key, 16 + DEPTH * 16))

    def nrm(shape, std=0.02, dtype=jnp.bfloat16):
        # matmul weights stored bf16 for the MXU; everything else f32
        return (std * jax.random.normal(next(keys), shape, jnp.float32)
                ).astype(dtype)

    params = {
        "patch_w": nrm((patch_dim, DIM)),
        "patch_b": jnp.zeros((DIM,), jnp.float32),
        "cls": nrm((1, 1, DIM), dtype=jnp.float32),
        "pos": nrm((1, N + 1, DIM), dtype=jnp.float32),
        "lnf_g": jnp.ones((DIM,), jnp.float32),
        "lnf_b": jnp.zeros((DIM,), jnp.float32),
        "blocks": [],
        # DINOHead (nlayers=3, use_bn=False)
        "h_w1": nrm((DIM, HIDDEN)),
        "h_b1": jnp.zeros((HIDDEN,), jnp.float32),
        "h_w2": nrm((HIDDEN, HIDDEN)),
        "h_b2": jnp.zeros((HIDDEN,), jnp.float32),
        "h_w3": nrm((HIDDEN, BOTTLENECK)),
        "h_b3": jnp.zeros((BOTTLENECK,), jnp.float32),
        "last_v": nrm((OUT, BOTTLENECK), dtype=jnp.float32),
        "last_g": jnp.ones((OUT, 1), jnp.float32),   # weight_g.data.fill_(1)
    }
    for _ in range(DEPTH):
        params["blocks"].append({
            "ln1_g": jnp.ones((DIM,), jnp.float32),
            "ln1_b": jnp.zeros((DIM,), jnp.float32),
            "wqkv": nrm((DIM, 3 * DIM)),
            "bqkv": jnp.zeros((3 * DIM,), jnp.float32),
            "wo": nrm((DIM, DIM)),
            "bo": jnp.zeros((DIM,), jnp.float32),
            "ln2_g": jnp.ones((DIM,), jnp.float32),
            "ln2_b": jnp.zeros((DIM,), jnp.float32),
            "w1": nrm((DIM, MLP_DIM)),
            "b1": jnp.zeros((MLP_DIM,), jnp.float32),
            "w2": nrm((MLP_DIM, DIM)),
            "b2": jnp.zeros((DIM,), jnp.float32),
        })
    return params


# ----------------------------------------------------------------------------
if __name__ == "__main__":
    # Small shapes consistent with the module's forward.
    B, C, IMG, P = 2, 3, 16, 8          # 4 patches -> seq = 5 (with cls)
    DIM, DEPTH, HEADS, MLP_DIM = 128, 2, 4, 256
    HIDDEN, BOTTLENECK, OUT = 128, 64, 96

    key = jax.random.PRNGKey(0)
    k_param, k_x = jax.random.split(key)
    params = init_params(
        k_param, C=C, IMG=IMG, P=P, DIM=DIM, DEPTH=DEPTH, HEADS=HEADS,
        MLP_DIM=MLP_DIM, HIDDEN=HIDDEN, BOTTLENECK=BOTTLENECK, OUT=OUT,
    )
    x = jax.random.normal(k_x, (B, C, IMG, IMG), jnp.float32)

    fwd = jax.jit(partial(vit_dino_forward, patch_size=P, heads=HEADS))
    out = jax.block_until_ready(fwd(params, x))
    assert out.shape == (B, OUT), out.shape
    assert bool(jnp.all(jnp.isfinite(out)))
    print("KERNEL_OK")
</pallas_src>

<mosaic_0001>
module attributes {stable_mosaic.version = 11 : i64} {
  func.func @_linear_kernel(%arg0: i32, %arg1: i32, %arg2: i32, %arg3: memref<8x256xf32, #tpu.memory_space<vmem>>, %arg4: memref<256x128xbf16, #tpu.memory_space<vmem>>, %arg5: memref<1x128xf32, #tpu.memory_space<vmem>>, %arg6: memref<8x128xf32, #tpu.memory_space<vmem>>, %arg7: memref<8x128xf32, #tpu.memory_space<vmem>>) attributes {dimension_semantics = [#tpu.dimension_semantics<parallel>, #tpu.dimension_semantics<parallel>, #tpu.dimension_semantics<arbitrary>], iteration_bounds = array<i64: 1, 1, 1>, scalar_prefetch = 0 : i64, scratch_operands = 1 : i64, tpu.core_type = #tpu.core_type<tc>, window_params = [{transform_indices = @transform_0, window_bounds = array<i64: 8, 256>}, {transform_indices = @transform_1, window_bounds = array<i64: 256, 128>}, {transform_indices = @transform_2, window_bounds = array<i64: 1, 128>}, {transform_indices = @transform_3, window_bounds = array<i64: 8, 128>}]} {
    %c0_i32 = arith.constant 0 : i32
    %0 = arith.cmpi eq, %arg2, %c0_i32 : i32
    %1 = arith.extui %0 : i1 to i32
    %c0_i32_0 = arith.constant 0 : i32
    %2 = arith.cmpi ne, %1, %c0_i32_0 : i32
    scf.if %2 {
      %cst_10 = arith.constant 0.000000e+00 : f32
      %13 = vector.broadcast %cst_10 : f32 to vector<8x128xf32>
      %c0_11 = arith.constant 0 : index
      %c0_12 = arith.constant 0 : index
      %14 = vector.load %arg7[%c0_11, %c0_12] : memref<8x128xf32, #tpu.memory_space<vmem>>, vector<8x128xf32>
      tpu.vector_store %arg7[%c0_11, %c0_12], %13 {strides = array<i32>} : memref<8x128xf32, #tpu.memory_space<vmem>>, vector<8x128xf32>,
    } else {
    }
    %c0 = arith.constant 0 : index
    %c0_1 = arith.constant 0 : index
    %3 = vector.load %arg7[%c0, %c0_1] : memref<8x128xf32, #tpu.memory_space<vmem>>, vector<8x128xf32>
    %c0_2 = arith.constant 0 : index
    %c0_3 = arith.constant 0 : index
    %4 = vector.load %arg3[%c0_2, %c0_3] : memref<8x256xf32, #tpu.memory_space<vmem>>, vector<8x256xf32>
    %5 = arith.truncf %4 : vector<8x256xf32> to vector<8x256xbf16>
    %c0_4 = arith.constant 0 : index
    %c0_5 = arith.constant 0 : index
    %6 = vector.load %arg4[%c0_4, %c0_5] : memref<256x128xbf16, #tpu.memory_space<vmem>>, vector<256x128xbf16>
    %cst = arith.constant dense<0.000000e+00> : vector<8x128xf32>
    %7 = tpu.matmul %5, %6, %cst {dimension_numbers = #tpu.dot_dimension_numbers<[1], [0], [0], [1], [0, 0, 1, 1], [], []>} : vector<8x256xbf16>, vector<256x128xbf16>, vector<8x128xf32> -> vector<8x128xf32>
    %8 = arith.addf %3, %7 : vector<8x128xf32>
    %c0_6 = arith.constant 0 : index
    %c0_7 = arith.constant 0 : index
    %9 = vector.load %arg7[%c0_6, %c0_7] : memref<8x128xf32, #tpu.memory_space<vmem>>, vector<8x128xf32>
    tpu.vector_store %arg7[%c0_6, %c0_7], %8 {strides = array<i32>} : memref<8x128xf32, #tpu.memory_space<vmem>>, vector<8x128xf32>,
    %c0_i32_8 = arith.constant 0 : i32
    %10 = arith.cmpi eq, %arg2, %c0_i32_8 : i32
    %11 = arith.extui %10 : i1 to i32
    %c0_i32_9 = arith.constant 0 : i32
    %12 = arith.cmpi ne, %11, %c0_i32_9 : i32
    scf.if %12 {
      %c0_10 = arith.constant 0 : index
      %c0_11 = arith.constant 0 : index
      %13 = vector.load %arg7[%c0_10, %c0_11] : memref<8x128xf32, #tpu.memory_space<vmem>>, vector<8x128xf32>
      %c0_12 = arith.constant 0 : index
      %c0_13 = arith.constant 0 : index
      %14 = vector.load %arg5[%c0_12, %c0_13] : memref<1x128xf32, #tpu.memory_space<vmem>>, vector<1x128xf32>
      %15 = vector.broadcast %14 : vector<1x128xf32> to vector<8x128xf32>
      %16 = arith.addf %13, %15 : vector<8x128xf32>
      %c0_14 = arith.constant 0 : index
      %c0_15 = arith.constant 0 : index
      %17 = vector.load %arg6[%c0_14, %c0_15] : memref<8x128xf32, #tpu.memory_space<vmem>>, vector<8x128xf32>
      tpu.vector_store %arg6[%c0_14, %c0_15], %16 {strides = array<i32>} : memref<8x128xf32, #tpu.memory_space<vmem>>, vector<8x128xf32>,
    } else {
    }
    return
  }
  func.func @transform_0(%arg0: i32, %arg1: i32, %arg2: i32) -> (i32, i32) {
    %c0_i32 = arith.constant 0 : i32
    return %arg0, %arg2 : i32, i32
  }
  func.func @transform_1(%arg0: i32, %arg1: i32, %arg2: i32) -> (i32, i32) {
    %c0_i32 = arith.constant 0 : i32
    return %arg2, %arg1 : i32, i32
  }
  func.func @transform_2(%arg0: i32, %arg1: i32, %arg2: i32) -> (i32, i32) {
    %c0_i32 = arith.constant 0 : i32
    %c0_i32_0 = arith.constant 0 : i32
    return %c0_i32, %arg1 : i32, i32
  }
  func.func @transform_3(%arg0: i32, %arg1: i32, %arg2: i32) -> (i32, i32) {
    %c0_i32 = arith.constant 0 : i32
    return %arg0, %arg1 : i32, i32
  }
}

module attributes {stable_mosaic.version = 11 : i64} {
  func.func @_layernorm_kernel(%arg0: i32, %arg1: memref<16x128xf32, #tpu.memory_space<vmem>>, %arg2: memref<1x128xf32, #tpu.memory_space<vmem>>, %arg3: memref<1x128xf32, #tpu.memory_space<vmem>>, %arg4: memref<16x128xf32, #tpu.memory_space<vmem>>) attributes {dimension_semantics = [#tpu.dimension_semantics<parallel>], iteration_bounds = array<i64: 1>, scalar_prefetch = 0 : i64, scratch_operands = 0 : i64, tpu.core_type = #tpu.core_type<tc>, window_params = [{transform_indices = @transform_0, window_bounds = array<i64: 16, 128>}, {pipeline_mode = #tpu.pipeline_mode<synchronous>, transform_indices = @transform_1, window_bounds = array<i64: 1, 128>}, {pipeline_mode = #tpu.pipeline_mode<synchronous>, transform_indices = @transform_2, window_bounds = array<i64: 1, 128>}, {transform_indices = @transform_3, window_bounds = array<i64: 16, 128>}]} {
    %c0 = arith.constant 0 : index
    %c0_0 = arith.constant 0 : index
    %0 = vector.load %arg1[%c0, %c0_0] : memref<16x128xf32, #tpu.memory_space<vmem>>, vector<16x128xf32>
    %cst = arith.constant dense<0.000000e+00> : vector<16xf32>
    %1 = vector.multi_reduction <add>, %0, %cst [1] : vector<16x128xf32> to vector<16xf32>
    %2 = vector.shape_cast %1 : vector<16xf32> to vector<16x1xf32>
    %cst_1 = arith.constant 1.280000e+02 : f32
    %3 = vector.broadcast %cst_1 : f32 to vector<16x1xf32>
    %4 = arith.divf %2, %3 : vector<16x1xf32>
    %5 = vector.broadcast %4 : vector<16x1xf32> to vector<16x128xf32>
    %6 = arith.subf %0, %5 : vector<16x128xf32>
    %7 = arith.mulf %6, %6 : vector<16x128xf32>
    %cst_2 = arith.constant dense<0.000000e+00> : vector<16xf32>
    %8 = vector.multi_reduction <add>, %7, %cst_2 [1] : vector<16x128xf32> to vector<16xf32>
    %9 = vector.shape_cast %8 : vector<16xf32> to vector<16x1xf32>
    %cst_3 = arith.constant 1.280000e+02 : f32
    %10 = vector.broadcast %cst_3 : f32 to vector<16x1xf32>
    %11 = arith.divf %9, %10 : vector<16x1xf32>
    %cst_4 = arith.constant 9.99999974E-6 : f32
    %12 = vector.broadcast %cst_4 : f32 to vector<16x1xf32>
    %13 = arith.addf %11, %12 : vector<16x1xf32>
    %14 = math.rsqrt %13 : vector<16x1xf32>
    %15 = vector.broadcast %4 : vector<16x1xf32> to vector<16x128xf32>
    %16 = arith.subf %0, %15 : vector<16x128xf32>
    %17 = vector.broadcast %14 : vector<16x1xf32> to vector<16x128xf32>
    %18 = arith.mulf %16, %17 : vector<16x128xf32>
    %c0_5 = arith.constant 0 : index
    %c0_6 = arith.constant 0 : index
    %19 = vector.load %arg2[%c0_5, %c0_6] : memref<1x128xf32, #tpu.memory_space<vmem>>, vector<1x128xf32>
    %20 = vector.broadcast %19 : vector<1x128xf32> to vector<16x128xf32>
    %21 = arith.mulf %18, %20 : vector<16x128xf32>
    %c0_7 = arith.constant 0 : index
    %c0_8 = arith.constant 0 : index
    %22 = vector.load %arg3[%c0_7, %c0_8] : memref<1x128xf32, #tpu.memory_space<vmem>>, vector<1x128xf32>
    %23 = vector.broadcast %22 : vector<1x128xf32> to vector<16x128xf32>
    %24 = arith.addf %21, %23 : vector<16x128xf32>
    %c0_9 = arith.constant 0 : index
    %c0_10 = arith.constant 0 : index
    %25 = vector.load %arg4[%c0_9, %c0_10] : memref<16x128xf32, #tpu.memory_space<vmem>>, vector<16x128xf32>
    tpu.vector_store %arg4[%c0_9, %c0_10], %24 {strides = array<i32>} : memref<16x128xf32, #tpu.memory_space<vmem>>, vector<16x128xf32>,
    return
  }
  func.func @transform_0(%arg0: i32) -> (i32, i32) {
    %c0_i32 = arith.constant 0 : i32
    %c0_i32_0 = arith.constant 0 : i32
    return %arg0, %c0_i32 : i32, i32
  }
  func.func @transform_1(%arg0: i32) -> (i32, i32) {
    %c0_i32 = arith.constant 0 : i32
    %c0_i32_0 = arith.constant 0 : i32
    %c0_i32_1 = arith.constant 0 : i32
    return %c0_i32, %c0_i32_0 : i32, i32
  }
  func.func @transform_2(%arg0: i32) -> (i32, i32) {
    %c0_i32 = arith.constant 0 : i32
    %c0_i32_0 = arith.constant 0 : i32
    %c0_i32_1 = arith.constant 0 : i32
    return %c0_i32, %c0_i32_0 : i32, i32
  }
  func.func @transform_3(%arg0: i32) -> (i32, i32) {
    %c0_i32 = arith.constant 0 : i32
    %c0_i32_0 = arith.constant 0 : i32
    return %arg0, %c0_i32 : i32, i32
  }
}

module attributes {stable_mosaic.version = 11 : i64} {
  func.func @_linear_kernel(%arg0: i32, %arg1: i32, %arg2: i32, %arg3: memref<16x128xf32, #tpu.memory_space<vmem>>, %arg4: memref<128x128xbf16, #tpu.memory_space<vmem>>, %arg5: memref<1x128xf32, #tpu.memory_space<vmem>>, %arg6: memref<16x128xf32, #tpu.memory_space<vmem>>, %arg7: memref<16x128xf32, #tpu.memory_space<vmem>>) attributes {dimension_semantics = [#tpu.dimension_semantics<parallel>, #tpu.dimension_semantics<parallel>, #tpu.dimension_semantics<arbitrary>], iteration_bounds = array<i64: 1, 3, 1>, scalar_prefetch = 0 : i64, scratch_operands = 1 : i64, tpu.core_type = #tpu.core_type<tc>, window_params = [{transform_indices = @transform_0, window_bounds = array<i64: 16, 128>}, {transform_indices = @transform_1, window_bounds = array<i64: 128, 128>}, {transform_indices = @transform_2, window_bounds = array<i64: 1, 128>}, {transform_indices = @transform_3, window_bounds = array<i64: 16, 128>}]} {
    %c0_i32 = arith.constant 0 : i32
    %0 = arith.cmpi eq, %arg2, %c0_i32 : i32
    %1 = arith.extui %0 : i1 to i32
    %c0_i32_0 = arith.constant 0 : i32
    %2 = arith.cmpi ne, %1, %c0_i32_0 : i32
    scf.if %2 {
      %cst_10 = arith.constant 0.000000e+00 : f32
      %13 = vector.broadcast %cst_10 : f32 to vector<16x128xf32>
      %c0_11 = arith.constant 0 : index
      %c0_12 = arith.constant 0 : index
      %14 = vector.load %arg7[%c0_11, %c0_12] : memref<16x128xf32, #tpu.memory_space<vmem>>, vector<16x128xf32>
      tpu.vector_store %arg7[%c0_11, %c0_12], %13 {strides = array<i32>} : memref<16x128xf32, #tpu.memory_space<vmem>>, vector<16x128xf32>,
    } else {
    }
    %c0 = arith.constant 0 : index
    %c0_1 = arith.constant 0 : index
    %3 = vector.load %arg7[%c0, %c0_1] : memref<16x128xf32, #tpu.memory_space<vmem>>, vector<16x128xf32>
    %c0_2 = arith.constant 0 : index
    %c0_3 = arith.constant 0 : index
    %4 = vector.load %arg3[%c0_2, %c0_3] : memref<16x128xf32, #tpu.memory_space<vmem>>, vector<16x128xf32>
    %5 = arith.truncf %4 : vector<16x128xf32> to vector<16x128xbf16>
    %c0_4 = arith.constant 0 : index
    %c0_5 = arith.constant 0 : index
    %6 = vector.load %arg4[%c0_4, %c0_5] : memref<128x128xbf16, #tpu.memory_space<vmem>>, vector<128x128xbf16>
    %cst = arith.constant dense<0.000000e+00> : vector<16x128xf32>
    %7 = tpu.matmul %5, %6, %cst {dimension_numbers = #tpu.dot_dimension_numbers<[1], [0], [0], [1], [0, 0, 1, 1], [], []>} : vector<16x128xbf16>, vector<128x128xbf16>, vector<16x128xf32> -> vector<16x128xf32>
    %8 = arith.addf %3, %7 : vector<16x128xf32>
    %c0_6 = arith.constant 0 : index
    %c0_7 = arith.constant 0 : index
    %9 = vector.load %arg7[%c0_6, %c0_7] : memref<16x128xf32, #tpu.memory_space<vmem>>, vector<16x128xf32>
    tpu.vector_store %arg7[%c0_6, %c0_7], %8 {strides = array<i32>} : memref<16x128xf32, #tpu.memory_space<vmem>>, vector<16x128xf32>,
    %c0_i32_8 = arith.constant 0 : i32
    %10 = arith.cmpi eq, %arg2, %c0_i32_8 : i32
    %11 = arith.extui %10 : i1 to i32
    %c0_i32_9 = arith.constant 0 : i32
    %12 = arith.cmpi ne, %11, %c0_i32_9 : i32
    scf.if %12 {
      %c0_10 = arith.constant 0 : index
      %c0_11 = arith.constant 0 : index
      %13 = vector.load %arg7[%c0_10, %c0_11] : memref<16x128xf32, #tpu.memory_space<vmem>>, vector<16x128xf32>
      %c0_12 = arith.constant 0 : index
      %c0_13 = arith.constant 0 : index
      %14 = vector.load %arg5[%c0_12, %c0_13] : memref<1x128xf32, #tpu.memory_space<vmem>>, vector<1x128xf32>
      %15 = vector.broadcast %14 : vector<1x128xf32> to vector<16x128xf32>
      %16 = arith.addf %13, %15 : vector<16x128xf32>
      %c0_14 = arith.constant 0 : index
      %c0_15 = arith.constant 0 : index
      %17 = vector.load %arg6[%c0_14, %c0_15] : memref<16x128xf32, #tpu.memory_space<vmem>>, vector<16x128xf32>
      tpu.vector_store %arg6[%c0_14, %c0_15], %16 {strides = array<i32>} : memref<16x128xf32, #tpu.memory_space<vmem>>, vector<16x128xf32>,
    } else {
    }
    return
  }
  func.func @transform_0(%arg0: i32, %arg1: i32, %arg2: i32) -> (i32, i32) {
    %c0_i32 = arith.constant 0 : i32
    return %arg0, %arg2 : i32, i32
  }
  func.func @transform_1(%arg0: i32, %arg1: i32, %arg2: i32) -> (i32, i32) {
    %c0_i32 = arith.constant 0 : i32
    return %arg2, %arg1 : i32, i32
  }
  func.func @transform_2(%arg0: i32, %arg1: i32, %arg2: i32) -> (i32, i32) {
    %c0_i32 = arith.constant 0 : i32
    %c0_i32_0 = arith.constant 0 : i32
    return %c0_i32, %arg1 : i32, i32
  }
  func.func @transform_3(%arg0: i32, %arg1: i32, %arg2: i32) -> (i32, i32) {
    %c0_i32 = arith.constant 0 : i32
    return %arg0, %arg1 : i32, i32
  }
}

module attributes {stable_mosaic.version = 11 : i64} {
  func.func @_attn_kernel(%arg0: i32, %arg1: memref<1x4x5x32xf32, #tpu.memory_space<vmem>>, %arg2: memref<1x4x5x32xf32, #tpu.memory_space<vmem>>, %arg3: memref<1x4x5x32xf32, #tpu.memory_space<vmem>>, %arg4: memref<1x4x5x32xf32, #tpu.memory_space<vmem>>) attributes {dimension_semantics = [#tpu.dimension_semantics<parallel>], iteration_bounds = array<i64: 2>, scalar_prefetch = 0 : i64, scratch_operands = 0 : i64, tpu.core_type = #tpu.core_type<tc>, window_params = [{transform_indices = @transform_0, window_bounds = array<i64: 1, 4, 5, 32>}, {transform_indices = @transform_1, window_bounds = array<i64: 1, 4, 5, 32>}, {transform_indices = @transform_2, window_bounds = array<i64: 1, 4, 5, 32>}, {transform_indices = @transform_3, window_bounds = array<i64: 1, 4, 5, 32>}]} {
    %c0 = arith.constant 0 : index
    %c0_0 = arith.constant 0 : index
    %c0_1 = arith.constant 0 : index
    %c0_2 = arith.constant 0 : index
    %0 = vector.load %arg1[%c0, %c0_0, %c0_1, %c0_2] : memref<1x4x5x32xf32, #tpu.memory_space<vmem>>, vector<1x1x5x32xf32>
    %1 = vector.shape_cast %0 : vector<1x1x5x32xf32> to vector<5x32xf32>
    %cst = arith.constant 0.176776692 : f32
    %2 = vector.broadcast %cst : f32 to vector<5x32xf32>
    %3 = arith.mulf %1, %2 : vector<5x32xf32>
    %4 = arith.truncf %3 : vector<5x32xf32> to vector<5x32xbf16>
    %c0_3 = arith.constant 0 : index
    %c0_4 = arith.constant 0 : index
    %c0_5 = arith.constant 0 : index
    %c0_6 = arith.constant 0 : index
    %5 = vector.load %arg2[%c0_3, %c0_4, %c0_5, %c0_6] : memref<1x4x5x32xf32, #tpu.memory_space<vmem>>, vector<1x1x5x32xf32>
    %6 = vector.shape_cast %5 : vector<1x1x5x32xf32> to vector<5x32xf32>
    %7 = arith.truncf %6 : vector<5x32xf32> to vector<5x32xbf16>
    %c0_7 = arith.constant 0 : index
    %c0_8 = arith.constant 0 : index
    %c0_9 = arith.constant 0 : index
    %c0_10 = arith.constant 0 : index
    %8 = vector.load %arg3[%c0_7, %c0_8, %c0_9, %c0_10] : memref<1x4x5x32xf32, #tpu.memory_space<vmem>>, vector<1x1x5x32xf32>
    %9 = vector.shape_cast %8 : vector<1x1x5x32xf32> to vector<5x32xf32>
    %10 = arith.truncf %9 : vector<5x32xf32> to vector<5x32xbf16>
    %cst_11 = arith.constant dense<0.000000e+00> : vector<5x5xf32>
    %11 = tpu.matmul %4, %7, %cst_11 {dimension_numbers = #tpu.dot_dimension_numbers<[1], [1], [0], [0], [0, 0, 1, 0], [], []>} : vector<5x32xbf16>, vector<5x32xbf16>, vector<5x5xf32> -> vector<5x5xf32>
    %cst_12 = arith.constant dense<0xFF800000> : vector<5xf32>
    %12 = vector.multi_reduction <maximumf>, %11, %cst_12 [1] : vector<5x5xf32> to vector<5xf32>
    %13 = vector.shape_cast %12 : vector<5xf32> to vector<5x1xf32>
    %14 = vector.broadcast %13 : vector<5x1xf32> to vector<5x5xf32>
    %15 = arith.subf %11, %14 : vector<5x5xf32>
    %16 = math.exp %15 : vector<5x5xf32>
    %cst_13 = arith.constant dense<0.000000e+00> : vector<5xf32>
    %17 = vector.multi_reduction <add>, %16, %cst_13 [1] : vector<5x5xf32> to vector<5xf32>
    %18 = vector.shape_cast %17 : vector<5xf32> to vector<5x1xf32>
    %19 = tpu.reciprocal %18 {approx = true} : vector<5x1xf32> -> vector<5x1xf32>
    %20 = vector.broadcast %19 : vector<5x1xf32> to vector<5x5xf32>
    %21 = arith.mulf %16, %20 : vector<5x5xf32>
    %22 = arith.truncf %21 : vector<5x5xf32> to vector<5x5xbf16>
    %cst_14 = arith.constant dense<0.000000e+00> : vector<5x32xf32>
    %23 = tpu.matmul %22, %10, %cst_14 {dimension_numbers = #tpu.dot_dimension_numbers<[1], [0], [0], [1], [0, 0, 1, 1], [], []>} : vector<5x5xbf16>, vector<5x32xbf16>, vector<5x32xf32> -> vector<5x32xf32>
    %c0_15 = arith.constant 0 : index
    %c0_16 = arith.constant 0 : index
    %c0_17 = arith.constant 0 : index
    %c0_18 = arith.constant 0 : index
    %24 = vector.load %arg4[%c0_15, %c0_16, %c0_17, %c0_18] : memref<1x4x5x32xf32, #tpu.memory_space<vmem>>, vector<1x1x5x32xf32>
    %25 = vector.shape_cast %24 : vector<1x1x5x32xf32> to vector<5x32xf32>
    %26 = vector.shape_cast %23 : vector<5x32xf32> to vector<1x1x5x32xf32>
    tpu.vector_store %arg4[%c0_15, %c0_16, %c0_17, %c0_18], %26 {strides = array<i32>} : memref<1x4x5x32xf32, #tpu.memory_space<vmem>>, vector<1x1x5x32xf32>,
    %c0_19 = arith.constant 0 : index
    %c1 = arith.constant 1 : index
    %c0_20 = arith.constant 0 : index
    %c0_21 = arith.constant 0 : index
    %27 = vector.load %arg1[%c0_19, %c1, %c0_20, %c0_21] : memref<1x4x5x32xf32, #tpu.memory_space<vmem>>, vector<1x1x5x32xf32>
    %28 = vector.shape_cast %27 : vector<1x1x5x32xf32> to vector<5x32xf32>
    %cst_22 = arith.constant 0.176776692 : f32
    %29 = vector.broadcast %cst_22 : f32 to vector<5x32xf32>
    %30 = arith.mulf %28, %29 : vector<5x32xf32>
    %31 = arith.truncf %30 : vector<5x32xf32> to vector<5x32xbf16>
    %c0_23 = arith.constant 0 : index
    %c1_24 = arith.constant 1 : index
    %c0_25 = arith.constant 0 : index
    %c0_26 = arith.constant 0 : index
    %32 = vector.load %arg2[%c0_23, %c1_24, %c0_25, %c0_26] : memref<1x4x5x32xf32, #tpu.memory_space<vmem>>, vector<1x1x5x32xf32>
    %33 = vector.shape_cast %32 : vector<1x1x5x32xf32> to vector<5x32xf32>
    %34 = arith.truncf %33 : vector<5x32xf32> to vector<5x32xbf16>
    %c0_27 = arith.constant 0 : index
    %c1_28 = arith.constant 1 : index
    %c0_29 = arith.constant 0 : index
    %c0_30 = arith.constant 0 : index
    %35 = vector.load %arg3[%c0_27, %c1_28, %c0_29, %c0_30] : memref<1x4x5x32xf32, #tpu.memory_space<vmem>>, vector<1x1x5x32xf32>
    %36 = vector.shape_cast %35 : vector<1x1x5x32xf32> to vector<5x32xf32>
    %37 = arith.truncf %36 : vector<5x32xf32> to vector<5x32xbf16>
    %cst_31 = arith.constant dense<0.000000e+00> : vector<5x5xf32>
    %38 = tpu.matmul %31, %34, %cst_31 {dimension_numbers = #tpu.dot_dimension_numbers<[1], [1], [0], [0], [0, 0, 1, 0], [], []>} : vector<5x32xbf16>, vector<5x32xbf16>, vector<5x5xf32> -> vector<5x5xf32>
    %cst_32 = arith.constant dense<0xFF800000> : vector<5xf32>
    %39 = vector.multi_reduction <maximumf>, %38, %cst_32 [1] : vector<5x5xf32> to vector<5xf32>
    %40 = vector.shape_cast %39 : vector<5xf32> to vector<5x1xf32>
    %41 = vector.broadcast %40 : vector<5x1xf32> to vector<5x5xf32>
    %42 = arith.subf %38, %41 : vector<5x5xf32>
    %43 = math.exp %42 : vector<5x5xf32>
    %cst_33 = arith.constant dense<0.000000e+00> : vector<5xf32>
    %44 = vector.multi_reduction <add>, %43, %cst_33 [1] : vector<5x5xf32> to vector<5xf32>
    %45 = vector.shape_cast %44 : vector<5xf32> to vector<5x1xf32>
    %46 = tpu.reciprocal %45 {approx = true} : vector<5x1xf32> -> vector<5x1xf32>
    %47 = vector.broadcast %46 : vector<5x1xf32> to vector<5x5xf32>
    %48 = arith.mulf %43, %47 : vector<5x5xf32>
    %49 = arith.truncf %48 : vector<5x5xf32> to vector<5x5xbf16>
    %cst_34 = arith.constant dense<0.000000e+00> : vector<5x32xf32>
    %50 = tpu.matmul %49, %37, %cst_34 {dimension_numbers = #tpu.dot_dimension_numbers<[1], [0], [0], [1], [0, 0, 1, 1], [], []>} : vector<5x5xbf16>, vector<5x32xbf16>, vector<5x32xf32> -> vector<5x32xf32>
    %c0_35 = arith.constant 0 : index
    %c1_36 = arith.constant 1 : index
    %c0_37 = arith.constant 0 : index
    %c0_38 = arith.constant 0 : index
    %51 = vector.load %arg4[%c0_35, %c1_36, %c0_37, %c0_38] : memref<1x4x5x32xf32, #tpu.memory_space<vmem>>, vector<1x1x5x32xf32>
    %52 = vector.shape_cast %51 : vector<1x1x5x32xf32> to vector<5x32xf32>
    %53 = vector.shape_cast %50 : vector<5x32xf32> to vector<1x1x5x32xf32>
    tpu.vector_store %arg4[%c0_35, %c1_36, %c0_37, %c0_38], %53 {strides = array<i32>} : memref<1x4x5x32xf32, #tpu.memory_space<vmem>>, vector<1x1x5x32xf32>,
    %c0_39 = arith.constant 0 : index
    %c2 = arith.constant 2 : index
    %c0_40 = arith.constant 0 : index
    %c0_41 = arith.constant 0 : index
    %54 = vector.load %arg1[%c0_39, %c2, %c0_40, %c0_41] : memref<1x4x5x32xf32, #tpu.memory_space<vmem>>, vector<1x1x5x32xf32>
    %55 = vector.shape_cast %54 : vector<1x1x5x32xf32> to vector<5x32xf32>
    %cst_42 = arith.constant 0.176776692 : f32
    %56 = vector.broadcast %cst_42 : f32 to vector<5x32xf32>
    %57 = arith.mulf %55, %56 : vector<5x32xf32>
    %58 = arith.truncf %57 : vector<5x32xf32> to vector<5x32xbf16>
    %c0_43 = arith.constant 0 : index
    %c2_44 = arith.constant 2 : index
    %c0_45 = arith.constant 0 : index
    %c0_46 = arith.constant 0 : index
    %59 = vector.load %arg2[%c0_43, %c2_44, %c0_45, %c0_46] : memref<1x4x5x32xf32, #tpu.memory_space<vmem>>, vector<1x1x5x32xf32>
    %60 = vector.shape_cast %59 : vector<1x1x5x32xf32> to vector<5x32xf32>
    %61 = arith.truncf %60 : vector<5x32xf32> to vector<5x32xbf16>
    %c0_47 = arith.constant 0 : index
    %c2_48 = arith.constant 2 : index
    %c0_49 = arith.constant 0 : index
    %c0_50 = arith.constant 0 : index
    %62 = vector.load %arg3[%c0_47, %c2_48, %c0_49, %c0_50] : memref<1x4x5x32xf32, #tpu.memory_space<vmem>>, vector<1x1x5x32xf32>
    %63 = vector.shape_cast %62 : vector<1x1x5x32xf32> to vector<5x32xf32>
    %64 = arith.truncf %63 : vector<5x32xf32> to vector<5x32xbf16>
    %cst_51 = arith.constant dense<0.000000e+00> : vector<5x5xf32>
    %65 = tpu.matmul %58, %61, %cst_51 {dimension_numbers = #tpu.dot_dimension_numbers<[1], [1], [0], [0], [0, 0, 1, 0], [], []>} : vector<5x32xbf16>, vector<5x32xbf16>, vector<5x5xf32> -> vector<5x5xf32>
    %cst_52 = arith.constant dense<0xFF800000> : vector<5xf32>
    %66 = vector.multi_reduction <maximumf>, %65, %cst_52 [1] : vector<5x5xf32> to vector<5xf32>
    %67 = vector.shape_cast %66 : vector<5xf32> to vector<5x1xf32>
    %68 = vector.broadcast %67 : vector<5x1xf32> to vector<5x5xf32>
    %69 = arith.subf %65, %68 : vector<5x5xf32>
    %70 = math.exp %69 : vector<5x5xf32>
    %cst_53 = arith.constant dense<0.000000e+00> : vector<5xf32>
    %71 = vector.multi_reduction <add>, %70, %cst_53 [1] : vector<5x5xf32> to vector<5xf32>
    %72 = vector.shape_cast %71 : vector<5xf32> to vector<5x1xf32>
    %73 = tpu.reciprocal %72 {approx = true} : vector<5x1xf32> -> vector<5x1xf32>
    %74 = vector.broadcast %73 : vector<5x1xf32> to vector<5x5xf32>
    %75 = arith.mulf %70, %74 : vector<5x5xf32>
    %76 = arith.truncf %75 : vector<5x5xf32> to vector<5x5xbf16>
    %cst_54 = arith.constant dense<0.000000e+00> : vector<5x32xf32>
    %77 = tpu.matmul %76, %64, %cst_54 {dimension_numbers = #tpu.dot_dimension_numbers<[1], [0], [0], [1], [0, 0, 1, 1], [], []>} : vector<5x5xbf16>, vector<5x32xbf16>, vector<5x32xf32> -> vector<5x32xf32>
    %c0_55 = arith.constant 0 : index
    %c2_56 = arith.constant 2 : index
    %c0_57 = arith.constant 0 : index
    %c0_58 = arith.constant 0 : index
    %78 = vector.load %arg4[%c0_55, %c2_56, %c0_57, %c0_58] : memref<1x4x5x32xf32, #tpu.memory_space<vmem>>, vector<1x1x5x32xf32>
    %79 = vector.shape_cast %78 : vector<1x1x5x32xf32> to vector<5x32xf32>
    %80 = vector.shape_cast %77 : vector<5x32xf32> to vector<1x1x5x32xf32>
    tpu.vector_store %arg4[%c0_55, %c2_56, %c0_57, %c0_58], %80 {strides = array<i32>} : memref<1x4x5x32xf32, #tpu.memory_space<vmem>>, vector<1x1x5x32xf32>,
    %c0_59 = arith.constant 0 : index
    %c3 = arith.constant 3 : index
    %c0_60 = arith.constant 0 : index
    %c0_61 = arith.constant 0 : index
    %81 = vector.load %arg1[%c0_59, %c3, %c0_60, %c0_61] : memref<1x4x5x32xf32, #tpu.memory_space<vmem>>, vector<1x1x5x32xf32>
    %82 = vector.shape_cast %81 : vector<1x1x5x32xf32> to vector<5x32xf32>
    %cst_62 = arith.constant 0.176776692 : f32
    %83 = vector.broadcast %cst_62 : f32 to vector<5x32xf32>
    %84 = arith.mulf %82, %83 : vector<5x32xf32>
    %85 = arith.truncf %84 : vector<5x32xf32> to vector<5x32xbf16>
    %c0_63 = arith.constant 0 : index
    %c3_64 = arith.constant 3 : index
    %c0_65 = arith.constant 0 : index
    %c0_66 = arith.constant 0 : index
    %86 = vector.load %arg2[%c0_63, %c3_64, %c0_65, %c0_66] : memref<1x4x5x32xf32, #tpu.memory_space<vmem>>, vector<1x1x5x32xf32>
    %87 = vector.shape_cast %86 : vector<1x1x5x32xf32> to vector<5x32xf32>
    %88 = arith.truncf %87 : vector<5x32xf32> to vector<5x32xbf16>
    %c0_67 = arith.constant 0 : index
    %c3_68 = arith.constant 3 : index
    %c0_69 = arith.constant 0 : index
    %c0_70 = arith.constant 0 : index
    %89 = vector.load %arg3[%c0_67, %c3_68, %c0_69, %c0_70] : memref<1x4x5x32xf32, #tpu.memory_space<vmem>>, vector<1x1x5x32xf32>
    %90 = vector.shape_cast %89 : vector<1x1x5x32xf32> to vector<5x32xf32>
    %91 = arith.truncf %90 : vector<5x32xf32> to vector<5x32xbf16>
    %cst_71 = arith.constant dense<0.000000e+00> : vector<5x5xf32>
    %92 = tpu.matmul %85, %88, %cst_71 {dimension_numbers = #tpu.dot_dimension_numbers<[1], [1], [0], [0], [0, 0, 1, 0], [], []>} : vector<5x32xbf16>, vector<5x32xbf16>, vector<5x5xf32> -> vector<5x5xf32>
    %cst_72 = arith.constant dense<0xFF800000> : vector<5xf32>
    %93 = vector.multi_reduction <maximumf>, %92, %cst_72 [1] : vector<5x5xf32> to vector<5xf32>
    %94 = vector.shape_cast %93 : vector<5xf32> to vector<5x1xf32>
    %95 = vector.broadcast %94 : vector<5x1xf32> to vector<5x5xf32>
    %96 = arith.subf %92, %95 : vector<5x5xf32>
    %97 = math.exp %96 : vector<5x5xf32>
    %cst_73 = arith.constant dense<0.000000e+00> : vector<5xf32>
    %98 = vector.multi_reduction <add>, %97, %cst_73 [1] : vector<5x5xf32> to vector<5xf32>
    %99 = vector.shape_cast %98 : vector<5xf32> to vector<5x1xf32>
    %100 = tpu.reciprocal %99 {approx = true} : vector<5x1xf32> -> vector<5x1xf32>
    %101 = vector.broadcast %100 : vector<5x1xf32> to vector<5x5xf32>
    %102 = arith.mulf %97, %101 : vector<5x5xf32>
    %103 = arith.truncf %102 : vector<5x5xf32> to vector<5x5xbf16>
    %cst_74 = arith.constant dense<0.000000e+00> : vector<5x32xf32>
    %104 = tpu.matmul %103, %91, %cst_74 {dimension_numbers = #tpu.dot_dimension_numbers<[1], [0], [0], [1], [0, 0, 1, 1], [], []>} : vector<5x5xbf16>, vector<5x32xbf16>, vector<5x32xf32> -> vector<5x32xf32>
    %c0_75 = arith.constant 0 : index
    %c3_76 = arith.constant 3 : index
    %c0_77 = arith.constant 0 : index
    %c0_78 = arith.constant 0 : index
    %105 = vector.load %arg4[%c0_75, %c3_76, %c0_77, %c0_78] : memref<1x4x5x32xf32, #tpu.memory_space<vmem>>, vector<1x1x5x32xf32>
    %106 = vector.shape_cast %105 : vector<1x1x5x32xf32> to vector<5x32xf32>
    %107 = vector.shape_cast %104 : vector<5x32xf32> to vector<1x1x5x32xf32>
    tpu.vector_store %arg4[%c0_75, %c3_76, %c0_77, %c0_78], %107 {strides = array<i32>} : memref<1x4x5x32xf32, #tpu.memory_space<vmem>>, vector<1x1x5x32xf32>,
    return
  }
  func.func @transform_0(%arg0: i32) -> (i32, i32, i32, i32) {
    %c0_i32 = arith.constant 0 : i32
    %c0_i32_0 = arith.constant 0 : i32
    %c0_i32_1 = arith.constant 0 : i32
    %c0_i32_2 = arith.constant 0 : i32
    return %arg0, %c0_i32, %c0_i32_0, %c0_i32_1 : i32, i32, i32, i32
  }
  func.func @transform_1(%arg0: i32) -> (i32, i32, i32, i32) {
    %c0_i32 = arith.constant 0 : i32
    %c0_i32_0 = arith.constant 0 : i32
    %c0_i32_1 = arith.constant 0 : i32
    %c0_i32_2 = arith.constant 0 : i32
    return %arg0, %c0_i32, %c0_i32_0, %c0_i32_1 : i32, i32, i32, i32
  }
  func.func @transform_2(%arg0: i32) -> (i32, i32, i32, i32) {
    %c0_i32 = arith.constant 0 : i32
    %c0_i32_0 = arith.constant 0 : i32
    %c0_i32_1 = arith.constant 0 : i32
    %c0_i32_2 = arith.constant 0 : i32
    return %arg0, %c0_i32, %c0_i32_0, %c0_i32_1 : i32, i32, i32, i32
  }
  func.func @transform_3(%arg0: i32) -> (i32, i32, i32, i32) {
    %c0_i32 = arith.constant 0 : i32
    %c0_i32_0 = arith.constant 0 : i32
    %c0_i32_1 = arith.constant 0 : i32
    %c0_i32_2 = arith.constant 0 : i32
    return %arg0, %c0_i32, %c0_i32_0, %c0_i32_1 : i32, i32, i32, i32
  }
}

module attributes {stable_mosaic.version = 11 : i64} {
  func.func @_linear_kernel(%arg0: i32, %arg1: i32, %arg2: i32, %arg3: memref<16x128xf32, #tpu.memory_space<vmem>>, %arg4: memref<128x128xbf16, #tpu.memory_space<vmem>>, %arg5: memref<1x128xf32, #tpu.memory_space<vmem>>, %arg6: memref<16x128xf32, #tpu.memory_space<vmem>>, %arg7: memref<16x128xf32, #tpu.memory_space<vmem>>, %arg8: memref<16x128xf32, #tpu.memory_space<vmem>>) attributes {dimension_semantics = [#tpu.dimension_semantics<parallel>, #tpu.dimension_semantics<parallel>, #tpu.dimension_semantics<arbitrary>], iteration_bounds = array<i64: 1, 1, 1>, scalar_prefetch = 0 : i64, scratch_operands = 1 : i64, tpu.core_type = #tpu.core_type<tc>, window_params = [{transform_indices = @transform_0, window_bounds = array<i64: 16, 128>}, {transform_indices = @transform_1, window_bounds = array<i64: 128, 128>}, {transform_indices = @transform_2, window_bounds = array<i64: 1, 128>}, {transform_indices = @transform_3, window_bounds = array<i64: 16, 128>}, {transform_indices = @transform_4, window_bounds = array<i64: 16, 128>}]} {
    %c0_i32 = arith.constant 0 : i32
    %0 = arith.cmpi eq, %arg2, %c0_i32 : i32
    %1 = arith.extui %0 : i1 to i32
    %c0_i32_0 = arith.constant 0 : i32
    %2 = arith.cmpi ne, %1, %c0_i32_0 : i32
    scf.if %2 {
      %cst_10 = arith.constant 0.000000e+00 : f32
      %13 = vector.broadcast %cst_10 : f32 to vector<16x128xf32>
      %c0_11 = arith.constant 0 : index
      %c0_12 = arith.constant 0 : index
      %14 = vector.load %arg8[%c0_11, %c0_12] : memref<16x128xf32, #tpu.memory_space<vmem>>, vector<16x128xf32>
      tpu.vector_store %arg8[%c0_11, %c0_12], %13 {strides = array<i32>} : memref<16x128xf32, #tpu.memory_space<vmem>>, vector<16x128xf32>,
    } else {
    }
    %c0 = arith.constant 0 : index
    %c0_1 = arith.constant 0 : index
    %3 = vector.load %arg8[%c0, %c0_1] : memref<16x128xf32, #tpu.memory_space<vmem>>, vector<16x128xf32>
    %c0_2 = arith.constant 0 : index
    %c0_3 = arith.constant 0 : index
    %4 = vector.load %arg3[%c0_2, %c0_3] : memref<16x128xf32, #tpu.memory_space<vmem>>, vector<16x128xf32>
    %5 = arith.truncf %4 : vector<16x128xf32> to vector<16x128xbf16>
    %c0_4 = arith.constant 0 : index
    %c0_5 = arith.constant 0 : index
    %6 = vector.load %arg4[%c0_4, %c0_5] : memref<128x128xbf16, #tpu.memory_space<vmem>>, vector<128x128xbf16>
    %cst = arith.constant dense<0.000000e+00> : vector<16x128xf32>
    %7 = tpu.matmul %5, %6, %cst {dimension_numbers = #tpu.dot_dimension_numbers<[1], [0], [0], [1], [0, 0, 1, 1], [], []>} : vector<16x128xbf16>, vector<128x128xbf16>, vector<16x128xf32> -> vector<16x128xf32>
    %8 = arith.addf %3, %7 : vector<16x128xf32>
    %c0_6 = arith.constant 0 : index
    %c0_7 = arith.constant 0 : index
    %9 = vector.load %arg8[%c0_6, %c0_7] : memref<16x128xf32, #tpu.memory_space<vmem>>, vector<16x128xf32>
    tpu.vector_store %arg8[%c0_6, %c0_7], %8 {strides = array<i32>} : memref<16x128xf32, #tpu.memory_space<vmem>>, vector<16x128xf32>,
    %c0_i32_8 = arith.constant 0 : i32
    %10 = arith.cmpi eq, %arg2, %c0_i32_8 : i32
    %11 = arith.extui %10 : i1 to i32
    %c0_i32_9 = arith.constant 0 : i32
    %12 = arith.cmpi ne, %11, %c0_i32_9 : i32
    scf.if %12 {
      %c0_10 = arith.constant 0 : index
      %c0_11 = arith.constant 0 : index
      %13 = vector.load %arg8[%c0_10, %c0_11] : memref<16x128xf32, #tpu.memory_space<vmem>>, vector<16x128xf32>
      %c0_12 = arith.constant 0 : index
      %c0_13 = arith.constant 0 : index
      %14 = vector.load %arg5[%c0_12, %c0_13] : memref<1x128xf32, #tpu.memory_space<vmem>>, vector<1x128xf32>
      %15 = vector.broadcast %14 : vector<1x128xf32> to vector<16x128xf32>
      %16 = arith.addf %13, %15 : vector<16x128xf32>
      %c0_14 = arith.constant 0 : index
      %c0_15 = arith.constant 0 : index
      %17 = vector.load %arg6[%c0_14, %c0_15] : memref<16x128xf32, #tpu.memory_space<vmem>>, vector<16x128xf32>
      %18 = arith.addf %16, %17 : vector<16x128xf32>
      %c0_16 = arith.constant 0 : index
      %c0_17 = arith.constant 0 : index
      %19 = vector.load %arg7[%c0_16, %c0_17] : memref<16x128xf32, #tpu.memory_space<vmem>>, vector<16x128xf32>
      tpu.vector_store %arg7[%c0_16, %c0_17], %18 {strides = array<i32>} : memref<16x128xf32, #tpu.memory_space<vmem>>, vector<16x128xf32>,
    } else {
    }
    return
  }
  func.func @transform_0(%arg0: i32, %arg1: i32, %arg2: i32) -> (i32, i32) {
    %c0_i32 = arith.constant 0 : i32
    return %arg0, %arg2 : i32, i32
  }
  func.func @transform_1(%arg0: i32, %arg1: i32, %arg2: i32) -> (i32, i32) {
    %c0_i32 = arith.constant 0 : i32
    return %arg2, %arg1 : i32, i32
  }
  func.func @transform_2(%arg0: i32, %arg1: i32, %arg2: i32) -> (i32, i32) {
    %c0_i32 = arith.constant 0 : i32
    %c0_i32_0 = arith.constant 0 : i32
    return %c0_i32, %arg1 : i32, i32
  }
  func.func @transform_3(%arg0: i32, %arg1: i32, %arg2: i32) -> (i32, i32) {
    %c0_i32 = arith.constant 0 : i32
    return %arg0, %arg1 : i32, i32
  }
  func.func @transform_4(%arg0: i32, %arg1: i32, %arg2: i32) -> (i32, i32) {
    %c0_i32 = arith.constant 0 : i32
    return %arg0, %arg1 : i32, i32
  }
}

module attributes {stable_mosaic.version = 11 : i64} {
  func.func @_linear_kernel(%arg0: i32, %arg1: i32, %arg2: i32, %arg3: memref<16x128xf32, #tpu.memory_space<vmem>>, %arg4: memref<128x256xbf16, #tpu.memory_space<vmem>>, %arg5: memref<1x256xf32, #tpu.memory_space<vmem>>, %arg6: memref<16x256xf32, #tpu.memory_space<vmem>>, %arg7: memref<16x256xf32, #tpu.memory_space<vmem>>) attributes {dimension_semantics = [#tpu.dimension_semantics<parallel>, #tpu.dimension_semantics<parallel>, #tpu.dimension_semantics<arbitrary>], iteration_bounds = array<i64: 1, 1, 1>, scalar_prefetch = 0 : i64, scratch_operands = 1 : i64, tpu.core_type = #tpu.core_type<tc>, window_params = [{transform_indices = @transform_0, window_bounds = array<i64: 16, 128>}, {transform_indices = @transform_1, window_bounds = array<i64: 128, 256>}, {transform_indices = @transform_2, window_bounds = array<i64: 1, 256>}, {transform_indices = @transform_3, window_bounds = array<i64: 16, 256>}]} {
    %c0_i32 = arith.constant 0 : i32
    %0 = arith.cmpi eq, %arg2, %c0_i32 : i32
    %1 = arith.extui %0 : i1 to i32
    %c0_i32_0 = arith.constant 0 : i32
    %2 = arith.cmpi ne, %1, %c0_i32_0 : i32
    scf.if %2 {
      %cst_10 = arith.constant 0.000000e+00 : f32
      %13 = vector.broadcast %cst_10 : f32 to vector<16x256xf32>
      %c0_11 = arith.constant 0 : index
      %c0_12 = arith.constant 0 : index
      %14 = vector.load %arg7[%c0_11, %c0_12] : memref<16x256xf32, #tpu.memory_space<vmem>>, vector<16x256xf32>
      tpu.vector_store %arg7[%c0_11, %c0_12], %13 {strides = array<i32>} : memref<16x256xf32, #tpu.memory_space<vmem>>, vector<16x256xf32>,
    } else {
    }
    %c0 = arith.constant 0 : index
    %c0_1 = arith.constant 0 : index
    %3 = vector.load %arg7[%c0, %c0_1] : memref<16x256xf32, #tpu.memory_space<vmem>>, vector<16x256xf32>
    %c0_2 = arith.constant 0 : index
    %c0_3 = arith.constant 0 : index
    %4 = vector.load %arg3[%c0_2, %c0_3] : memref<16x128xf32, #tpu.memory_space<vmem>>, vector<16x128xf32>
    %5 = arith.truncf %4 : vector<16x128xf32> to vector<16x128xbf16>
    %c0_4 = arith.constant 0 : index
    %c0_5 = arith.constant 0 : index
    %6 = vector.load %arg4[%c0_4, %c0_5] : memref<128x256xbf16, #tpu.memory_space<vmem>>, vector<128x256xbf16>
    %cst = arith.constant dense<0.000000e+00> : vector<16x256xf32>
    %7 = tpu.matmul %5, %6, %cst {dimension_numbers = #tpu.dot_dimension_numbers<[1], [0], [0], [1], [0, 0, 1, 1], [], []>} : vector<16x128xbf16>, vector<128x256xbf16>, vector<16x256xf32> -> vector<16x256xf32>
    %8 = arith.addf %3, %7 : vector<16x256xf32>
    %c0_6 = arith.constant 0 : index
    %c0_7 = arith.constant 0 : index
    %9 = vector.load %arg7[%c0_6, %c0_7] : memref<16x256xf32, #tpu.memory_space<vmem>>, vector<16x256xf32>
    tpu.vector_store %arg7[%c0_6, %c0_7], %8 {strides = array<i32>} : memref<16x256xf32, #tpu.memory_space<vmem>>, vector<16x256xf32>,
    %c0_i32_8 = arith.constant 0 : i32
    %10 = arith.cmpi eq, %arg2, %c0_i32_8 : i32
    %11 = arith.extui %10 : i1 to i32
    %c0_i32_9 = arith.constant 0 : i32
    %12 = arith.cmpi ne, %11, %c0_i32_9 : i32
    scf.if %12 {
      %c0_10 = arith.constant 0 : index
      %c0_11 = arith.constant 0 : index
      %13 = vector.load %arg7[%c0_10, %c0_11] : memref<16x256xf32, #tpu.memory_space<vmem>>, vector<16x256xf32>
      %c0_12 = arith.constant 0 : index
      %c0_13 = arith.constant 0 : index
      %14 = vector.load %arg5[%c0_12, %c0_13] : memref<1x256xf32, #tpu.memory_space<vmem>>, vector<1x256xf32>
      %15 = vector.broadcast %14 : vector<1x256xf32> to vector<16x256xf32>
      %16 = arith.addf %13, %15 : vector<16x256xf32>
      %cst_14 = arith.constant 5.000000e-01 : f32
      %17 = vector.broadcast %cst_14 : f32 to vector<16x256xf32>
      %18 = arith.mulf %17, %16 : vector<16x256xf32>
      %cst_15 = arith.constant 0.707106769 : f32
      %19 = vector.broadcast %cst_15 : f32 to vector<16x256xf32>
      %20 = arith.mulf %16, %19 : vector<16x256xf32>
      %cst_16 = arith.constant 0.000000e+00 : f32
      %21 = vector.broadcast %cst_16 : f32 to vector<16x256xf32>
      %22 = arith.cmpf oge, %20, %21 : vector<16x256xf32>
      %cst_17 = arith.constant 1.000000e+00 : f32
      %cst_18 = arith.constant -1.000000e+00 : f32
      %23 = vector.broadcast %cst_17 : f32 to vector<16x256xf32>
      %24 = vector.broadcast %cst_18 : f32 to vector<16x256xf32>
      %25 = arith.select %22, %23, %24 : vector<16x256xi1>, vector<16x256xf32>
      %26 = math.absf %20 : vector<16x256xf32>
      %cst_19 = arith.constant 0.327591091 : f32
      %27 = vector.broadcast %cst_19 : f32 to vector<16x256xf32>
      %28 = arith.mulf %27, %26 : vector<16x256xf32>
      %cst_20 = arith.constant 1.000000e+00 : f32
      %29 = vector.broadcast %cst_20 : f32 to vector<16x256xf32>
      %30 = arith.addf %29, %28 : vector<16x256xf32>
      %cst_21 = arith.constant 1.000000e+00 : f32
      %31 = vector.broadcast %cst_21 : f32 to vector<16x256xf32>
      %32 = arith.divf %31, %30 : vector<16x256xf32>
      %cst_22 = arith.constant 1.06140542 : f32
      %33 = vector.broadcast %cst_22 : f32 to vector<16x256xf32>
      %34 = arith.mulf %32, %33 : vector<16x256xf32>
      %cst_23 = arith.constant -1.45315206 : f32
      %35 = vector.broadcast %cst_23 : f32 to vector<16x256xf32>
      %36 = arith.addf %35, %34 : vector<16x256xf32>
      %37 = arith.mulf %32, %36 : vector<16x256xf32>
      %cst_24 = arith.constant 1.42141378 : f32
      %38 = vector.broadcast %cst_24 : f32 to vector<16x256xf32>
      %39 = arith.addf %38, %37 : vector<16x256xf32>
      %40 = arith.mulf %32, %39 : vector<16x256xf32>
      %cst_25 = arith.constant -0.284496725 : f32
      %41 = vector.broadcast %cst_25 : f32 to vector<16x256xf32>
      %42 = arith.addf %41, %40 : vector<16x256xf32>
      %43 = arith.mulf %32, %42 : vector<16x256xf32>
      %cst_26 = arith.constant 0.254829586 : f32
      %44 = vector.broadcast %cst_26 : f32 to vector<16x256xf32>
      %45 = arith.addf %44, %43 : vector<16x256xf32>
      %46 = arith.mulf %32, %45 : vector<16x256xf32>
      %cst_27 = arith.constant 0.000000e+00 : f32
      %47 = vector.broadcast %cst_27 : f32 to vector<16x256xf32>
      %48 = arith.subf %47, %26 : vector<16x256xf32>
      %49 = arith.mulf %48, %26 : vector<16x256xf32>
      %50 = math.exp %49 : vector<16x256xf32>
      %51 = arith.mulf %46, %50 : vector<16x256xf32>
      %cst_28 = arith.constant 1.000000e+00 : f32
      %52 = vector.broadcast %cst_28 : f32 to vector<16x256xf32>
      %53 = arith.subf %52, %51 : vector<16x256xf32>
      %54 = arith.mulf %25, %53 : vector<16x256xf32>
      %cst_29 = arith.constant 1.000000e+00 : f32
      %55 = vector.broadcast %cst_29 : f32 to vector<16x256xf32>
      %56 = arith.addf %55, %54 : vector<16x256xf32>
      %57 = arith.mulf %18, %56 : vector<16x256xf32>
      %c0_30 = arith.constant 0 : index
      %c0_31 = arith.constant 0 : index
      %58 = vector.load %arg6[%c0_30, %c0_31] : memref<16x256xf32, #tpu.memory_space<vmem>>, vector<16x256xf32>
      tpu.vector_store %arg6[%c0_30, %c0_31], %57 {strides = array<i32>} : memref<16x256xf32, #tpu.memory_space<vmem>>, vector<16x256xf32>,
    } else {
    }
    return
  }
  func.func @transform_0(%arg0: i32, %arg1: i32, %arg2: i32) -> (i32, i32) {
    %c0_i32 = arith.constant 0 : i32
    return %arg0, %arg2 : i32, i32
  }
  func.func @transform_1(%arg0: i32, %arg1: i32, %arg2: i32) -> (i32, i32) {
    %c0_i32 = arith.constant 0 : i32
    return %arg2, %arg1 : i32, i32
  }
  func.func @transform_2(%arg0: i32, %arg1: i32, %arg2: i32) -> (i32, i32) {
    %c0_i32 = arith.constant 0 : i32
    %c0_i32_0 = arith.constant 0 : i32
    return %c0_i32, %arg1 : i32, i32
  }
  func.func @transform_3(%arg0: i32, %arg1: i32, %arg2: i32) -> (i32, i32) {
    %c0_i32 = arith.constant 0 : i32
    return %arg0, %arg1 : i32, i32
  }
}

module attributes {stable_mosaic.version = 11 : i64} {
  func.func @_linear_kernel(%arg0: i32, %arg1: i32, %arg2: i32, %arg3: memref<16x256xf32, #tpu.memory_space<vmem>>, %arg4: memref<256x128xbf16, #tpu.memory_space<vmem>>, %arg5: memref<1x128xf32, #tpu.memory_space<vmem>>, %arg6: memref<16x128xf32, #tpu.memory_space<vmem>>, %arg7: memref<16x128xf32, #tpu.memory_space<vmem>>, %arg8: memref<16x128xf32, #tpu.memory_space<vmem>>) attributes {dimension_semantics = [#tpu.dimension_semantics<parallel>, #tpu.dimension_semantics<parallel>, #tpu.dimension_semantics<arbitrary>], iteration_bounds = array<i64: 1, 1, 1>, scalar_prefetch = 0 : i64, scratch_operands = 1 : i64, tpu.core_type = #tpu.core_type<tc>, window_params = [{transform_indices = @transform_0, window_bounds = array<i64: 16, 256>}, {transform_indices = @transform_1, window_bounds = array<i64: 256, 128>}, {transform_indices = @transform_2, window_bounds = array<i64: 1, 128>}, {transform_indices = @transform_3, window_bounds = array<i64: 16, 128>}, {transform_indices = @transform_4, window_bounds = array<i64: 16, 128>}]} {
    %c0_i32 = arith.constant 0 : i32
    %0 = arith.cmpi eq, %arg2, %c0_i32 : i32
    %1 = arith.extui %0 : i1 to i32
    %c0_i32_0 = arith.constant 0 : i32
    %2 = arith.cmpi ne, %1, %c0_i32_0 : i32
    scf.if %2 {
      %cst_10 = arith.constant 0.000000e+00 : f32
      %13 = vector.broadcast %cst_10 : f32 to vector<16x128xf32>
      %c0_11 = arith.constant 0 : index
      %c0_12 = arith.constant 0 : index
      %14 = vector.load %arg8[%c0_11, %c0_12] : memref<16x128xf32, #tpu.memory_space<vmem>>, vector<16x128xf32>
      tpu.vector_store %arg8[%c0_11, %c0_12], %13 {strides = array<i32>} : memref<16x128xf32, #tpu.memory_space<vmem>>, vector<16x128xf32>,
    } else {
    }
    %c0 = arith.constant 0 : index
    %c0_1 = arith.constant 0 : index
    %3 = vector.load %arg8[%c0, %c0_1] : memref<16x128xf32, #tpu.memory_space<vmem>>, vector<16x128xf32>
    %c0_2 = arith.constant 0 : index
    %c0_3 = arith.constant 0 : index
    %4 = vector.load %arg3[%c0_2, %c0_3] : memref<16x256xf32, #tpu.memory_space<vmem>>, vector<16x256xf32>
    %5 = arith.truncf %4 : vector<16x256xf32> to vector<16x256xbf16>
    %c0_4 = arith.constant 0 : index
    %c0_5 = arith.constant 0 : index
    %6 = vector.load %arg4[%c0_4, %c0_5] : memref<256x128xbf16, #tpu.memory_space<vmem>>, vector<256x128xbf16>
    %cst = arith.constant dense<0.000000e+00> : vector<16x128xf32>
    %7 = tpu.matmul %5, %6, %cst {dimension_numbers = #tpu.dot_dimension_numbers<[1], [0], [0], [1], [0, 0, 1, 1], [], []>} : vector<16x256xbf16>, vector<256x128xbf16>, vector<16x128xf32> -> vector<16x128xf32>
    %8 = arith.addf %3, %7 : vector<16x128xf32>
    %c0_6 = arith.constant 0 : index
    %c0_7 = arith.constant 0 : index
    %9 = vector.load %arg8[%c0_6, %c0_7] : memref<16x128xf32, #tpu.memory_space<vmem>>, vector<16x128xf32>
    tpu.vector_store %arg8[%c0_6, %c0_7], %8 {strides = array<i32>} : memref<16x128xf32, #tpu.memory_space<vmem>>, vector<16x128xf32>,
    %c0_i32_8 = arith.constant 0 : i32
    %10 = arith.cmpi eq, %arg2, %c0_i32_8 : i32
    %11 = arith.extui %10 : i1 to i32
    %c0_i32_9 = arith.constant 0 : i32
    %12 = arith.cmpi ne, %11, %c0_i32_9 : i32
    scf.if %12 {
      %c0_10 = arith.constant 0 : index
      %c0_11 = arith.constant 0 : index
      %13 = vector.load %arg8[%c0_10, %c0_11] : memref<16x128xf32, #tpu.memory_space<vmem>>, vector<16x128xf32>
      %c0_12 = arith.constant 0 : index
      %c0_13 = arith.constant 0 : index
      %14 = vector.load %arg5[%c0_12, %c0_13] : memref<1x128xf32, #tpu.memory_space<vmem>>, vector<1x128xf32>
      %15 = vector.broadcast %14 : vector<1x128xf32> to vector<16x128xf32>
      %16 = arith.addf %13, %15 : vector<16x128xf32>
      %c0_14 = arith.constant 0 : index
      %c0_15 = arith.constant 0 : index
      %17 = vector.load %arg6[%c0_14, %c0_15] : memref<16x128xf32, #tpu.memory_space<vmem>>, vector<16x128xf32>
      %18 = arith.addf %16, %17 : vector<16x128xf32>
      %c0_16 = arith.constant 0 : index
      %c0_17 = arith.constant 0 : index
      %19 = vector.load %arg7[%c0_16, %c0_17] : memref<16x128xf32, #tpu.memory_space<vmem>>, vector<16x128xf32>
      tpu.vector_store %arg7[%c0_16, %c0_17], %18 {strides = array<i32>} : memref<16x128xf32, #tpu.memory_space<vmem>>, vector<16x128xf32>,
    } else {
    }
    return
  }
  func.func @transform_0(%arg0: i32, %arg1: i32, %arg2: i32) -> (i32, i32) {
    %c0_i32 = arith.constant 0 : i32
    return %arg0, %arg2 : i32, i32
  }
  func.func @transform_1(%arg0: i32, %arg1: i32, %arg2: i32) -> (i32, i32) {
    %c0_i32 = arith.constant 0 : i32
    return %arg2, %arg1 : i32, i32
  }
  func.func @transform_2(%arg0: i32, %arg1: i32, %arg2: i32) -> (i32, i32) {
    %c0_i32 = arith.constant 0 : i32
    %c0_i32_0 = arith.constant 0 : i32
    return %c0_i32, %arg1 : i32, i32
  }
  func.func @transform_3(%arg0: i32, %arg1: i32, %arg2: i32) -> (i32, i32) {
    %c0_i32 = arith.constant 0 : i32
    return %arg0, %arg1 : i32, i32
  }
  func.func @transform_4(%arg0: i32, %arg1: i32, %arg2: i32) -> (i32, i32) {
    %c0_i32 = arith.constant 0 : i32
    return %arg0, %arg1 : i32, i32
  }
}

module attributes {stable_mosaic.version = 11 : i64} {
  func.func @_linear_kernel(%arg0: i32, %arg1: i32, %arg2: i32, %arg3: memref<8x128xf32, #tpu.memory_space<vmem>>, %arg4: memref<128x128xbf16, #tpu.memory_space<vmem>>, %arg5: memref<1x128xf32, #tpu.memory_space<vmem>>, %arg6: memref<8x128xf32, #tpu.memory_space<vmem>>, %arg7: memref<8x128xf32, #tpu.memory_space<vmem>>) attributes {dimension_semantics = [#tpu.dimension_semantics<parallel>, #tpu.dimension_semantics<parallel>, #tpu.dimension_semantics<arbitrary>], iteration_bounds = array<i64: 1, 1, 1>, scalar_prefetch = 0 : i64, scratch_operands = 1 : i64, tpu.core_type = #tpu.core_type<tc>, window_params = [{transform_indices = @transform_0, window_bounds = array<i64: 8, 128>}, {transform_indices = @transform_1, window_bounds = array<i64: 128, 128>}, {transform_indices = @transform_2, window_bounds = array<i64: 1, 128>}, {transform_indices = @transform_3, window_bounds = array<i64: 8, 128>}]} {
    %c0_i32 = arith.constant 0 : i32
    %0 = arith.cmpi eq, %arg2, %c0_i32 : i32
    %1 = arith.extui %0 : i1 to i32
    %c0_i32_0 = arith.constant 0 : i32
    %2 = arith.cmpi ne, %1, %c0_i32_0 : i32
    scf.if %2 {
      %cst_10 = arith.constant 0.000000e+00 : f32
      %13 = vector.broadcast %cst_10 : f32 to vector<8x128xf32>
      %c0_11 = arith.constant 0 : index
      %c0_12 = arith.constant 0 : index
      %14 = vector.load %arg7[%c0_11, %c0_12] : memref<8x128xf32, #tpu.memory_space<vmem>>, vector<8x128xf32>
      tpu.vector_store %arg7[%c0_11, %c0_12], %13 {strides = array<i32>} : memref<8x128xf32, #tpu.memory_space<vmem>>, vector<8x128xf32>,
    } else {
    }
    %c0 = arith.constant 0 : index
    %c0_1 = arith.constant 0 : index
    %3 = vector.load %arg7[%c0, %c0_1] : memref<8x128xf32, #tpu.memory_space<vmem>>, vector<8x128xf32>
    %c0_2 = arith.constant 0 : index
    %c0_3 = arith.constant 0 : index
    %4 = vector.load %arg3[%c0_2, %c0_3] : memref<8x128xf32, #tpu.memory_space<vmem>>, vector<8x128xf32>
    %5 = arith.truncf %4 : vector<8x128xf32> to vector<8x128xbf16>
    %c0_4 = arith.constant 0 : index
    %c0_5 = arith.constant 0 : index
    %6 = vector.load %arg4[%c0_4, %c0_5] : memref<128x128xbf16, #tpu.memory_space<vmem>>, vector<128x128xbf16>
    %cst = arith.constant dense<0.000000e+00> : vector<8x128xf32>
    %7 = tpu.matmul %5, %6, %cst {dimension_numbers = #tpu.dot_dimension_numbers<[1], [0], [0], [1], [0, 0, 1, 1], [], []>} : vector<8x128xbf16>, vector<128x128xbf16>, vector<8x128xf32> -> vector<8x128xf32>
    %8 = arith.addf %3, %7 : vector<8x128xf32>
    %c0_6 = arith.constant 0 : index
    %c0_7 = arith.constant 0 : index
    %9 = vector.load %arg7[%c0_6, %c0_7] : memref<8x128xf32, #tpu.memory_space<vmem>>, vector<8x128xf32>
    tpu.vector_store %arg7[%c0_6, %c0_7], %8 {strides = array<i32>} : memref<8x128xf32, #tpu.memory_space<vmem>>, vector<8x128xf32>,
    %c0_i32_8 = arith.constant 0 : i32
    %10 = arith.cmpi eq, %arg2, %c0_i32_8 : i32
    %11 = arith.extui %10 : i1 to i32
    %c0_i32_9 = arith.constant 0 : i32
    %12 = arith.cmpi ne, %11, %c0_i32_9 : i32
    scf.if %12 {
      %c0_10 = arith.constant 0 : index
      %c0_11 = arith.constant 0 : index
      %13 = vector.load %arg7[%c0_10, %c0_11] : memref<8x128xf32, #tpu.memory_space<vmem>>, vector<8x128xf32>
      %c0_12 = arith.constant 0 : index
      %c0_13 = arith.constant 0 : index
      %14 = vector.load %arg5[%c0_12, %c0_13] : memref<1x128xf32, #tpu.memory_space<vmem>>, vector<1x128xf32>
      %15 = vector.broadcast %14 : vector<1x128xf32> to vector<8x128xf32>
      %16 = arith.addf %13, %15 : vector<8x128xf32>
      %cst_14 = arith.constant 5.000000e-01 : f32
      %17 = vector.broadcast %cst_14 : f32 to vector<8x128xf32>
      %18 = arith.mulf %17, %16 : vector<8x128xf32>
      %cst_15 = arith.constant 0.707106769 : f32
      %19 = vector.broadcast %cst_15 : f32 to vector<8x128xf32>
      %20 = arith.mulf %16, %19 : vector<8x128xf32>
      %cst_16 = arith.constant 0.000000e+00 : f32
      %21 = vector.broadcast %cst_16 : f32 to vector<8x128xf32>
      %22 = arith.cmpf oge, %20, %21 : vector<8x128xf32>
      %cst_17 = arith.constant 1.000000e+00 : f32
      %cst_18 = arith.constant -1.000000e+00 : f32
      %23 = vector.broadcast %cst_17 : f32 to vector<8x128xf32>
      %24 = vector.broadcast %cst_18 : f32 to vector<8x128xf32>
      %25 = arith.select %22, %23, %24 : vector<8x128xi1>, vector<8x128xf32>
      %26 = math.absf %20 : vector<8x128xf32>
      %cst_19 = arith.constant 0.327591091 : f32
      %27 = vector.broadcast %cst_19 : f32 to vector<8x128xf32>
      %28 = arith.mulf %27, %26 : vector<8x128xf32>
      %cst_20 = arith.constant 1.000000e+00 : f32
      %29 = vector.broadcast %cst_20 : f32 to vector<8x128xf32>
      %30 = arith.addf %29, %28 : vector<8x128xf32>
      %cst_21 = arith.constant 1.000000e+00 : f32
      %31 = vector.broadcast %cst_21 : f32 to vector<8x128xf32>
      %32 = arith.divf %31, %30 : vector<8x128xf32>
      %cst_22 = arith.constant 1.06140542 : f32
      %33 = vector.broadcast %cst_22 : f32 to vector<8x128xf32>
      %34 = arith.mulf %32, %33 : vector<8x128xf32>
      %cst_23 = arith.constant -1.45315206 : f32
      %35 = vector.broadcast %cst_23 : f32 to vector<8x128xf32>
      %36 = arith.addf %35, %34 : vector<8x128xf32>
      %37 = arith.mulf %32, %36 : vector<8x128xf32>
      %cst_24 = arith.constant 1.42141378 : f32
      %38 = vector.broadcast %cst_24 : f32 to vector<8x128xf32>
      %39 = arith.addf %38, %37 : vector<8x128xf32>
      %40 = arith.mulf %32, %39 : vector<8x128xf32>
      %cst_25 = arith.constant -0.284496725 : f32
      %41 = vector.broadcast %cst_25 : f32 to vector<8x128xf32>
      %42 = arith.addf %41, %40 : vector<8x128xf32>
      %43 = arith.mulf %32, %42 : vector<8x128xf32>
      %cst_26 = arith.constant 0.254829586 : f32
      %44 = vector.broadcast %cst_26 : f32 to vector<8x128xf32>
      %45 = arith.addf %44, %43 : vector<8x128xf32>
      %46 = arith.mulf %32, %45 : vector<8x128xf32>
      %cst_27 = arith.constant 0.000000e+00 : f32
      %47 = vector.broadcast %cst_27 : f32 to vector<8x128xf32>
      %48 = arith.subf %47, %26 : vector<8x128xf32>
      %49 = arith.mulf %48, %26 : vector<8x128xf32>
      %50 = math.exp %49 : vector<8x128xf32>
      %51 = arith.mulf %46, %50 : vector<8x128xf32>
      %cst_28 = arith.constant 1.000000e+00 : f32
      %52 = vector.broadcast %cst_28 : f32 to vector<8x128xf32>
      %53 = arith.subf %52, %51 : vector<8x128xf32>
      %54 = arith.mulf %25, %53 : vector<8x128xf32>
      %cst_29 = arith.constant 1.000000e+00 : f32
      %55 = vector.broadcast %cst_29 : f32 to vector<8x128xf32>
      %56 = arith.addf %55, %54 : vector<8x128xf32>
      %57 = arith.mulf %18, %56 : vector<8x128xf32>
      %c0_30 = arith.constant 0 : index
      %c0_31 = arith.constant 0 : index
      %58 = vector.load %arg6[%c0_30, %c0_31] : memref<8x128xf32, #tpu.memory_space<vmem>>, vector<8x128xf32>
      tpu.vector_store %arg6[%c0_30, %c0_31], %57 {strides = array<i32>} : memref<8x128xf32, #tpu.memory_space<vmem>>, vector<8x128xf32>,
    } else {
    }
    return
  }
  func.func @transform_0(%arg0: i32, %arg1: i32, %arg2: i32) -> (i32, i32) {
    %c0_i32 = arith.constant 0 : i32
    return %arg0, %arg2 : i32, i32
  }
  func.func @transform_1(%arg0: i32, %arg1: i32, %arg2: i32) -> (i32, i32) {
    %c0_i32 = arith.constant 0 : i32
    return %arg2, %arg1 : i32, i32
  }
  func.func @transform_2(%arg0: i32, %arg1: i32, %arg2: i32) -> (i32, i32) {
    %c0_i32 = arith.constant 0 : i32
    %c0_i32_0 = arith.constant 0 : i32
    return %c0_i32, %arg1 : i32, i32
  }
  func.func @transform_3(%arg0: i32, %arg1: i32, %arg2: i32) -> (i32, i32) {
    %c0_i32 = arith.constant 0 : i32
    return %arg0, %arg1 : i32, i32
  }
}

module attributes {stable_mosaic.version = 11 : i64} {
  func.func @_linear_kernel(%arg0: i32, %arg1: i32, %arg2: i32, %arg3: memref<8x128xf32, #tpu.memory_space<vmem>>, %arg4: memref<128x128xbf16, #tpu.memory_space<vmem>>, %arg5: memref<1x128xf32, #tpu.memory_space<vmem>>, %arg6: memref<8x128xf32, #tpu.memory_space<vmem>>, %arg7: memref<8x128xf32, #tpu.memory_space<vmem>>) attributes {dimension_semantics = [#tpu.dimension_semantics<parallel>, #tpu.dimension_semantics<parallel>, #tpu.dimension_semantics<arbitrary>], iteration_bounds = array<i64: 1, 1, 1>, scalar_prefetch = 0 : i64, scratch_operands = 1 : i64, tpu.core_type = #tpu.core_type<tc>, window_params = [{transform_indices = @transform_0, window_bounds = array<i64: 8, 128>}, {transform_indices = @transform_1, window_bounds = array<i64: 128, 128>}, {transform_indices = @transform_2, window_bounds = array<i64: 1, 128>}, {transform_indices = @transform_3, window_bounds = array<i64: 8, 128>}]} {
    %c0_i32 = arith.constant 0 : i32
    %0 = arith.cmpi eq, %arg2, %c0_i32 : i32
    %1 = arith.extui %0 : i1 to i32
    %c0_i32_0 = arith.constant 0 : i32
    %2 = arith.cmpi ne, %1, %c0_i32_0 : i32
    scf.if %2 {
      %cst_10 = arith.constant 0.000000e+00 : f32
      %13 = vector.broadcast %cst_10 : f32 to vector<8x128xf32>
      %c0_11 = arith.constant 0 : index
      %c0_12 = arith.constant 0 : index
      %14 = vector.load %arg7[%c0_11, %c0_12] : memref<8x128xf32, #tpu.memory_space<vmem>>, vector<8x128xf32>
      tpu.vector_store %arg7[%c0_11, %c0_12], %13 {strides = array<i32>} : memref<8x128xf32, #tpu.memory_space<vmem>>, vector<8x128xf32>,
    } else {
    }
    %c0 = arith.constant 0 : index
    %c0_1 = arith.constant 0 : index
    %3 = vector.load %arg7[%c0, %c0_1] : memref<8x128xf32, #tpu.memory_space<vmem>>, vector<8x128xf32>
    %c0_2 = arith.constant 0 : index
    %c0_3 = arith.constant 0 : index
    %4 = vector.load %arg3[%c0_2, %c0_3] : memref<8x128xf32, #tpu.memory_space<vmem>>, vector<8x128xf32>
    %5 = arith.truncf %4 : vector<8x128xf32> to vector<8x128xbf16>
    %c0_4 = arith.constant 0 : index
    %c0_5 = arith.constant 0 : index
    %6 = vector.load %arg4[%c0_4, %c0_5] : memref<128x128xbf16, #tpu.memory_space<vmem>>, vector<128x128xbf16>
    %cst = arith.constant dense<0.000000e+00> : vector<8x128xf32>
    %7 = tpu.matmul %5, %6, %cst {dimension_numbers = #tpu.dot_dimension_numbers<[1], [0], [0], [1], [0, 0, 1, 1], [], []>} : vector<8x128xbf16>, vector<128x128xbf16>, vector<8x128xf32> -> vector<8x128xf32>
    %8 = arith.addf %3, %7 : vector<8x128xf32>
    %c0_6 = arith.constant 0 : index
    %c0_7 = arith.constant 0 : index
    %9 = vector.load %arg7[%c0_6, %c0_7] : memref<8x128xf32, #tpu.memory_space<vmem>>, vector<8x128xf32>
    tpu.vector_store %arg7[%c0_6, %c0_7], %8 {strides = array<i32>} : memref<8x128xf32, #tpu.memory_space<vmem>>, vector<8x128xf32>,
    %c0_i32_8 = arith.constant 0 : i32
    %10 = arith.cmpi eq, %arg2, %c0_i32_8 : i32
    %11 = arith.extui %10 : i1 to i32
    %c0_i32_9 = arith.constant 0 : i32
    %12 = arith.cmpi ne, %11, %c0_i32_9 : i32
    scf.if %12 {
      %c0_10 = arith.constant 0 : index
      %c0_11 = arith.constant 0 : index
      %13 = vector.load %arg7[%c0_10, %c0_11] : memref<8x128xf32, #tpu.memory_space<vmem>>, vector<8x128xf32>
      %c0_12 = arith.constant 0 : index
      %c0_13 = arith.constant 0 : index
      %14 = vector.load %arg5[%c0_12, %c0_13] : memref<1x128xf32, #tpu.memory_space<vmem>>, vector<1x128xf32>
      %15 = vector.broadcast %14 : vector<1x128xf32> to vector<8x128xf32>
      %16 = arith.addf %13, %15 : vector<8x128xf32>
      %c0_14 = arith.constant 0 : index
      %c0_15 = arith.constant 0 : index
      %17 = vector.load %arg6[%c0_14, %c0_15] : memref<8x128xf32, #tpu.memory_space<vmem>>, vector<8x128xf32>
      tpu.vector_store %arg6[%c0_14, %c0_15], %16 {strides = array<i32>} : memref<8x128xf32, #tpu.memory_space<vmem>>, vector<8x128xf32>,
    } else {
    }
    return
  }
  func.func @transform_0(%arg0: i32, %arg1: i32, %arg2: i32) -> (i32, i32) {
    %c0_i32 = arith.constant 0 : i32
    return %arg0, %arg2 : i32, i32
  }
  func.func @transform_1(%arg0: i32, %arg1: i32, %arg2: i32) -> (i32, i32) {
    %c0_i32 = arith.constant 0 : i32
    return %arg2, %arg1 : i32, i32
  }
  func.func @transform_2(%arg0: i32, %arg1: i32, %arg2: i32) -> (i32, i32) {
    %c0_i32 = arith.constant 0 : i32
    %c0_i32_0 = arith.constant 0 : i32
    return %c0_i32, %arg1 : i32, i32
  }
  func.func @transform_3(%arg0: i32, %arg1: i32, %arg2: i32) -> (i32, i32) {
    %c0_i32 = arith.constant 0 : i32
    return %arg0, %arg1 : i32, i32
  }
}

module attributes {stable_mosaic.version = 11 : i64} {
  func.func @_l2norm_kernel(%arg0: i32, %arg1: memref<8x64xf32, #tpu.memory_space<vmem>>, %arg2: memref<8x1xf32, #tpu.memory_space<vmem>>, %arg3: memref<8x64xf32, #tpu.memory_space<vmem>>) attributes {dimension_semantics = [#tpu.dimension_semantics<parallel>], iteration_bounds = array<i64: 1>, scalar_prefetch = 0 : i64, scratch_operands = 0 : i64, tpu.core_type = #tpu.core_type<tc>, window_params = [{transform_indices = @transform_0, window_bounds = array<i64: 8, 64>}, {transform_indices = @transform_1, window_bounds = array<i64: 8, 1>}, {transform_indices = @transform_2, window_bounds = array<i64: 8, 64>}]} {
    %c0 = arith.constant 0 : index
    %c0_0 = arith.constant 0 : index
    %0 = vector.load %arg1[%c0, %c0_0] : memref<8x64xf32, #tpu.memory_space<vmem>>, vector<8x64xf32>
    %1 = arith.mulf %0, %0 : vector<8x64xf32>
    %cst = arith.constant dense<0.000000e+00> : vector<8xf32>
    %2 = vector.multi_reduction <add>, %1, %cst [1] : vector<8x64xf32> to vector<8xf32>
    %3 = vector.shape_cast %2 : vector<8xf32> to vector<8x1xf32>
    %4 = math.sqrt %3 : vector<8x1xf32>
    %c0_1 = arith.constant 0 : index
    %c0_2 = arith.constant 0 : index
    %5 = vector.load %arg2[%c0_1, %c0_2] : memref<8x1xf32, #tpu.memory_space<vmem>>, vector<8x1xf32>
    %cst_3 = arith.constant 9.99999996E-13 : f32
    %6 = vector.broadcast %cst_3 : f32 to vector<8x1xf32>
    %7 = arith.maximumf %4, %6 : vector<8x1xf32>
    %8 = arith.divf %5, %7 : vector<8x1xf32>
    %9 = vector.broadcast %8 : vector<8x1xf32> to vector<8x64xf32>
    %10 = arith.mulf %0, %9 : vector<8x64xf32>
    %c0_4 = arith.constant 0 : index
    %c0_5 = arith.constant 0 : index
    %11 = vector.load %arg3[%c0_4, %c0_5] : memref<8x64xf32, #tpu.memory_space<vmem>>, vector<8x64xf32>
    tpu.vector_store %arg3[%c0_4, %c0_5], %10 {strides = array<i32>} : memref<8x64xf32, #tpu.memory_space<vmem>>, vector<8x64xf32>,
    return
  }
  func.func @transform_0(%arg0: i32) -> (i32, i32) {
    %c0_i32 = arith.constant 0 : i32
    %c0_i32_0 = arith.constant 0 : i32
    return %arg0, %c0_i32 : i32, i32
  }
  func.func @transform_1(%arg0: i32) -> (i32, i32) {
    %c0_i32 = arith.constant 0 : i32
    %c0_i32_0 = arith.constant 0 : i32
    return %arg0, %c0_i32 : i32, i32
  }
  func.func @transform_2(%arg0: i32) -> (i32, i32) {
    %c0_i32 = arith.constant 0 : i32
    %c0_i32_0 = arith.constant 0 : i32
    return %arg0, %c0_i32 : i32, i32
  }
}

module attributes {stable_mosaic.version = 11 : i64} {
  func.func @_l2norm_kernel(%arg0: i32, %arg1: memref<96x64xf32, #tpu.memory_space<vmem>>, %arg2: memref<96x1xf32, #tpu.memory_space<vmem>>, %arg3: memref<96x64xbf16, #tpu.memory_space<vmem>>) attributes {dimension_semantics = [#tpu.dimension_semantics<parallel>], iteration_bounds = array<i64: 1>, scalar_prefetch = 0 : i64, scratch_operands = 0 : i64, tpu.core_type = #tpu.core_type<tc>, window_params = [{transform_indices = @transform_0, window_bounds = array<i64: 96, 64>}, {transform_indices = @transform_1, window_bounds = array<i64: 96, 1>}, {transform_indices = @transform_2, window_bounds = array<i64: 96, 64>}]} {
    %c0 = arith.constant 0 : index
    %c0_0 = arith.constant 0 : index
    %0 = vector.load %arg1[%c0, %c0_0] : memref<96x64xf32, #tpu.memory_space<vmem>>, vector<96x64xf32>
    %1 = arith.mulf %0, %0 : vector<96x64xf32>
    %cst = arith.constant dense<0.000000e+00> : vector<96xf32>
    %2 = vector.multi_reduction <add>, %1, %cst [1] : vector<96x64xf32> to vector<96xf32>
    %3 = vector.shape_cast %2 : vector<96xf32> to vector<96x1xf32>
    %4 = math.sqrt %3 : vector<96x1xf32>
    %c0_1 = arith.constant 0 : index
    %c0_2 = arith.constant 0 : index
    %5 = vector.load %arg2[%c0_1, %c0_2] : memref<96x1xf32, #tpu.memory_space<vmem>>, vector<96x1xf32>
    %cst_3 = arith.constant 9.99999996E-13 : f32
    %6 = vector.broadcast %cst_3 : f32 to vector<96x1xf32>
    %7 = arith.maximumf %4, %6 : vector<96x1xf32>
    %8 = arith.divf %5, %7 : vector<96x1xf32>
    %9 = vector.broadcast %8 : vector<96x1xf32> to vector<96x64xf32>
    %10 = arith.mulf %0, %9 : vector<96x64xf32>
    %11 = arith.truncf %10 : vector<96x64xf32> to vector<96x64xbf16>
    %c0_4 = arith.constant 0 : index
    %c0_5 = arith.constant 0 : index
    %12 = vector.load %arg3[%c0_4, %c0_5] : memref<96x64xbf16, #tpu.memory_space<vmem>>, vector<96x64xbf16>
    tpu.vector_store %arg3[%c0_4, %c0_5], %11 {strides = array<i32>} : memref<96x64xbf16, #tpu.memory_space<vmem>>, vector<96x64xbf16>,
    return
  }
  func.func @transform_0(%arg0: i32) -> (i32, i32) {
    %c0_i32 = arith.constant 0 : i32
    %c0_i32_0 = arith.constant 0 : i32
    return %arg0, %c0_i32 : i32, i32
  }
  func.func @transform_1(%arg0: i32) -> (i32, i32) {
    %c0_i32 = arith.constant 0 : i32
    %c0_i32_0 = arith.constant 0 : i32
    return %arg0, %c0_i32 : i32, i32
  }
  func.func @transform_2(%arg0: i32) -> (i32, i32) {
    %c0_i32 = arith.constant 0 : i32
    %c0_i32_0 = arith.constant 0 : i32
    return %arg0, %c0_i32 : i32, i32
  }
}

</mosaic_0001>

<bundles_post_ra>
// kernel: vit_dino_forward.24
= control target key start
LH: loop header
LB: loop body
LE: loop exit
PB: predicated region body
PF: predicated region fallthrough
CT: control target
= control target key end

     0   :  { %s752_s12 = smov 0   ;;  %s754_s13 = smov 0   ;;  %s853_s0 = inlined_call_operand.vmem [shape: f32[16,128], index: 0, kind: input, shape index: {}]   ;;  %s854_s1 = inlined_call_operand.vmem [shape: bf16[128,384], index: 1, kind: input, shape index: {}]   ;;  %s855_s2 = inlined_call_operand.vmem [shape: f32[1,384], index: 2, kind: input, shape index: {}]   ;;  %s856_s3 = inlined_call_operand.vmem [shape: f32[16,384], index: 3, kind: output, shape index: {}]  }
   0x1   :  { %s756_s14 = smov 0   ;;  %s758_s15 = smov 0  }
   0x2   :  { %s760_s16 = smov 0  }
   0x3 LB: > { %s28_s17 = sadd.s32 1, %s726_s15  ;;  %s597_s18 = sadd.s32 4294967295, %s730_s16   ;;  %s730_s16 = sphi %s760_s16, %s13_s16   ;;  %s726_s15 = sphi %s758_s15, %s861_s15   ;;  %s722_s14 = sphi %s756_s14, %s860_s14   ;;  %s718_s13 = sphi %s754_s13, %s859_s13   ;;  %s714_s12 = sphi %s752_s12, %s858_s12  }
   0x4   : > { %p30_p0 = scmp.ge.s32.totalorder %s28_s17, 3  ;;  %p76_p1 = scmp.ne.s32.totalorder %s718_s13, %s714_s12 }
   0x5   : > { %p77_p2 = scmp.eq.s32.totalorder %s730_s16, 0  ;;  %p134_p4 = scmp.eq.s32.totalorder %s597_s18, 2 }
   0x6   : > { %s863_s17 = smov (%p30_p0, %s28_s17), 0  ;;  %s69_s20 = sadd.s32 1, %s718_s13 }
   0x7   : > { %p78_p3 = por %p77_p2, %p76_p1  ;;  %s65_s19 = ssub.s32 %s726_s15, %s863_s17 }
   0x8   : > { %p67_p5 = scmp.eq.s32.totalorder %s65_s19, 0  ;;  %p787_p6 = por %p134_p4, %p76_p1 }
   0x9   : > { %p601_p7 = scmp.ge.s32.totalorder %s730_s16, 3 }
   0xa   : > { %s792_s22 = scalar_select %p67_p5, %s718_s13, %s69_s20  }
   0xb   : > { %168 = sbr.rel (%p601_p7) target bundleno = 36 (0x24), region = 20 }
  0x10   : > { %171 = sbr.rel (!%p78_p3) target bundleno = 36 (0x24), region = 24  ;;  %s173_s23 = sand.u32 (%p78_p3), 1, %s718_s13  }
  0x11   : > { %s603_s24 = sshll.u32 (%p78_p3), %s726_s15, 2  ;;  %s602_s25 = sshll.u32 (%p78_p3), %s173_s23, 6 }
  0x12   : > { %s800_s28 = scalar_lea.vmem (%p78_p3), %s854_s1, %s603_s24  ;;  %s175_s29 = scalar_lea.vmem (%p78_p3), [#allocation3], %s602_s25 }
  0x13   : > { %v197_v0 = vld [vmem:[%s800_s28] sm:$0xf] (%p78_p3)  ;;  %v199_v1 = vld [vmem:[%s800_s28 + $0xc] sm:$0xf] (%p78_p3)  ;;  %v201_v2 = vld [vmem:[%s800_s28 + $0x18] sm:$0xf] (%p78_p3) }
  0x14   : > { %198 = vst [vmem:[%s175_s29] sm:$0xf] (%p78_p3), %v197_v0  ;;  %v203_v3 = vld [vmem:[%s800_s28 + $0x24] sm:$0xf] (%p78_p3)  ;;  %v205_v4 = vld [vmem:[%s800_s28 + $0x30] sm:$0xf] (%p78_p3) }
  0x15   : > { %200 = vst [vmem:[%s175_s29 + $0x4] sm:$0xf] %v199_v1  ;;  %v207_v5 = vld [vmem:[%s800_s28 + $0x3c] sm:$0xf]  ;;  %v209_v6 = vld [vmem:[%s800_s28 + $0x48] sm:$0xf] }
  0x16   : > { %202 = vst [vmem:[%s175_s29 + $0x8] sm:$0xf] %v201_v2  ;;  %v211_v7 = vld [vmem:[%s800_s28 + $0x54] sm:$0xf]  ;;  %v213_v8 = vld [vmem:[%s800_s28 + $0x60] sm:$0xf] }
  0x17   : > { %204 = vst [vmem:[%s175_s29 + $0xc] sm:$0xf] %v203_v3  ;;  %v215_v9 = vld [vmem:[%s800_s28 + $0x6c] sm:$0xf]  ;;  %v217_v10 = vld [vmem:[%s800_s28 + $0x78] sm:$0xf] }
  0x18   : > { %206 = vst [vmem:[%s175_s29 + $0x10] sm:$0xf] %v205_v4  ;;  %v219_v11 = vld [vmem:[%s800_s28 + $0x84] sm:$0xf]  ;;  %v221_v12 = vld [vmem:[%s800_s28 + $0x90] sm:$0xf] }
  0x19   : > { %208 = vst [vmem:[%s175_s29 + $0x14] sm:$0xf] %v207_v5  ;;  %v223_v13 = vld [vmem:[%s800_s28 + $0x9c] sm:$0xf]  ;;  %v225_v14 = vld [vmem:[%s800_s28 + $0xa8] sm:$0xf] }
  0x1a   : > { %210 = vst [vmem:[%s175_s29 + $0x18] sm:$0xf] %v209_v6  ;;  %v227_v15 = vld [vmem:[%s800_s28 + $0xb4] sm:$0xf] }
  0x1b   : > { %212 = vst [vmem:[%s175_s29 + $0x1c] sm:$0xf] %v211_v7 }
  0x1c   : > { %214 = vst [vmem:[%s175_s29 + $0x20] sm:$0xf] %v213_v8 }
  0x1d   : > { %216 = vst [vmem:[%s175_s29 + $0x24] sm:$0xf] %v215_v9 }
  0x1e   : > { %218 = vst [vmem:[%s175_s29 + $0x28] sm:$0xf] %v217_v10 }
  0x1f   : > { %220 = vst [vmem:[%s175_s29 + $0x2c] sm:$0xf] %v219_v11 }
  0x20   : > { %222 = vst [vmem:[%s175_s29 + $0x30] sm:$0xf] %v221_v12 }
  0x21   : > { %224 = vst [vmem:[%s175_s29 + $0x34] sm:$0xf] %v223_v13 }
  0x22   : > { %226 = vst [vmem:[%s175_s29 + $0x38] sm:$0xf] %v225_v14 }
  0x23   : > { %228 = vst [vmem:[%s175_s29 + $0x3c] sm:$0xf] %v227_v15 }
  0x24 PF: > { %p604_p8 = scmp.ge.s32.totalorder %s730_s16, 1  ;;  %p289_p9 = scmp.lt.s32.totalorder %s730_s16, 4 }
  0x26   : > { %p290_p10 = pnand %p604_p8, %p289_p9 }
  0x27   : > { %s296_s30 = sand.u32 (!%p290_p10), 1, %s714_s12   ;;  %p339_p11 = scmp.lt.s32.totalorder (!%p290_p10), %s722_s14, 2 }
  0x28   : > { %293 = sbr.rel (%p290_p10) target bundleno = 222 (0xde), region = 69  ;;  %s605_s4 = sshll.u32 (!%p290_p10), %s296_s30, 6 }
  0x29   : > { %s298_s5 = scalar_lea.vmem (!%p290_p10), [#allocation3], %s605_s4  ;;  %s606_s19 = sshll.u32 (!%p290_p10), %s296_s30, 4 }
  0x2a   : > { %s328_s20 = scalar_lea.vmem (!%p290_p10), [#allocation4], %s606_s19 }
  0x2d   : > { %v650_v16 = vld [vmem:[%s298_s5 + $0x38] sm:$0xff]  ;;  %s340_s6 = scalar_select %p339_p11, %s722_s14, 2  ;;  %v649_v17 = vld [vmem:[%s298_s5 + $0x30] sm:$0xff]  ;;  %v648_v18 = vld [vmem:[%s298_s5 + $0x28] sm:$0xff] }
  0x2e   : > { %418 = vmatpush.bf16.msra.mxu0 %v650_v16  ;;  %v647_v19 = vld [vmem:[%s298_s5 + $0x20] sm:$0xff]  ;;  %v646_v20 = vld [vmem:[%s298_s5 + $0x18] sm:$0xff]  ;;  %v645_v21 = vld [vmem:[%s298_s5 + $0x10] sm:$0xff]  ;;  %s640_s23 = sshll.u32 (%p787_p6), %s722_s14, 3 }
  0x2f   : > { %s341_s9 = scalar_lea.vmem %s855_s2, %s340_s6  ;;  %v644_v22 = vld [vmem:[%s298_s5 + $0x8] sm:$0xff]  ;;  %v643_v23 = vld [vmem:[%s298_s5] sm:$0xff]  ;;  %s460_s26 = scalar_lea.vmem (%p787_p6), %s856_s3, %s640_s23 }
  0x30   : > { %v351_v24 = vld [vmem:[%s853_s0] sm:$0xff]  ;;  %v352_v25 = vld [vmem:[%s853_s0 + $0x8] sm:$0xff] }
  0x31   : > { %v353_v26 = vpack.c.bf16 %v352_v25, %v351_v24  ;;  %v691_v27 = vld [vmem:[%s341_s9] ss:$0 sm:$0xff] }
  0x32   : > { %419 = vmatpush.bf16.msra.mxu0 %v649_v17 }
  0x36   : > { %420 = vmatpush.bf16.msra.mxu0 %v648_v18 }
  0x3a   : > { %421 = vmatpush.bf16.msra.mxu0 %v647_v19 }
  0x3e   : > { %422 = vmatpush.bf16.msra.mxu0 %v646_v20 }
  0x42   : > { %423 = vmatpush.bf16.msra.mxu0 %v645_v21 }
  0x46   : > { %424 = vmatpush.bf16.msra.mxu0 %v644_v22 }
  0x4a   : > { %425 = vmatpush.bf16.msra.mxu0 %v643_v23 }
  0x4d   : > { %426 = vmatmul.bf16.vlgmr.msra.gmra.mxu0 %v353_v26 }
  0xca   : > { %v427_v28 = vpop.f32.mrf.mxu0 }
  0xcb   : > { %v445_v29 = vadd.f32 %v691_v27, %v427_v28 }
  0xcd   : > { %447 = vst [vmem:[%s328_s20] sm:$0xff] %v445_v29 }
  0xd1   : > { %455 = sbr.rel (!%p787_p6) target bundleno = 222 (0xde), region = 85 }
  0xd2   : > { %v429_v30 = vpop.f32.mrf.mxu0 }
  0xd3   : > { %v446_v31 = vadd.f32 %v691_v27, %v429_v30 }
  0xd4   : > { %v491_v32 = vld [vmem:[%s328_s20] sm:$0xff] (%p787_p6) }
  0xd5   : > { %448 = vst [vmem:[%s328_s20 + $0x8] sm:$0xff] %v446_v31 }
  0xd6   : > { %492 = vst [vmem:[%s460_s26] sm:$0xff] %v491_v32 }
  0xdc   : > { %v493_v33 = vld [vmem:[%s328_s20 + $0x8] sm:$0xff] }
  0xdd   : > { %494 = vst [vmem:[%s460_s26 + $0x18] sm:$0xff] %v493_v33 }
  0xde PF: > { %s13_s16 = sadd.s32 1, %s730_s16   ;;  %s858_s12 = smov %s718_s13 }
  0xdf   : > { %p10_p12 = scmp.ge.s32.totalorder %s13_s16, 5   ;;  %s859_s13 = smov %s792_s22 }
  0xe0   : > { %s860_s14 = smov %s726_s15  ;;  %s861_s15 = smov %s863_s17 }
  0xe1   :  { %12 = sbr.rel (!%p10_p12) target bundleno = 3 (0x3), region = 160 }

// kernel: vit_dino_forward.23
= control target key start
LH: loop header
LB: loop body
LE: loop exit
PB: predicated region body
PF: predicated region fallthrough
CT: control target
= control target key end

     0   :  { %v90_v2 = vmov 128.0   ;;  %s129_s0 = inlined_call_operand.vmem [shape: f32[16,128], index: 0, kind: input, shape index: {}]   ;;  %s130_s1 = inlined_call_operand.vmem [shape: f32[1,128], index: 1, kind: input, shape index: {}]   ;;  %s131_s2 = inlined_call_operand.vmem [shape: f32[1,128], index: 2, kind: input, shape index: {}]   ;;  %s132_s3 = inlined_call_operand.vmem [shape: f32[16,128], index: 3, kind: output, shape index: {}]  }
   0x1   :  { %v14_v0 = vld [vmem:[%s129_s0] sm:$0xff]  ;;  %v15_v1 = vld [vmem:[%s129_s0 + $0x8] sm:$0xff]  ;;  %84 = vrcp.f32 %v90_v2 }
   0x2   :  { %16 = vadd.xlane.f32.xlu0 %v14_v0  ;;  %v82_v31 = vld [vmem:[%s130_s1] ss:$0 sm:$0xff] }
   0x3   :  { %v83_v34 = vld [vmem:[%s131_s2] ss:$0 sm:$0xff] }
   0x7   :  { %v85_v3 = vpop.eup %84 }
   0x8   :  { %v21_v4 = vmul.f32 128.0, %v85_v3  ;;  %vm25_vm0 = vweird.f32 %v85_v3 }
   0xa   :  { %18 = vadd.xlane.f32.xlu0 %v15_v1  ;;  %v22_v5 = vsub.f32 1.0, %v21_v4 }
   0xc   :  { %v23_v6 = vmul.f32 %v85_v3, %v22_v5 }
   0xe   :  { %v24_v7 = vadd.f32 %v85_v3, %v23_v6 }
  0x10   :  { %v26_v8 = vsel %vm25_vm0, %v85_v3, %v24_v7 }
  0x75   :  { %v17_v9 = vpop.xlane.xlu0 %16 }
  0x76   :  { %v27_v10 = vmul.f32 %v26_v8, %v17_v9 }
  0x78   :  { %v29_v11 = vsub.f32 %v14_v0, %v27_v10 }
  0x7a   :  { %v31_v12 = vmul.f32 %v29_v11, %v29_v11 }
  0x7c   :  { %33 = vadd.xlane.f32.xlu1 %v31_v12 }
  0x7d   :  { %v19_v13 = vpop.xlane.xlu0 %18 }
  0x7e   :  { %v28_v14 = vmul.f32 %v26_v8, %v19_v13 }
  0x80   :  { %v30_v15 = vsub.f32 %v15_v1, %v28_v14 }
  0x82   :  { %v32_v16 = vmul.f32 %v30_v15, %v30_v15 }
  0x84   :  { %35 = vadd.xlane.f32.xlu1 %v32_v16 }
  0xef   :  { %v34_v17 = vpop.xlane.xlu1 %33 }
  0xf0   :  { %v37_v18 = vmul.f32 %v34_v17, %v26_v8 }
  0xf2   :  { %v39_v19 = vadd.f32 1e-05, %v37_v18 }
  0xf4   :  { %86 = vrsqrt.f32 %v39_v19  ;;  %vm47_vm2 = vweird.f32 %v39_v19 }
  0xf7   :  { %v36_v20 = vpop.xlane.xlu1 %35 }
  0xf8   :  { %v38_v21 = vmul.f32 %v36_v20, %v26_v8 }
  0xfa   :  { %v87_v22 = vpop.eup %86  ;;  %v40_v23 = vadd.f32 1e-05, %v38_v21 }
  0xfb   :  { %v42_v24 = vmul.f32 %v87_v22, %v39_v19  ;;  %vm48_vm1 = vweird.f32 %v87_v22 }
  0xfc   :  { %88 = vrsqrt.f32 %v40_v23  ;;  %vm49_vm3 = vmor %vm47_vm2, %vm48_vm1  ;;  %vm57_vm5 = vweird.f32 %v40_v23 }
  0xfd   :  { %v43_v25 = vmul.f32 %v87_v22, %v42_v24 }
  0xff   :  { %v44_v26 = vmul.f32 0.5, %v43_v25 }
 0x101   :  { %v45_v27 = vsub.f32 1.5, %v44_v26 }
 0x102   :  { %v89_v28 = vpop.eup %88 }
 0x103   :  { %v46_v29 = vmul.f32 %v87_v22, %v45_v27  ;;  %v52_v30 = vmul.f32 %v89_v28, %v40_v23  ;;  %vm58_vm4 = vweird.f32 %v89_v28 }
 0x104   :  { %vm59_vm6 = vmor %vm57_vm5, %vm58_vm4 }
 0x105   :  { %v50_v32 = vsel %vm49_vm3, %v87_v22, %v46_v29  ;;  %v53_v33 = vmul.f32 %v89_v28, %v52_v30 }
 0x106   :  { %v61_v35 = vmul.f32 %v50_v32, %v29_v11 }
 0x107   :  { %v54_v36 = vmul.f32 0.5, %v53_v33 }
 0x108   :  { %v67_v37 = vmul.f32 %v82_v31, %v61_v35 }
 0x109   :  { %v55_v38 = vsub.f32 1.5, %v54_v36 }
 0x10a   :  { %v73_v39 = vadd.f32 %v83_v34, %v67_v37 }
 0x10b   :  { %v56_v40 = vmul.f32 %v89_v28, %v55_v38 }
 0x10c   :  { %75 = vst [vmem:[%s132_s3] sm:$0xff] %v73_v39 }
 0x10d   :  { %v60_v41 = vsel %vm59_vm6, %v89_v28, %v56_v40 }
 0x10e   :  { %v62_v42 = vmul.f32 %v60_v41, %v30_v15 }
 0x110   :  { %v68_v43 = vmul.f32 %v82_v31, %v62_v42 }
 0x112   :  { %v74_v44 = vadd.f32 %v83_v34, %v68_v43 }
 0x114   :  { %76 = vst [vmem:[%s132_s3 + $0x8] sm:$0xff] %v74_v44 }

// kernel: vit_dino_forward.22
= control target key start
LH: loop header
LB: loop body
LE: loop exit
PB: predicated region body
PF: predicated region fallthrough
CT: control target
= control target key end

     0   :  { %s355_s1 = inlined_call_operand.vmem [shape: bf16[256,128], index: 1, kind: input, shape index: {}]   ;;  %s356_s0 = inlined_call_operand.vmem [shape: f32[8,256], index: 0, kind: input, shape index: {}]   ;;  %s357_s2 = inlined_call_operand.vmem [shape: f32[1,128], index: 2, kind: input, shape index: {}]   ;;  %s358_s3 = inlined_call_operand.vmem [shape: f32[8,128], index: 3, kind: output, shape index: {}]  }
   0x1   :  { %v265_v0 = vld [vmem:[%s355_s1 + $0x38] sm:$0xff]  ;;  %v264_v2 = vld [vmem:[%s355_s1 + $0x30] sm:$0xff]  ;;  %v263_v4 = vld [vmem:[%s355_s1 + $0x28] sm:$0xff] }
   0x2   :  { %v273_v1 = vld [vmem:[%s355_s1 + $0x78] sm:$0xff]  ;;  %152 = vmatpush.bf16.msra.mxu0 %v265_v0  ;;  %v272_v3 = vld [vmem:[%s355_s1 + $0x70] sm:$0xff]  ;;  %v271_v5 = vld [vmem:[%s355_s1 + $0x68] sm:$0xff] }
   0x3   :  { %165 = vmatpush.bf16.msra.mxu1 %v273_v1  ;;  %v262_v6 = vld [vmem:[%s355_s1 + $0x20] sm:$0xff]  ;;  %v261_v8 = vld [vmem:[%s355_s1 + $0x18] sm:$0xff]  ;;  %v260_v10 = vld [vmem:[%s355_s1 + $0x10] sm:$0xff] }
   0x4   :  { %v270_v7 = vld [vmem:[%s355_s1 + $0x60] sm:$0xff]  ;;  %v269_v9 = vld [vmem:[%s355_s1 + $0x58] sm:$0xff]  ;;  %v268_v11 = vld [vmem:[%s355_s1 + $0x50] sm:$0xff] }
   0x5   :  { %v259_v12 = vld [vmem:[%s355_s1 + $0x8] sm:$0xff]  ;;  %v258_v14 = vld [vmem:[%s355_s1] sm:$0xff] }
   0x6   :  { %153 = vmatpush.bf16.msra.mxu0 %v264_v2  ;;  %v267_v13 = vld [vmem:[%s355_s1 + $0x48] sm:$0xff]  ;;  %v266_v15 = vld [vmem:[%s355_s1 + $0x40] sm:$0xff] }
   0x7   :  { %166 = vmatpush.bf16.msra.mxu1 %v272_v3  ;;  %v20_v16 = vld [vmem:[%s356_s0] sm:$0xff]  ;;  %v21_v17 = vld [vmem:[%s356_s0 + $0x8] sm:$0xff] }
   0x8   :  { %v22_v18 = vpack.c.bf16 %v20_v16, %v20_v16  ;;  %v23_v19 = vpack.c.bf16 %v21_v17, %v21_v17  ;;  %v274_v20 = vld [vmem:[%s357_s2] ss:$0 sm:$0xff] }
   0xa   :  { %154 = vmatpush.bf16.msra.mxu0 %v263_v4 }
   0xb   :  { %167 = vmatpush.bf16.msra.mxu1 %v271_v5 }
   0xe   :  { %155 = vmatpush.bf16.msra.mxu0 %v262_v6 }
   0xf   :  { %168 = vmatpush.bf16.msra.mxu1 %v270_v7 }
  0x12   :  { %156 = vmatpush.bf16.msra.mxu0 %v261_v8 }
  0x13   :  { %169 = vmatpush.bf16.msra.mxu1 %v269_v9 }
  0x16   :  { %157 = vmatpush.bf16.msra.mxu0 %v260_v10 }
  0x17   :  { %170 = vmatpush.bf16.msra.mxu1 %v268_v11 }
  0x1a   :  { %158 = vmatpush.bf16.msra.mxu0 %v259_v12 }
  0x1b   :  { %171 = vmatpush.bf16.msra.mxu1 %v267_v13 }
  0x1e   :  { %159 = vmatpush.bf16.msra.mxu0 %v258_v14 }
  0x1f   :  { %172 = vmatpush.bf16.msra.mxu1 %v266_v15 }
  0x21   :  { %160 = vmatmul.bf16.vlgmr.msra.gmra.mxu0 %v22_v18 }
  0x22   :  { %173 = vmatmul.bf16.vlgmr.msra.gmra.mxu1 %v23_v19 }
  0x9e   :  { %v161_v21 = vpop.f32.mrf.mxu0 }
  0x9f   :  { %v174_v22 = vpop.f32.mrf.mxu1 }
  0xa0   :  { %v175_v23 = vadd.f32 %v174_v22, %v161_v21 }
  0xa2   :  { %v188_v24 = vadd.f32 %v274_v20, %v175_v23 }
  0xa4   :  { %189 = vst [vmem:[%s358_s3] sm:$0xff] %v188_v24 }
  0xa6   :  { %v163_v25 = vpop.f32.mrf.mxu0 }
  0xa7   :  { %v176_v26 = vpop.f32.mrf.mxu1 }

// kernel: vit_dino_forward.25
= control target key start
LH: loop header
LB: loop body
LE: loop exit
PB: predicated region body
PF: predicated region fallthrough
CT: control target
= control target key end

     0   :  { %s636_s12 = smov 0   ;;  %s719_s0 = inlined_call_operand.vmem [shape: f32[2,4,5,32], index: 0, kind: input, shape index: {}]   ;;  %s720_s1 = inlined_call_operand.vmem [shape: f32[2,4,5,32], index: 1, kind: input, shape index: {}]   ;;  %s721_s2 = inlined_call_operand.vmem [shape: f32[2,4,5,32], index: 2, kind: input, shape index: {}]   ;;  %s722_s3 = inlined_call_operand.vmem [shape: f32[2,4,5,32], index: 3, kind: output, shape index: {}]  }
   0x1 LB: > { %s543_s13 = sadd.s32 4294967295, %s613_s12   ;;  %p547_p0 = scmp.ge.s32.totalorder %s613_s12, 1  ;;  %s613_s12 = sphi %s636_s12, %s13_s12  }
   0x2   : > { %p157_p1 = scmp.lt.s32.totalorder %s613_s12, 3 }
   0x4   : > { %p158_p2 = pnand %p547_p0, %p157_p1 }
   0x5   : > { %p191_p3 = scmp.lt.s32.totalorder (!%p158_p2), %s543_s13, 1 }
   0x6   : > { %161 = sbr.rel (%p158_p2) target bundleno = 945 (0x3b1), region = 32 }
   0xb   : > { %s724_s13 = smov (!%p191_p3, %s543_s13), 1  ;;  %vm219_vm0 = vcmask 261120   ;;  %vm239_vm1 = vcmask 36864   ;;  %vm256_vm2 = vcmask 1041408   ;;  %vm257_vm3 = vcmask 1042432  }
   0xc   : > { %s644_s14 = sshll.u32 %s724_s13, 5  ;;  %v615_v31 = vmov 65535   ;;  %vm252_vm4 = vcmask 39936   ;;  %vm276_vm5 = vcmask 258048  }
   0xd   : > { %s650_s17 = scalar_lea.vmem %s720_s1, %s644_s14  ;;  %s656_s20 = scalar_lea.vmem %s719_s0, %s644_s14  ;;  %v258_v32 = vsel %vm256_vm2, 4294967295, %v615_v31 }
   0xe   : > { %v215_v0 = vld [vmem:[%s650_s17] sm:$0x1f]  ;;  %v559_v2 = vld [vmem:[%s650_s17 + $0x8] sm:$0x1f]  ;;  %v571_v15 = vld [vmem:[%s650_s17 + $0x18] sm:$0x1f]  ;;  %s677_s23 = scalar_lea.vmem %s721_s2, %s644_s14  ;;  %s697_s26 = scalar_lea.vmem %s722_s3, %s644_s14 }
   0xf   : > { %v212_v1 = vld [vmem:[%s656_s20] sm:$0x1f]  ;;  %v216_v3 = vpack.c.bf16 %v215_v0, %v215_v0  ;;  %v284_v4 = vpack.c.bf16 %v559_v2, %v559_v2  ;;  %v558_v9 = vld [vmem:[%s656_s20 + $0x8] sm:$0x1f]  ;;  %v408_v16 = vpack.c.bf16 %v571_v15, %v571_v15  ;;  %v570_v18 = vld [vmem:[%s656_s20 + $0x18] sm:$0x1f] }
  0x10   : > { %v213_v6 = vmul.f32 0.17677669, %v212_v1  ;;  %v280_v10 = vmul.f32 0.17677669, %v558_v9  ;;  %v404_v19 = vmul.f32 0.17677669, %v570_v18 }
  0x11   : > { %v224_v5 = vsel %vm219_vm0, %v216_v3, 0  ;;  %v292_v7 = vsel %vm219_vm0, %v284_v4, 0  ;;  %v416_v17 = vsel %vm219_vm0, %v408_v16, 0  ;;  %v217_v29 = vld [vmem:[%s677_s23] sm:$0x1f]  ;;  %v680_v33 = vsel %vm257_vm3, %v258_v32, 0 }
  0x12   : > { %233 = vmatpush.bf16.xpose.msra.mxu0 %v224_v5  ;;  %301 = vmatpush.bf16.xpose.msra.mxu2 %v292_v7  ;;  %v214_v8 = vpack.c.bf16 %v213_v6, %v213_v6  ;;  %v281_v11 = vpack.c.bf16 %v280_v10, %v280_v10  ;;  %v405_v20 = vpack.c.bf16 %v404_v19, %v404_v19  ;;  %v565_v40 = vld [vmem:[%s650_s17 + $0x10] sm:$0x1f]  ;;  %v560_v55 = vld [vmem:[%s677_s23 + $0x8] sm:$0x1f]  ;;  %v572_v7 = vld [vmem:[%s677_s23 + $0x18] sm:$0x1f] }
  0x13   : > { %v218_v30 = vpack.c.bf16 %v217_v29, %v217_v29  ;;  %v346_v41 = vpack.c.bf16 %v565_v40, %v565_v40  ;;  %v564_v50 = vld [vmem:[%s656_s20 + $0x10] sm:$0x1f]  ;;  %v287_v56 = vpack.c.bf16 %v560_v55, %v560_v55 }
  0x14   : > { %v342_v51 = vmul.f32 0.17677669, %v564_v50 }
  0x15   : > { %v261_v34 = vand.u32 %v680_v33, %v218_v30  ;;  %v354_v42 = vsel %vm219_vm0, %v346_v41, 0  ;;  %v323_v58 = vand.u32 %v287_v56, %v680_v33 }
  0x16   : > { %v343_v52 = vpack.c.bf16 %v342_v51, %v342_v51 }
  0x17   : > { %270 = vmatpush.bf16.msra.mxu1 %v261_v34  ;;  %332 = vmatpush.bf16.msra.mxu3 %v323_v58 }
  0x19   : > { %556 = vmatmul.msk.bf16.vlgmr.msra.gmra.mxu0 %vm219_vm0, %v214_v8  ;;  %561 = vmatmul.msk.bf16.vlgmr.msra.gmra.mxu2 %vm219_vm0, %v281_v11  ;;  %v411_v8 = vpack.c.bf16 %v572_v7, %v572_v7  ;;  %v566_v11 = vld [vmem:[%s677_s23 + $0x10] sm:$0x1f] }
  0x1a   : > { %425 = vmatpush.bf16.xpose.msrb.mxu0 %v416_v17 }
  0x1b   : > { %363 = vmatpush.bf16.xpose.msrb.mxu1 %v354_v42  ;;  %v447_v10 = vand.u32 %v411_v8, %v680_v33 }
  0x1d   : > { %456 = vmatpush.bf16.msrb.mxu2 %v447_v10 }
  0x29   : > { %573 = vmatmul.msk.bf16.vlgmr.msrb.gmra.mxu0 %vm219_vm0, %v405_v20 }
  0x96   : > { %v235_v12 = vpop.f32.mrf.mxu0 }
  0x97   : > { %v240_v13 = vsel %vm239_vm1, %v235_v12, -inf }
  0x98   : > { %241 = vmax.xlane.f32.xlu0 %v240_v13 }
  0x9c   : > { %v303_v21 = vpop.f32.mrf.mxu2 }
  0x9d   : > { %v307_v22 = vsel %vm239_vm1, %v303_v21, -inf }
  0x9e   : > { %v237_v14 = vpop.f32.mrf.mxu0  ;;  %308 = vmax.xlane.f32.xlu1 %v307_v22 }
  0xa4   : > { %v305_v23 = vpop.f32.mrf.mxu2 }
  0xa6   : > { %v427_v38 = vpop.f32.mrf.mxu0 }
  0xa7   : > { %v431_v39 = vsel %vm239_vm1, %v427_v38, -inf }
  0xa8   : > { %432 = vmax.xlane.f32.xlu2 %v431_v39 }
  0xae   : > { %v429_v44 = vpop.f32.mrf.mxu0 }
 0x10b   : > { %v242_v24 = vpop.xlane.xlu0 %241 }
 0x10c   : > { %v243_v25 = vsub.f32 %v235_v12, %v242_v24  ;;  %v349_v12 = vpack.c.bf16 %v566_v11, %v566_v11 }
 0x10e   : > { %v244_v26 = vmul.f32 1.442695, %v243_v25  ;;  %v385_v13 = vand.u32 %v349_v12, %v680_v33 }
 0x110   : > { %591 = vpow2.f32 %v244_v26  ;;  %394 = vmatpush.bf16.msrb.mxu3 %v385_v13 }
 0x111   : > { %v309_v35 = vpop.xlane.xlu1 %308 }
 0x112   : > { %v310_v36 = vsub.f32 %v303_v21, %v309_v35 }
 0x114   : > { %v311_v37 = vmul.f32 1.442695, %v310_v36 }
 0x116   : > { %v592_v27 = vpop.eup %591  ;;  %593 = vpow2.f32 %v311_v37 }
 0x117   : > { %v246_v28 = vsel %vm239_vm1, %v592_v27, 0.0 }
 0x118   : > { %247 = vadd.xlane.f32.xlu0 %v246_v28 }
 0x11b   : > { %v433_v53 = vpop.xlane.xlu2 %432 }
 0x11c   : > { %v594_v43 = vpop.eup %593  ;;  %v434_v62 = vsub.f32 %v427_v38, %v433_v53 }
 0x11d   : > { %v313_v45 = vsel %vm239_vm1, %v594_v43, 0.0 }
 0x11e   : > { %314 = vadd.xlane.f32.xlu2 %v313_v45  ;;  %v435_v0 = vmul.f32 1.442695, %v434_v62 }
 0x18b   : > { %v248_v46 = vpop.xlane.xlu0 %247 }
 0x18c   : > { %595 = vrcp.f32 %v248_v46 }
 0x191   : > { %v315_v54 = vpop.xlane.xlu2 %314 }
 0x192   : > { %v596_v47 = vpop.eup %595  ;;  %597 = vrcp.f32 %v315_v54 }
 0x193   : > { %v250_v48 = vmul.f32 %v596_v47, %v592_v27  ;;  %599 = vpow2.f32 %v435_v0 }
 0x195   : > { %v251_v49 = vpack.c.bf16 %v250_v48, %v250_v48 }
 0x197   : > { %557 = vmatmul.msk.bf16.vlgmr.msra.gmra.mxu1 %vm252_vm4, %v251_v49 }
 0x198   : > { %v598_v57 = vpop.eup %597 }
 0x199   : > { %v317_v59 = vmul.f32 %v598_v57, %v594_v43  ;;  %v600_v3 = vpop.eup %599 }
 0x19a   : > { %v437_v4 = vsel %vm239_vm1, %v600_v3, 0.0 }
 0x19b   : > { %v318_v60 = vpack.c.bf16 %v317_v59, %v317_v59 }
 0x19d   : > { %562 = vmatmul.msk.bf16.vlgmr.msra.gmra.mxu3 %vm252_vm4, %v318_v60 }
 0x1a7   : > { %567 = vmatmul.msk.bf16.vlgmr.msrb.gmra.mxu1 %vm219_vm0, %v343_v52 }
 0x214   : > { %v272_v61 = vpop.f32.mrf.mxu1 }
 0x215   : > { %277 = vst.msk [vmem:[%s697_s26] sm:$0x1f] %vm276_vm5, %v272_v61 }
 0x21c   : > { %v274_v63 = vpop.f32.mrf.mxu1 }
 0x220   : > { %v334_v6 = vpop.f32.mrf.mxu3 }
 0x221   : > { %563 = vst.msk [vmem:[%s697_s26 + $0x8] sm:$0x1f] %vm276_vm5, %v334_v6 }
 0x224   : > { %v365_v1 = vpop.f32.mrf.mxu1 }
 0x225   : > { %v369_v2 = vsel %vm239_vm1, %v365_v1, -inf }
 0x226   : > { %370 = vmax.xlane.f32.xlu1 %v369_v2 }
 0x228   : > { %v336_v9 = vpop.f32.mrf.mxu3 }
 0x22c   : > { %v367_v5 = vpop.f32.mrf.mxu1 }
 0x22e   : > { %438 = vadd.xlane.f32.xlu1 %v437_v4 }
 0x299   : > { %v371_v14 = vpop.xlane.xlu1 %370 }
 0x29a   : > { %v372_v15 = vsub.f32 %v365_v1, %v371_v14 }
 0x29c   : > { %v373_v16 = vmul.f32 1.442695, %v372_v15 }
 0x29e   : > { %601 = vpow2.f32 %v373_v16 }
 0x2a1   : > { %v439_v17 = vpop.xlane.xlu1 %438 }
 0x2a2   : > { %603 = vrcp.f32 %v439_v17 }
 0x2a4   : > { %v602_v18 = vpop.eup %601 }
 0x2a5   : > { %v375_v19 = vsel %vm239_vm1, %v602_v18, 0.0 }
 0x2a6   : > { %376 = vadd.xlane.f32.xlu0 %v375_v19 }
 0x2a8   : > { %v604_v20 = vpop.eup %603 }
 0x2a9   : > { %v441_v21 = vmul.f32 %v604_v20, %v600_v3 }
 0x2ab   : > { %v442_v22 = vpack.c.bf16 %v441_v21, %v441_v21 }
 0x2ad   : > { %574 = vmatmul.msk.bf16.vlgmr.msrb.gmra.mxu2 %vm252_vm4, %v442_v22 }
 0x319   : > { %v377_v23 = vpop.xlane.xlu0 %376 }
 0x31a   : > { %605 = vrcp.f32 %v377_v23 }
 0x320   : > { %v606_v24 = vpop.eup %605 }
 0x321   : > { %v379_v25 = vmul.f32 %v606_v24, %v602_v18 }
 0x323   : > { %v380_v26 = vpack.c.bf16 %v379_v25, %v379_v25 }
 0x325   : > { %568 = vmatmul.msk.bf16.vlgmr.msrb.gmra.mxu3 %vm252_vm4, %v380_v26 }
 0x330   : > { %v458_v27 = vpop.f32.mrf.mxu2 }
 0x331   : > { %575 = vst.msk [vmem:[%s697_s26 + $0x18] sm:$0x1f] %vm276_vm5, %v458_v27 }
 0x338   : > { %v460_v28 = vpop.f32.mrf.mxu2 }
 0x3a8   : > { %v396_v29 = vpop.f32.mrf.mxu3 }
 0x3a9   : > { %569 = vst.msk [vmem:[%s697_s26 + $0x10] sm:$0x1f] %vm276_vm5, %v396_v29 }
 0x3b0   : > { %v398_v30 = vpop.f32.mrf.mxu3 }
 0x3b1 PF: > { %s13_s12 = sadd.s32 1, %s613_s12  }
 0x3b2   : > { %p10_p4 = scmp.ge.s32.totalorder %s13_s12, 4  }
 0x3b4   :  { %12 = sbr.rel (!%p10_p4) target bundleno = 1 (0x1), region = 80 }

// kernel: vit_dino_forward.26
= control target key start
LH: loop header
LB: loop body
LE: loop exit
PB: predicated region body
PF: predicated region fallthrough
CT: control target
= control target key end

     0   :  { %s242_s1 = inlined_call_operand.vmem [shape: bf16[128,128], index: 1, kind: input, shape index: {}]   ;;  %s243_s2 = inlined_call_operand.vmem [shape: f32[1,128], index: 2, kind: input, shape index: {}]   ;;  %s244_s0 = inlined_call_operand.vmem [shape: f32[16,128], index: 0, kind: input, shape index: {}]   ;;  %s245_s3 = inlined_call_operand.vmem [shape: f32[16,128], index: 3, kind: input, shape index: {}]   ;;  %s246_s4 = inlined_call_operand.vmem [shape: f32[16,128], index: 4, kind: output, shape index: {}]  }
   0x1   :  { %v170_v0 = vld [vmem:[%s242_s1 + $0x38] sm:$0xff]  ;;  %v169_v1 = vld [vmem:[%s242_s1 + $0x30] sm:$0xff]  ;;  %v168_v2 = vld [vmem:[%s242_s1 + $0x28] sm:$0xff] }
   0x2   :  { %92 = vmatpush.bf16.msra.mxu0 %v170_v0  ;;  %v167_v3 = vld [vmem:[%s242_s1 + $0x20] sm:$0xff]  ;;  %v166_v4 = vld [vmem:[%s242_s1 + $0x18] sm:$0xff]  ;;  %v165_v5 = vld [vmem:[%s242_s1 + $0x10] sm:$0xff] }
   0x3   :  { %v164_v6 = vld [vmem:[%s242_s1 + $0x8] sm:$0xff]  ;;  %v163_v7 = vld [vmem:[%s242_s1] sm:$0xff] }
   0x4   :  { %v25_v8 = vld [vmem:[%s244_s0] sm:$0xff]  ;;  %v26_v9 = vld [vmem:[%s244_s0 + $0x8] sm:$0xff] }
   0x5   :  { %v27_v10 = vpack.c.bf16 %v26_v9, %v25_v8  ;;  %v171_v11 = vld [vmem:[%s243_s2] ss:$0 sm:$0xff]  ;;  %v122_v17 = vld [vmem:[%s245_s3 + $0x8] sm:$0xff] }
   0x6   :  { %93 = vmatpush.bf16.msra.mxu0 %v169_v1  ;;  %v121_v13 = vld [vmem:[%s245_s3] sm:$0xff] }
   0xa   :  { %94 = vmatpush.bf16.msra.mxu0 %v168_v2 }
   0xe   :  { %95 = vmatpush.bf16.msra.mxu0 %v167_v3 }
  0x12   :  { %96 = vmatpush.bf16.msra.mxu0 %v166_v4 }
  0x16   :  { %97 = vmatpush.bf16.msra.mxu0 %v165_v5 }
  0x1a   :  { %98 = vmatpush.bf16.msra.mxu0 %v164_v6 }
  0x1e   :  { %99 = vmatpush.bf16.msra.mxu0 %v163_v7 }
  0x21   :  { %100 = vmatmul.bf16.vlgmr.msra.gmra.mxu0 %v27_v10 }
  0x9e   :  { %v101_v12 = vpop.f32.mrf.mxu0 }
  0x9f   :  { %v119_v14 = vadd.f32 %v171_v11, %v101_v12 }
  0xa1   :  { %v123_v15 = vadd.f32 %v121_v13, %v119_v14 }
  0xa3   :  { %125 = vst [vmem:[%s246_s4] sm:$0xff] %v123_v15 }
  0xa6   :  { %v103_v16 = vpop.f32.mrf.mxu0 }
  0xa7   :  { %v120_v18 = vadd.f32 %v171_v11, %v103_v16 }
  0xa9   :  { %v124_v19 = vadd.f32 %v122_v17, %v120_v18 }
  0xab   :  { %126 = vst [vmem:[%s246_s4 + $0x8] sm:$0xff] %v124_v19 }

// kernel: vit_dino_forward.29
= control target key start
LH: loop header
LB: loop body
LE: loop exit
PB: predicated region body
PF: predicated region fallthrough
CT: control target
= control target key end

     0   :  { %s393_s1 = inlined_call_operand.vmem [shape: bf16[256,128], index: 1, kind: input, shape index: {}]   ;;  %s394_s0 = inlined_call_operand.vmem [shape: f32[16,256], index: 0, kind: input, shape index: {}]   ;;  %s395_s2 = inlined_call_operand.vmem [shape: f32[1,128], index: 2, kind: input, shape index: {}]   ;;  %s396_s3 = inlined_call_operand.vmem [shape: f32[16,128], index: 3, kind: input, shape index: {}]   ;;  %s397_s4 = inlined_call_operand.vmem [shape: f32[16,128], index: 4, kind: output, shape index: {}]  }
   0x1   :  { %v283_v0 = vld [vmem:[%s393_s1 + $0x38] sm:$0xff]  ;;  %v282_v2 = vld [vmem:[%s393_s1 + $0x30] sm:$0xff]  ;;  %v281_v4 = vld [vmem:[%s393_s1 + $0x28] sm:$0xff] }
   0x2   :  { %v291_v1 = vld [vmem:[%s393_s1 + $0x78] sm:$0xff]  ;;  %159 = vmatpush.bf16.msra.mxu0 %v283_v0  ;;  %v290_v3 = vld [vmem:[%s393_s1 + $0x70] sm:$0xff]  ;;  %v289_v5 = vld [vmem:[%s393_s1 + $0x68] sm:$0xff] }
   0x3   :  { %173 = vmatpush.bf16.msra.mxu1 %v291_v1  ;;  %v280_v6 = vld [vmem:[%s393_s1 + $0x20] sm:$0xff]  ;;  %v279_v8 = vld [vmem:[%s393_s1 + $0x18] sm:$0xff]  ;;  %v278_v10 = vld [vmem:[%s393_s1 + $0x10] sm:$0xff] }
   0x4   :  { %v288_v7 = vld [vmem:[%s393_s1 + $0x60] sm:$0xff]  ;;  %v287_v9 = vld [vmem:[%s393_s1 + $0x58] sm:$0xff]  ;;  %v286_v11 = vld [vmem:[%s393_s1 + $0x50] sm:$0xff] }
   0x5   :  { %v277_v12 = vld [vmem:[%s393_s1 + $0x8] sm:$0xff]  ;;  %v276_v14 = vld [vmem:[%s393_s1] sm:$0xff]  ;;  %v27_v17 = vld [vmem:[%s394_s0 + $0x10] sm:$0xff] }
   0x6   :  { %160 = vmatpush.bf16.msra.mxu0 %v282_v2  ;;  %v285_v13 = vld [vmem:[%s393_s1 + $0x48] sm:$0xff]  ;;  %v284_v15 = vld [vmem:[%s393_s1 + $0x40] sm:$0xff]  ;;  %v28_v19 = vld [vmem:[%s394_s0 + $0x18] sm:$0xff] }
   0x7   :  { %174 = vmatpush.bf16.msra.mxu1 %v290_v3  ;;  %v25_v16 = vld [vmem:[%s394_s0] sm:$0xff]  ;;  %v26_v18 = vld [vmem:[%s394_s0 + $0x8] sm:$0xff] }
   0x8   :  { %v29_v20 = vpack.c.bf16 %v27_v17, %v25_v16  ;;  %v30_v21 = vpack.c.bf16 %v28_v19, %v26_v18  ;;  %v292_v22 = vld [vmem:[%s395_s2] ss:$0 sm:$0xff]  ;;  %v203_v32 = vld [vmem:[%s396_s3 + $0x8] sm:$0xff] }
   0x9   :  { %v202_v26 = vld [vmem:[%s396_s3] sm:$0xff] }
   0xa   :  { %161 = vmatpush.bf16.msra.mxu0 %v281_v4 }
   0xb   :  { %175 = vmatpush.bf16.msra.mxu1 %v289_v5 }
   0xe   :  { %162 = vmatpush.bf16.msra.mxu0 %v280_v6 }
   0xf   :  { %176 = vmatpush.bf16.msra.mxu1 %v288_v7 }
  0x12   :  { %163 = vmatpush.bf16.msra.mxu0 %v279_v8 }
  0x13   :  { %177 = vmatpush.bf16.msra.mxu1 %v287_v9 }
  0x16   :  { %164 = vmatpush.bf16.msra.mxu0 %v278_v10 }
  0x17   :  { %178 = vmatpush.bf16.msra.mxu1 %v286_v11 }
  0x1a   :  { %165 = vmatpush.bf16.msra.mxu0 %v277_v12 }
  0x1b   :  { %179 = vmatpush.bf16.msra.mxu1 %v285_v13 }
  0x1e   :  { %166 = vmatpush.bf16.msra.mxu0 %v276_v14 }
  0x1f   :  { %180 = vmatpush.bf16.msra.mxu1 %v284_v15 }
  0x21   :  { %167 = vmatmul.bf16.vlgmr.msra.gmra.mxu0 %v29_v20 }
  0x22   :  { %181 = vmatmul.bf16.vlgmr.msra.gmra.mxu1 %v30_v21 }
  0x9e   :  { %v168_v23 = vpop.f32.mrf.mxu0 }
  0x9f   :  { %v182_v24 = vpop.f32.mrf.mxu1 }
  0xa0   :  { %v183_v25 = vadd.f32 %v182_v24, %v168_v23 }
  0xa2   :  { %v200_v27 = vadd.f32 %v292_v22, %v183_v25 }
  0xa4   :  { %v204_v28 = vadd.f32 %v202_v26, %v200_v27 }
  0xa6   :  { %206 = vst [vmem:[%s397_s4] sm:$0xff] %v204_v28  ;;  %v170_v29 = vpop.f32.mrf.mxu0 }
  0xa7   :  { %v184_v30 = vpop.f32.mrf.mxu1 }
  0xa8   :  { %v185_v31 = vadd.f32 %v184_v30, %v170_v29 }
  0xaa   :  { %v201_v33 = vadd.f32 %v292_v22, %v185_v31 }
  0xac   :  { %v205_v34 = vadd.f32 %v203_v32, %v201_v33 }
  0xae   :  { %207 = vst [vmem:[%s397_s4 + $0x8] sm:$0xff] %v205_v34 }

// kernel: vit_dino_forward.28
= control target key start
LH: loop header
LB: loop body
LE: loop exit
PB: predicated region body
PF: predicated region fallthrough
CT: control target
= control target key end

     0   :  { %s638_s1 = inlined_call_operand.vmem [shape: bf16[128,256], index: 1, kind: input, shape index: {}]   ;;  %s639_s0 = inlined_call_operand.vmem [shape: f32[16,128], index: 0, kind: input, shape index: {}]   ;;  %s640_s2 = inlined_call_operand.vmem [shape: f32[1,256], index: 2, kind: input, shape index: {}]   ;;  %s641_s3 = inlined_call_operand.vmem [shape: f32[16,256], index: 3, kind: output, shape index: {}]  }
   0x1   :  { %v404_v0 = vld [vmem:[%s638_s1 + $0x70] sm:$0xf]  ;;  %v425_v1 = vld [vmem:[%s638_s1 + $0x74] sm:$0xf0]  ;;  %v424_v2 = vld [vmem:[%s638_s1 + $0x74] sm:$0xf] }
   0x2   :  { %v405_v3 = vor.u32 %v425_v1, %v404_v0  ;;  %v406_v4 = vld [vmem:[%s638_s1 + $0x78] sm:$0xf0]  ;;  %v396_v5 = vld [vmem:[%s638_s1 + $0x60] sm:$0xf]  ;;  %v423_v6 = vld [vmem:[%s638_s1 + $0x64] sm:$0xf0] }
   0x3   :  { %v409_v7 = vor.u32 %v424_v2, %v406_v4  ;;  %v422_v8 = vld [vmem:[%s638_s1 + $0x64] sm:$0xf]  ;;  %v398_v9 = vld [vmem:[%s638_s1 + $0x68] sm:$0xf0]  ;;  %v397_v10 = vor.u32 %v423_v6, %v396_v5  ;;  %v388_v12 = vld [vmem:[%s638_s1 + $0x50] sm:$0xf] }
   0x4   :  { %125 = vmatpush.bf16.msra.mxu0 %v405_v3  ;;  %v401_v11 = vor.u32 %v422_v8, %v398_v9  ;;  %v421_v13 = vld [vmem:[%s638_s1 + $0x54] sm:$0xf0]  ;;  %v420_v14 = vld [vmem:[%s638_s1 + $0x54] sm:$0xf]  ;;  %v390_v15 = vld [vmem:[%s638_s1 + $0x58] sm:$0xf0] }
   0x5   :  { %139 = vmatpush.bf16.msra.mxu1 %v409_v7  ;;  %v389_v16 = vor.u32 %v421_v13, %v388_v12  ;;  %v393_v17 = vor.u32 %v420_v14, %v390_v15  ;;  %v380_v18 = vld [vmem:[%s638_s1 + $0x40] sm:$0xf]  ;;  %v419_v19 = vld [vmem:[%s638_s1 + $0x44] sm:$0xf0]  ;;  %v418_v20 = vld [vmem:[%s638_s1 + $0x44] sm:$0xf] }
   0x6   :  { %v382_v21 = vld [vmem:[%s638_s1 + $0x48] sm:$0xf0]  ;;  %v381_v22 = vor.u32 %v419_v19, %v380_v18  ;;  %v372_v24 = vld [vmem:[%s638_s1 + $0x30] sm:$0xf]  ;;  %v417_v25 = vld [vmem:[%s638_s1 + $0x34] sm:$0xf0] }
   0x7   :  { %v385_v23 = vor.u32 %v418_v20, %v382_v21  ;;  %v416_v26 = vld [vmem:[%s638_s1 + $0x34] sm:$0xf]  ;;  %v374_v27 = vld [vmem:[%s638_s1 + $0x38] sm:$0xf0]  ;;  %v373_v28 = vor.u32 %v417_v25, %v372_v24  ;;  %v364_v30 = vld [vmem:[%s638_s1 + $0x20] sm:$0xf] }
   0x8   :  { %126 = vmatpush.bf16.msra.mxu0 %v397_v10  ;;  %v377_v29 = vor.u32 %v416_v26, %v374_v27  ;;  %v415_v31 = vld [vmem:[%s638_s1 + $0x24] sm:$0xf0]  ;;  %v414_v32 = vld [vmem:[%s638_s1 + $0x24] sm:$0xf]  ;;  %v366_v33 = vld [vmem:[%s638_s1 + $0x28] sm:$0xf0] }
   0x9   :  { %140 = vmatpush.bf16.msra.mxu1 %v401_v11  ;;  %v365_v34 = vor.u32 %v415_v31, %v364_v30  ;;  %v369_v35 = vor.u32 %v414_v32, %v366_v33  ;;  %v356_v36 = vld [vmem:[%s638_s1 + $0x10] sm:$0xf]  ;;  %v413_v37 = vld [vmem:[%s638_s1 + $0x14] sm:$0xf0]  ;;  %v412_v38 = vld [vmem:[%s638_s1 + $0x14] sm:$0xf] }
   0xa   :  { %v358_v39 = vld [vmem:[%s638_s1 + $0x18] sm:$0xf0]  ;;  %v357_v40 = vor.u32 %v413_v37, %v356_v36  ;;  %v348_v42 = vld [vmem:[%s638_s1] sm:$0xf]  ;;  %v411_v43 = vld [vmem:[%s638_s1 + $0x4] sm:$0xf0] }
   0xb   :  { %v361_v41 = vor.u32 %v412_v38, %v358_v39  ;;  %v410_v44 = vld [vmem:[%s638_s1 + $0x4] sm:$0xf]  ;;  %v350_v45 = vld [vmem:[%s638_s1 + $0x8] sm:$0xf0]  ;;  %v349_v46 = vor.u32 %v411_v43, %v348_v42  ;;  %v168_v51 = vld [vmem:[%s640_s2] sm:$0x3] }
   0xc   :  { %127 = vmatpush.bf16.msra.mxu0 %v389_v16  ;;  %v26_v47 = vld [vmem:[%s639_s0] sm:$0xff]  ;;  %v27_v48 = vld [vmem:[%s639_s0 + $0x8] sm:$0xff]  ;;  %v353_v49 = vor.u32 %v410_v44, %v350_v45  ;;  %v170_v52 = vperm.slane %v168_v51, 0  ;;  %v171_v53 = vperm.slane %v168_v51, 1 }
   0xd   :  { %141 = vmatpush.bf16.msra.mxu1 %v393_v17  ;;  %v28_v50 = vpack.c.bf16 %v27_v48, %v26_v47 }
  0x10   :  { %128 = vmatpush.bf16.msra.mxu0 %v381_v22 }
  0x11   :  { %142 = vmatpush.bf16.msra.mxu1 %v385_v23 }
  0x14   :  { %129 = vmatpush.bf16.msra.mxu0 %v373_v28 }
  0x15   :  { %143 = vmatpush.bf16.msra.mxu1 %v377_v29 }
  0x18   :  { %130 = vmatpush.bf16.msra.mxu0 %v365_v34 }
  0x19   :  { %144 = vmatpush.bf16.msra.mxu1 %v369_v35 }
  0x1c   :  { %131 = vmatpush.bf16.msra.mxu0 %v357_v40 }
  0x1d   :  { %145 = vmatpush.bf16.msra.mxu1 %v361_v41 }
  0x20   :  { %132 = vmatpush.bf16.msra.mxu0 %v349_v46 }
  0x21   :  { %146 = vmatpush.bf16.msra.mxu1 %v353_v49 }
  0x23   :  { %133 = vmatmul.bf16.vlgmr.msra.gmra.mxu0 %v28_v50 }
  0x24   :  { %147 = vmatmul.bf16.vlgmr.msra.gmra.mxu1 %v28_v50 }
  0xa0   :  { %v134_v54 = vpop.f32.mrf.mxu0 }
  0xa1   :  { %v569_v55 = vadd.f32 %v170_v52, %v134_v54  ;;  %v148_v56 = vpop.f32.mrf.mxu1 }
  0xa2   :  { %v571_v57 = vadd.f32 %v171_v53, %v148_v56 }
  0xa3   :  { %v574_v58 = vmul.f32 0.70710677, %v569_v55 }
  0xa4   :  { %v577_v59 = vmul.f32 0.70710677, %v571_v57 }
  0xa5   :  { %v194_v60 = vand.u32 2147483647, %v574_v58 }
  0xa6   :  { %v195_v61 = vand.u32 2147483647, %v577_v59 }
  0xa7   :  { %v198_v62 = vmul.f32 0.3275911, %v194_v60  ;;  %v302_v8 = vsub.f32 0.0, %v194_v60 }
  0xa8   :  { %v199_v63 = vmul.f32 0.3275911, %v195_v61  ;;  %v136_v0 = vpop.f32.mrf.mxu0  ;;  %v303_v19 = vsub.f32 0.0, %v195_v61 }
  0xa9   :  { %v202_v1 = vadd.f32 1.0, %v198_v62  ;;  %v150_v2 = vpop.f32.mrf.mxu1  ;;  %v581_v4 = vadd.f32 %v170_v52, %v136_v0  ;;  %v306_v18 = vmul.f32 %v302_v8, %v194_v60 }
  0xaa   :  { %v203_v3 = vadd.f32 1.0, %v199_v63  ;;  %v583_v5 = vadd.f32 %v171_v53, %v150_v2  ;;  %v307_v34 = vmul.f32 %v303_v19, %v195_v61 }
  0xab   :  { %427 = vrcp.f32 %v202_v1  ;;  %v586_v6 = vmul.f32 0.70710677, %v581_v4  ;;  %v215_v21 = vand.u32 2147483647, %v202_v1  ;;  %v217_v22 = vand.u32 2147483648, %v202_v1 }
  0xac   :  { %429 = vrcp.f32 %v203_v3  ;;  %v589_v7 = vmul.f32 0.70710677, %v583_v5  ;;  %v232_v26 = vand.u32 2147483648, %v203_v3  ;;  %v230_v28 = vand.u32 2147483647, %v203_v3 }
  0xad   :  { %v592_v9 = vand.u32 2147483647, %v586_v6  ;;  %vm211_vm2 = vweird.f32 %v202_v1  ;;  %v218_v30 = vor.u32 1.1754944e-38, %v217_v22  ;;  %vm226_vm4 = vweird.f32 %v203_v3 }
  0xae   :  { %v595_v11 = vand.u32 2147483647, %v589_v7  ;;  %vm216_vm5 = vcmp.eq.f32.partialorder %v215_v21, 8.507059e+37  ;;  %v233_v33 = vor.u32 1.1754944e-38, %v232_v26  ;;  %v310_v36 = vmul.f32 1.442695, %v306_v18 }
  0xaf   :  { %v200_v14 = vmul.f32 0.3275911, %v592_v9  ;;  %vm231_vm7 = vcmp.eq.f32.partialorder %v230_v28, 8.507059e+37  ;;  %v312_v47 = vmul.f32 1.442695, %v307_v34 }
  0xb0   :  { %v201_v16 = vmul.f32 0.3275911, %v595_v11  ;;  %v305_v21 = vsub.f32 0.0, %v595_v11 }
  0xb1   :  { %v428_v10 = vpop.eup %427  ;;  %v599_v20 = vadd.f32 1.0, %v200_v14 }
  0xb2   :  { %v430_v12 = vpop.eup %429  ;;  %v207_v13 = vmul.f32 %v428_v10, %v202_v1  ;;  %v601_v24 = vadd.f32 1.0, %v201_v16  ;;  %vm212_vm0 = vweird.f32 %v428_v10  ;;  %v304_v1 = vsub.f32 0.0, %v592_v9 }
  0xb3   :  { %v222_v15 = vmul.f32 %v430_v12, %v203_v3  ;;  %431 = vrcp.f32 %v599_v20  ;;  %vm227_vm1 = vweird.f32 %v430_v12  ;;  %vm213_vm3 = vmor %vm211_vm2, %vm212_vm0  ;;  %v245_v50 = vand.u32 2147483647, %v599_v20 }
  0xb4   :  { %v208_v17 = vsub.f32 1.0, %v207_v13  ;;  %433 = vrcp.f32 %v601_v24  ;;  %vm228_vm6 = vmor %vm226_vm4, %vm227_vm1  ;;  %v247_v51 = vand.u32 2147483648, %v599_v20  ;;  %v262_v56 = vand.u32 2147483648, %v601_v24 }
  0xb5   :  { %v223_v23 = vsub.f32 1.0, %v222_v15  ;;  %435 = vpow2.f32 %v310_v36  ;;  %v260_v62 = vand.u32 2147483647, %v601_v24  ;;  %vm241_vm10 = vweird.f32 %v599_v20 }
  0xb6   :  { %v209_v25 = vmul.f32 %v428_v10, %v208_v17  ;;  %v248_v3 = vor.u32 1.1754944e-38, %v247_v51  ;;  %vm256_vm12 = vweird.f32 %v601_v24  ;;  %vm246_vm13 = vcmp.eq.f32.partialorder %v245_v50, 8.507059e+37 }
  0xb7   :  { %v224_v27 = vmul.f32 %v430_v12, %v223_v23  ;;  %v263_v14 = vor.u32 1.1754944e-38, %v262_v56  ;;  %vm261_vm15 = vcmp.eq.f32.partialorder %v260_v62, 8.507059e+37  ;;  %437 = vpow2.f32 %v312_v47 }
  0xb8   :  { %v210_v29 = vadd.f32 %v428_v10, %v209_v25  ;;  %vm186_vm0 = vcmp.ge.f32.partialorder %v574_v58, 0.0  ;;  %vm187_vm1 = vcmp.ge.f32.partialorder %v577_v59, 0.0  ;;  %v178_v51 = vmul.f32 0.5, %v569_v55 }
  0xb9   :  { %v225_v31 = vadd.f32 %v430_v12, %v224_v27  ;;  %v432_v38 = vpop.eup %431  ;;  %v308_v27 = vmul.f32 %v304_v1, %v592_v9  ;;  %vm188_vm2 = vcmp.ge.f32.partialorder %v586_v6, 0.0 }
  0xba   :  { %v214_v32 = vsel %vm213_vm3, %v428_v10, %v210_v29  ;;  %v434_v41 = vpop.eup %433  ;;  %v237_v43 = vmul.f32 %v432_v38, %v599_v20  ;;  %vm242_vm8 = vweird.f32 %v432_v38  ;;  %vm189_vm3 = vcmp.ge.f32.partialorder %v589_v7, 0.0 }
  0xbb   :  { %v219_v35 = vsel %vm216_vm5, %v218_v30, %v214_v32  ;;  %v229_v37 = vsel %vm228_vm6, %v430_v12, %v225_v31  ;;  %v252_v45 = vmul.f32 %v434_v41, %v601_v24  ;;  %vm257_vm9 = vweird.f32 %v434_v41  ;;  %vm243_vm11 = vmor %vm241_vm10, %vm242_vm8  ;;  %v436_v10 = vpop.eup %435 }
  0xbc   :  { %v266_v39 = vmul.f32 1.0614054, %v219_v35  ;;  %v234_v40 = vsel %vm231_vm7, %v233_v33, %v229_v37  ;;  %v238_v48 = vsub.f32 1.0, %v237_v43  ;;  %vm258_vm14 = vmor %vm256_vm12, %vm257_vm9  ;;  %v309_v31 = vmul.f32 %v305_v21, %v595_v11 }
  0xbd   :  { %v267_v42 = vmul.f32 1.0614054, %v234_v40  ;;  %v253_v52 = vsub.f32 1.0, %v252_v45  ;;  %v438_v37 = vpop.eup %437 }
  0xbe   :  { %v270_v44 = vadd.f32 -1.4531521, %v266_v39  ;;  %v239_v54 = vmul.f32 %v432_v38, %v238_v48  ;;  %v314_v39 = vmul.f32 1.442695, %v308_v27  ;;  %v316_v9 = vmul.f32 1.442695, %v309_v31 }
  0xbf   :  { %v271_v46 = vadd.f32 -1.4531521, %v267_v42  ;;  %v254_v61 = vmul.f32 %v434_v41, %v253_v52 }
  0xc0   :  { %v274_v49 = vmul.f32 %v270_v44, %v219_v35  ;;  %v240_v0 = vadd.f32 %v432_v38, %v239_v54  ;;  %439 = vpow2.f32 %v314_v39 }
  0xc1   :  { %v275_v53 = vmul.f32 %v271_v46, %v234_v40  ;;  %v255_v8 = vadd.f32 %v434_v41, %v254_v61  ;;  %v443_v46 = vmov -1.0   ;;  %441 = vpow2.f32 %v316_v9 }
  0xc2   :  { %v278_v60 = vadd.f32 1.4214138, %v274_v49  ;;  %v244_v13 = vsel %vm243_vm11, %v432_v38, %v240_v0  ;;  %v190_v47 = vsel %vm186_vm0, 1.0, %v443_v46 }
  0xc3   :  { %v279_v63 = vadd.f32 1.4214138, %v275_v53  ;;  %v249_v16 = vsel %vm246_vm13, %v248_v3, %v244_v13  ;;  %v259_v17 = vsel %vm258_vm14, %v434_v41, %v255_v8  ;;  %v179_v53 = vmul.f32 0.5, %v571_v57 }
  0xc4   :  { %v282_v2 = vmul.f32 %v278_v60, %v219_v35  ;;  %v268_v19 = vmul.f32 1.0614054, %v249_v16  ;;  %v264_v20 = vsel %vm261_vm15, %v263_v14, %v259_v17  ;;  %v192_v8 = vsel %vm188_vm2, 1.0, %v443_v46 }
  0xc5   :  { %v283_v12 = vmul.f32 %v279_v63, %v234_v40  ;;  %v269_v23 = vmul.f32 1.0614054, %v264_v20  ;;  %v193_v13 = vsel %vm189_vm3, 1.0, %v443_v46  ;;  %v181_v17 = vmul.f32 0.5, %v583_v5 }
  0xc6   :  { %v286_v15 = vadd.f32 -0.28449672, %v282_v2  ;;  %v272_v25 = vadd.f32 -1.4531521, %v268_v19  ;;  %v440_v0 = vpop.eup %439 }
  0xc7   :  { %v287_v18 = vadd.f32 -0.28449672, %v283_v12  ;;  %v273_v28 = vadd.f32 -1.4531521, %v269_v23  ;;  %v442_v2 = vpop.eup %441 }
  0xc8   :  { %v290_v22 = vmul.f32 %v286_v15, %v219_v35  ;;  %v276_v30 = vmul.f32 %v272_v25, %v249_v16  ;;  %v180_v15 = vmul.f32 0.5, %v581_v4 }
  0xc9   :  { %v291_v24 = vmul.f32 %v287_v18, %v234_v40  ;;  %v277_v33 = vmul.f32 %v273_v28, %v264_v20 }
  0xca   :  { %v294_v26 = vadd.f32 0.2548296, %v290_v22  ;;  %v280_v36 = vadd.f32 1.4214138, %v276_v30 }
  0xcb   :  { %v295_v29 = vadd.f32 0.2548296, %v291_v24  ;;  %v281_v41 = vadd.f32 1.4214138, %v277_v33 }
  0xcc   :  { %v298_v32 = vmul.f32 %v294_v26, %v219_v35  ;;  %v284_v43 = vmul.f32 %v280_v36, %v249_v16 }
  0xcd   :  { %v299_v34 = vmul.f32 %v295_v29, %v234_v40  ;;  %v285_v45 = vmul.f32 %v281_v41, %v264_v20  ;;  %v191_v40 = vsel %vm187_vm1, 1.0, %v443_v46 }
  0xce   :  { %v318_v38 = vmul.f32 %v436_v10, %v298_v32  ;;  %v288_v35 = vadd.f32 -0.28449672, %v284_v43 }
  0xcf   :  { %v319_v42 = vmul.f32 %v438_v37, %v299_v34  ;;  %v289_v49 = vadd.f32 -0.28449672, %v285_v45 }
  0xd0   :  { %v322_v44 = vsub.f32 1.0, %v318_v38  ;;  %v292_v58 = vmul.f32 %v288_v35, %v249_v16 }
  0xd1   :  { %v323_v11 = vsub.f32 1.0, %v319_v42  ;;  %v293_v59 = vmul.f32 %v289_v49, %v264_v20 }
  0xd2   :  { %v326_v48 = vmul.f32 %v322_v44, %v190_v47  ;;  %v296_v56 = vadd.f32 0.2548296, %v292_v58 }
  0xd3   :  { %v327_v50 = vmul.f32 %v323_v11, %v191_v40  ;;  %v297_v61 = vadd.f32 0.2548296, %v293_v59 }
  0xd4   :  { %v330_v52 = vadd.f32 1.0, %v326_v48  ;;  %v300_v63 = vmul.f32 %v296_v56, %v249_v16 }
  0xd5   :  { %v331_v54 = vadd.f32 1.0, %v327_v50  ;;  %v301_v1 = vmul.f32 %v297_v61, %v264_v20 }
  0xd6   :  { %v334_v60 = vmul.f32 %v330_v52, %v178_v51  ;;  %v320_v55 = vmul.f32 %v440_v0, %v300_v63 }
  0xd7   :  { %v335_v62 = vmul.f32 %v331_v54, %v179_v53  ;;  %v321_v57 = vmul.f32 %v442_v2, %v301_v1 }
  0xd8   :  { %338 = vst [vmem:[%s641_s3] sm:$0xff] %v334_v60  ;;  %v324_v3 = vsub.f32 1.0, %v320_v55 }
  0xd9   :  { %339 = vst [vmem:[%s641_s3 + $0x8] sm:$0xff] %v335_v62  ;;  %v325_v10 = vsub.f32 1.0, %v321_v57 }
  0xda   :  { %v328_v12 = vmul.f32 %v324_v3, %v192_v8 }
  0xdb   :  { %v329_v14 = vmul.f32 %v325_v10, %v193_v13 }
  0xdc   :  { %v332_v16 = vadd.f32 1.0, %v328_v12 }
  0xdd   :  { %v333_v18 = vadd.f32 1.0, %v329_v14 }
  0xde   :  { %v336_v19 = vmul.f32 %v332_v16, %v180_v15 }
  0xdf   :  { %v337_v20 = vmul.f32 %v333_v18, %v181_v17 }
  0xe0   :  { %340 = vst [vmem:[%s641_s3 + $0x10] sm:$0xff] %v336_v19 }
  0xe1   :  { %341 = vst [vmem:[%s641_s3 + $0x18] sm:$0xff] %v337_v20 }

// kernel: vit_dino_forward.38
= control target key start
LH: loop header
LB: loop body
LE: loop exit
PB: predicated region body
PF: predicated region fallthrough
CT: control target
= control target key end

     0   :  { %v201_v43 = vmov -1.0   ;;  %s255_s1 = inlined_call_operand.vmem [shape: bf16[128,128], index: 1, kind: input, shape index: {}]   ;;  %s256_s2 = inlined_call_operand.vmem [shape: f32[1,128], index: 2, kind: input, shape index: {}]   ;;  %s257_s0 = inlined_call_operand.vmem [shape: f32[8,128], index: 0, kind: input, shape index: {}]   ;;  %s258_s3 = inlined_call_operand.vmem [shape: f32[8,128], index: 3, kind: output, shape index: {}]  }
   0x1   :  { %v194_v0 = vld [vmem:[%s255_s1 + $0x38] sm:$0xff]  ;;  %v193_v1 = vld [vmem:[%s255_s1 + $0x30] sm:$0xff]  ;;  %v192_v2 = vld [vmem:[%s255_s1 + $0x28] sm:$0xff] }
   0x2   :  { %86 = vmatpush.bf16.msra.mxu0 %v194_v0  ;;  %v191_v3 = vld [vmem:[%s255_s1 + $0x20] sm:$0xff]  ;;  %v190_v4 = vld [vmem:[%s255_s1 + $0x18] sm:$0xff]  ;;  %v189_v5 = vld [vmem:[%s255_s1 + $0x10] sm:$0xff] }
   0x3   :  { %v188_v6 = vld [vmem:[%s255_s1 + $0x8] sm:$0xff]  ;;  %v187_v7 = vld [vmem:[%s255_s1] sm:$0xff] }
   0x4   :  { %v20_v8 = vld [vmem:[%s257_s0] sm:$0xff] }
   0x5   :  { %v21_v9 = vpack.c.bf16 %v20_v8, %v20_v8  ;;  %v196_v10 = vld [vmem:[%s256_s2] ss:$0 sm:$0xff] }
   0x6   :  { %87 = vmatpush.bf16.msra.mxu0 %v193_v1 }
   0xa   :  { %88 = vmatpush.bf16.msra.mxu0 %v192_v2 }
   0xe   :  { %89 = vmatpush.bf16.msra.mxu0 %v191_v3 }
  0x12   :  { %90 = vmatpush.bf16.msra.mxu0 %v190_v4 }
  0x16   :  { %91 = vmatpush.bf16.msra.mxu0 %v189_v5 }
  0x1a   :  { %92 = vmatpush.bf16.msra.mxu0 %v188_v6 }
  0x1e   :  { %93 = vmatpush.bf16.msra.mxu0 %v187_v7 }
  0x21   :  { %94 = vmatmul.bf16.vlgmr.msra.gmra.mxu0 %v21_v9 }
  0x9e   :  { %v95_v11 = vpop.f32.mrf.mxu0 }
  0x9f   :  { %v109_v12 = vadd.f32 %v196_v10, %v95_v11 }
  0xa1   :  { %v111_v13 = vmul.f32 0.70710677, %v109_v12  ;;  %v110_v46 = vmul.f32 0.5, %v109_v12 }
  0xa3   :  { %v114_v14 = vand.u32 2147483647, %v111_v13  ;;  %vm112_vm4 = vcmp.ge.f32.partialorder %v111_v13, 0.0 }
  0xa4   :  { %v113_v44 = vsel %vm112_vm4, 1.0, %v201_v43 }
  0xa5   :  { %v115_v15 = vmul.f32 0.3275911, %v114_v14  ;;  %v141_v28 = vsub.f32 0.0, %v114_v14 }
  0xa6   :  { %v97_v16 = vpop.f32.mrf.mxu0 }
  0xa7   :  { %v116_v17 = vadd.f32 1.0, %v115_v15  ;;  %v142_v31 = vmul.f32 %v141_v28, %v114_v14 }
  0xa9   :  { %197 = vrcp.f32 %v116_v17  ;;  %v128_v21 = vand.u32 2147483648, %v116_v17  ;;  %v126_v23 = vand.u32 2147483647, %v116_v17  ;;  %vm122_vm1 = vweird.f32 %v116_v17 }
  0xaa   :  { %v143_v34 = vmul.f32 1.442695, %v142_v31 }
  0xab   :  { %v129_v25 = vor.u32 1.1754944e-38, %v128_v21  ;;  %vm127_vm3 = vcmp.eq.f32.partialorder %v126_v23, 8.507059e+37 }
  0xac   :  { %199 = vpow2.f32 %v143_v34 }
  0xaf   :  { %v198_v18 = vpop.eup %197 }
  0xb0   :  { %v118_v19 = vmul.f32 %v198_v18, %v116_v17  ;;  %vm123_vm0 = vweird.f32 %v198_v18 }
  0xb1   :  { %vm124_vm2 = vmor %vm122_vm1, %vm123_vm0 }
  0xb2   :  { %v119_v20 = vsub.f32 1.0, %v118_v19  ;;  %v200_v40 = vpop.eup %199 }
  0xb4   :  { %v120_v22 = vmul.f32 %v198_v18, %v119_v20 }
  0xb6   :  { %v121_v24 = vadd.f32 %v198_v18, %v120_v22 }
  0xb8   :  { %v125_v26 = vsel %vm124_vm2, %v198_v18, %v121_v24 }
  0xb9   :  { %v130_v27 = vsel %vm127_vm3, %v129_v25, %v125_v26 }
  0xba   :  { %v132_v29 = vmul.f32 1.0614054, %v130_v27 }
  0xbc   :  { %v133_v30 = vadd.f32 -1.4531521, %v132_v29 }
  0xbe   :  { %v134_v32 = vmul.f32 %v133_v30, %v130_v27 }
  0xc0   :  { %v135_v33 = vadd.f32 1.4214138, %v134_v32 }
  0xc2   :  { %v136_v35 = vmul.f32 %v135_v33, %v130_v27 }
  0xc4   :  { %v137_v36 = vadd.f32 -0.28449672, %v136_v35 }
  0xc6   :  { %v138_v37 = vmul.f32 %v137_v36, %v130_v27 }
  0xc8   :  { %v139_v38 = vadd.f32 0.2548296, %v138_v37 }
  0xca   :  { %v140_v39 = vmul.f32 %v139_v38, %v130_v27 }
  0xcc   :  { %v145_v41 = vmul.f32 %v200_v40, %v140_v39 }
  0xce   :  { %v146_v42 = vsub.f32 1.0, %v145_v41 }
  0xd0   :  { %v147_v45 = vmul.f32 %v146_v42, %v113_v44 }
  0xd2   :  { %v148_v47 = vadd.f32 1.0, %v147_v45 }
  0xd4   :  { %v149_v48 = vmul.f32 %v148_v47, %v110_v46 }
  0xd6   :  { %150 = vst [vmem:[%s258_s3] sm:$0xff] %v149_v48 }

// kernel: vit_dino_forward.40
= control target key start
LH: loop header
LB: loop body
LE: loop exit
PB: predicated region body
PF: predicated region fallthrough
CT: control target
= control target key end

     0   :  { %s209_s1 = inlined_call_operand.vmem [shape: bf16[128,128], index: 1, kind: input, shape index: {}]   ;;  %s210_s2 = inlined_call_operand.vmem [shape: f32[1,128], index: 2, kind: input, shape index: {}]   ;;  %s211_s0 = inlined_call_operand.vmem [shape: f32[8,128], index: 0, kind: input, shape index: {}]   ;;  %s212_s3 = inlined_call_operand.vmem [shape: f32[8,128], index: 3, kind: output, shape index: {}]  }
   0x1   :  { %v154_v0 = vld [vmem:[%s209_s1 + $0x38] sm:$0xff]  ;;  %v153_v1 = vld [vmem:[%s209_s1 + $0x30] sm:$0xff]  ;;  %v152_v2 = vld [vmem:[%s209_s1 + $0x28] sm:$0xff] }
   0x2   :  { %86 = vmatpush.bf16.msra.mxu0 %v154_v0  ;;  %v151_v3 = vld [vmem:[%s209_s1 + $0x20] sm:$0xff]  ;;  %v150_v4 = vld [vmem:[%s209_s1 + $0x18] sm:$0xff]  ;;  %v149_v5 = vld [vmem:[%s209_s1 + $0x10] sm:$0xff] }
   0x3   :  { %v148_v6 = vld [vmem:[%s209_s1 + $0x8] sm:$0xff]  ;;  %v147_v7 = vld [vmem:[%s209_s1] sm:$0xff] }
   0x4   :  { %v20_v8 = vld [vmem:[%s211_s0] sm:$0xff] }
   0x5   :  { %v21_v9 = vpack.c.bf16 %v20_v8, %v20_v8  ;;  %v155_v10 = vld [vmem:[%s210_s2] ss:$0 sm:$0xff] }
   0x6   :  { %87 = vmatpush.bf16.msra.mxu0 %v153_v1 }
   0xa   :  { %88 = vmatpush.bf16.msra.mxu0 %v152_v2 }
   0xe   :  { %89 = vmatpush.bf16.msra.mxu0 %v151_v3 }
  0x12   :  { %90 = vmatpush.bf16.msra.mxu0 %v150_v4 }
  0x16   :  { %91 = vmatpush.bf16.msra.mxu0 %v149_v5 }
  0x1a   :  { %92 = vmatpush.bf16.msra.mxu0 %v148_v6 }
  0x1e   :  { %93 = vmatpush.bf16.msra.mxu0 %v147_v7 }
  0x21   :  { %94 = vmatmul.bf16.vlgmr.msra.gmra.mxu0 %v21_v9 }
  0x9e   :  { %v95_v11 = vpop.f32.mrf.mxu0 }
  0x9f   :  { %v109_v12 = vadd.f32 %v155_v10, %v95_v11 }
  0xa1   :  { %110 = vst [vmem:[%s212_s3] sm:$0xff] %v109_v12 }
  0xa6   :  { %v97_v13 = vpop.f32.mrf.mxu0 }

// kernel: vit_dino_forward.41
= control target key start
LH: loop header
LB: loop body
LE: loop exit
PB: predicated region body
PF: predicated region fallthrough
CT: control target
= control target key end

     0   :  { %vm13_vm0 = vcmask 523264   ;;  %v63_v3 = vmov 0   ;;  %s90_s0 = inlined_call_operand.vmem [shape: f32[8,64], index: 0, kind: input, shape index: {}]   ;;  %s91_s1 = inlined_call_operand.vmem [shape: f32[8,1], index: 1, kind: input, shape index: {}]   ;;  %s92_s2 = inlined_call_operand.vmem [shape: f32[8,64], index: 2, kind: output, shape index: {}]  }
   0x1   :  { %v11_v0 = vld [vmem:[%s90_s0] sm:$0xff]  ;;  %58 = vset.pattern.permute.xlu0 %v63_v3 }
   0x2   :  { %v12_v1 = vmul.f32 %v11_v0, %v11_v0  ;;  %v29_v23 = vld [vmem:[%s91_s1] sm:$0xff] }
   0x4   :  { %v14_v2 = vsel %vm13_vm0, %v12_v1, 0.0 }
   0x5   :  { %15 = vadd.xlane.f32.xlu0 %v14_v2 }
  0x78   :  { %v16_v4 = vpop.xlane.xlu0 %15 }
  0x79   :  { %59 = vrsqrt.f32 %v16_v4  ;;  %vm24_vm1 = vcmp.eq.f32.partialorder %v16_v4, inf  ;;  %v27_v12 = vand.u32 2147483648, %v16_v4  ;;  %vm26_vm2 = vcmp.eq.f32.partialorder %v16_v4, 0.0 }
  0x7f   :  { %v60_v5 = vpop.eup %59 }
  0x80   :  { %v18_v6 = vmul.f32 %v60_v5, %v16_v4 }
  0x82   :  { %v19_v7 = vmul.f32 %v60_v5, %v18_v6 }
  0x84   :  { %v20_v8 = vmul.f32 0.5, %v19_v7 }
  0x86   :  { %v21_v9 = vsub.f32 1.5, %v20_v8 }
  0x88   :  { %v22_v10 = vmul.f32 %v60_v5, %v21_v9 }
  0x8a   :  { %v23_v11 = vmul.f32 %v22_v10, %v16_v4 }
  0x8c   :  { %v25_v13 = vsel %vm24_vm1, %v16_v4, %v23_v11 }
  0x8d   :  { %v28_v14 = vsel %vm26_vm2, %v27_v12, %v25_v13 }
  0x8e   :  { %v30_v15 = vmax.f32 %v28_v14, 1e-12 }
  0x90   :  { %61 = vrcp.f32 %v30_v15  ;;  %v42_v19 = vand.u32 2147483648, %v30_v15  ;;  %v40_v21 = vand.u32 2147483647, %v30_v15  ;;  %vm36_vm4 = vweird.f32 %v30_v15 }
  0x92   :  { %v43_v24 = vor.u32 1.1754944e-38, %v42_v19  ;;  %vm41_vm6 = vcmp.eq.f32.partialorder %v40_v21, 8.507059e+37 }
  0x96   :  { %v62_v16 = vpop.eup %61 }
  0x97   :  { %v32_v17 = vmul.f32 %v62_v16, %v30_v15  ;;  %vm37_vm3 = vweird.f32 %v62_v16 }
  0x98   :  { %vm38_vm5 = vmor %vm36_vm4, %vm37_vm3 }
  0x99   :  { %v33_v18 = vsub.f32 1.0, %v32_v17 }
  0x9b   :  { %v34_v20 = vmul.f32 %v62_v16, %v33_v18 }
  0x9d   :  { %v35_v22 = vadd.f32 %v62_v16, %v34_v20 }
  0x9f   :  { %v39_v25 = vsel %vm38_vm5, %v62_v16, %v35_v22 }
  0xa0   :  { %v44_v26 = vsel %vm41_vm6, %v43_v24, %v39_v25 }
  0xa1   :  { %v45_v27 = vmul.f32 %v44_v26, %v29_v23 }
  0xa3   :  { %48 = vperm.xlu0 %58, %v45_v27  }
 0x115   :  { %v49_v28 = vpop.permute.xlu0 %48 }
 0x116   :  { %v51_v29 = vmul.f32 %v49_v28, %v11_v0 }
 0x118   :  { %52 = vst.msk [vmem:[%s92_s2] sm:$0xff] %vm13_vm0, %v51_v29 }

// kernel: vit_dino_forward.42
= control target key start
LH: loop header
LB: loop body
LE: loop exit
PB: predicated region body
PF: predicated region fallthrough
CT: control target
= control target key end

     0   :  { %vm35_vm0 = vcmask 523264   ;;  %s1181_s0 = inlined_call_operand.vmem [shape: f32[96,64], index: 0, kind: input, shape index: {}]   ;;  %s1182_s1 = inlined_call_operand.vmem [shape: f32[96,1], index: 1, kind: input, shape index: {}]   ;;  %s1183_s2 = inlined_call_operand.vmem [shape: bf16[96,64], index: 2, kind: output, shape index: {}]  }
   0x1   :  { %v592_v0 = vld [vmem:[%s1181_s0 + $0x20] sm:$0xff]  ;;  %v597_v1 = vld [vmem:[%s1181_s0 + $0x10] sm:$0xff]  ;;  %v613_v6 = vld [vmem:[%s1181_s0 + $0x28] sm:$0xff] }
   0x2   :  { %v602_v2 = vld [vmem:[%s1181_s0] sm:$0xff]  ;;  %v27_v3 = vmul.f32 %v592_v0, %v592_v0  ;;  %v25_v4 = vmul.f32 %v597_v1, %v597_v1  ;;  %v618_v7 = vld [vmem:[%s1181_s0 + $0x18] sm:$0xff]  ;;  %v626_v11 = vld [vmem:[%s1181_s0 + $0x8] sm:$0xff]  ;;  %v28_v12 = vmul.f32 %v613_v6, %v613_v6 }
   0x3   :  { %v23_v5 = vmul.f32 %v602_v2, %v602_v2  ;;  %v26_v13 = vmul.f32 %v618_v7, %v618_v7  ;;  %v24_v14 = vmul.f32 %v626_v11, %v626_v11  ;;  %v640_v18 = vld [vmem:[%s1181_s0 + $0x40] sm:$0xff]  ;;  %v645_v19 = vld [vmem:[%s1181_s0 + $0x38] sm:$0xff]  ;;  %v650_v20 = vld [vmem:[%s1181_s0 + $0x30] sm:$0xff] }
   0x4   :  { %v48_v8 = vsel %vm35_vm0, %v27_v3, 0.0  ;;  %v42_v9 = vsel %vm35_vm0, %v25_v4, 0.0  ;;  %v51_v15 = vsel %vm35_vm0, %v28_v12, 0.0  ;;  %v31_v21 = vmul.f32 %v640_v18, %v640_v18  ;;  %v664_v27 = vld [vmem:[%s1181_s0 + $0x58] sm:$0xff]  ;;  %v669_v28 = vld [vmem:[%s1181_s0 + $0x50] sm:$0xff]  ;;  %v674_v29 = vld [vmem:[%s1181_s0 + $0x48] sm:$0xff] }
   0x5   :  { %v36_v10 = vsel %vm35_vm0, %v23_v5, 0.0  ;;  %49 = vadd.xlane.f32.xlu2 %v48_v8  ;;  %43 = vadd.xlane.f32.xlu1 %v42_v9  ;;  %v45_v16 = vsel %vm35_vm0, %v26_v13, 0.0  ;;  %v39_v17 = vsel %vm35_vm0, %v24_v14, 0.0  ;;  %v30_v22 = vmul.f32 %v645_v19, %v645_v19 }
   0x6   :  { %37 = vadd.xlane.f32.xlu0 %v36_v10  ;;  %v29_v23 = vmul.f32 %v650_v20, %v650_v20  ;;  %v60_v24 = vsel %vm35_vm0, %v31_v21, 0.0  ;;  %v34_v30 = vmul.f32 %v664_v27, %v664_v27  ;;  %v33_v31 = vmul.f32 %v669_v28, %v669_v28 }
   0x7   :  { %v57_v25 = vsel %vm35_vm0, %v30_v22, 0.0  ;;  %v32_v32 = vmul.f32 %v674_v29, %v674_v29 }
   0x8   :  { %v54_v26 = vsel %vm35_vm0, %v29_v23, 0.0  ;;  %v69_v33 = vsel %vm35_vm0, %v34_v30, 0.0  ;;  %v66_v34 = vsel %vm35_vm0, %v33_v31, 0.0 }
   0x9   :  { %v63_v35 = vsel %vm35_vm0, %v32_v32, 0.0 }
   0xd   :  { %52 = vadd.xlane.f32.xlu2 %v51_v15  ;;  %46 = vadd.xlane.f32.xlu1 %v45_v16 }
   0xe   :  { %40 = vadd.xlane.f32.xlu0 %v39_v17 }
  0x15   :  { %61 = vadd.xlane.f32.xlu2 %v60_v24  ;;  %58 = vadd.xlane.f32.xlu1 %v57_v25 }
  0x16   :  { %55 = vadd.xlane.f32.xlu0 %v54_v26 }
  0x1d   :  { %70 = vadd.xlane.f32.xlu2 %v69_v33  ;;  %67 = vadd.xlane.f32.xlu1 %v66_v34 }
  0x1e   :  { %64 = vadd.xlane.f32.xlu0 %v63_v35 }
  0x78   :  { %v685_v36 = vpop.xlane.xlu2 %49  ;;  %v687_v37 = vpop.xlane.xlu1 %43 }
  0x79   :  { %525 = vrsqrt.f32 %v685_v36  ;;  %v690_v38 = vpop.xlane.xlu0 %37  ;;  %vm127_vm1 = vcmp.eq.f32.partialorder %v685_v36, inf  ;;  %v130_v54 = vand.u32 2147483648, %v685_v36  ;;  %vm103_vm2 = vcmp.eq.f32.partialorder %v687_v37, inf }
  0x7a   :  { %527 = vrsqrt.f32 %v687_v37  ;;  %vm129_vm3 = vcmp.eq.f32.partialorder %v685_v36, 0.0  ;;  %vm105_vm4 = vcmp.eq.f32.partialorder %v687_v37, 0.0  ;;  %v106_v58 = vand.u32 2147483648, %v687_v37 }
  0x7b   :  { %529 = vrsqrt.f32 %v690_v38  ;;  %vm79_vm5 = vcmp.eq.f32.partialorder %v690_v38, inf  ;;  %vm81_vm6 = vcmp.eq.f32.partialorder %v690_v38, 0.0  ;;  %v82_v4 = vand.u32 2147483648, %v690_v38 }
  0x7f   :  { %v526_v39 = vpop.eup %525 }
  0x80   :  { %v528_v40 = vpop.eup %527  ;;  %v121_v41 = vmul.f32 %v526_v39, %v685_v36  ;;  %v695_v42 = vpop.xlane.xlu2 %52 }
  0x81   :  { %v697_v43 = vpop.xlane.xlu1 %46  ;;  %v530_v44 = vpop.eup %529  ;;  %v97_v45 = vmul.f32 %v528_v40, %v687_v37  ;;  %531 = vrsqrt.f32 %v695_v42  ;;  %vm139_vm7 = vcmp.eq.f32.partialorder %v695_v42, inf  ;;  %vm141_vm8 = vcmp.eq.f32.partialorder %v695_v42, 0.0 }
  0x82   :  { %v701_v46 = vpop.xlane.xlu0 %40  ;;  %v122_v47 = vmul.f32 %v526_v39, %v121_v41  ;;  %v73_v48 = vmul.f32 %v530_v44, %v690_v38  ;;  %533 = vrsqrt.f32 %v697_v43  ;;  %v142_v22 = vand.u32 2147483648, %v695_v42 }
  0x83   :  { %v98_v49 = vmul.f32 %v528_v40, %v97_v45  ;;  %535 = vrsqrt.f32 %v701_v46  ;;  %vm115_vm9 = vcmp.eq.f32.partialorder %v697_v43, inf  ;;  %vm117_vm10 = vcmp.eq.f32.partialorder %v697_v43, 0.0 }
  0x84   :  { %v123_v50 = vmul.f32 0.5, %v122_v47  ;;  %v74_v51 = vmul.f32 %v530_v44, %v73_v48  ;;  %v118_v35 = vand.u32 2147483648, %v697_v43  ;;  %vm91_vm11 = vcmp.eq.f32.partialorder %v701_v46, inf }
  0x85   :  { %v99_v52 = vmul.f32 0.5, %v98_v49  ;;  %vm93_vm12 = vcmp.eq.f32.partialorder %v701_v46, 0.0 }
  0x86   :  { %v124_v53 = vsub.f32 1.5, %v123_v50  ;;  %v75_v55 = vmul.f32 0.5, %v74_v51  ;;  %v94_v51 = vand.u32 2147483648, %v701_v46 }
  0x87   :  { %v532_v56 = vpop.eup %531  ;;  %v100_v57 = vsub.f32 1.5, %v99_v52 }
  0x88   :  { %v534_v59 = vpop.eup %533  ;;  %v125_v60 = vmul.f32 %v526_v39, %v124_v53  ;;  %v76_v61 = vsub.f32 1.5, %v75_v55  ;;  %v133_v62 = vmul.f32 %v532_v56, %v695_v42  ;;  %v715_v63 = vpop.xlane.xlu2 %61 }
  0x89   :  { %v101_v3 = vmul.f32 %v528_v40, %v100_v57  ;;  %v109_v5 = vmul.f32 %v534_v59, %v697_v43  ;;  %537 = vrsqrt.f32 %v715_v63  ;;  %v720_v8 = vpop.xlane.xlu1 %58  ;;  %v536_v9 = vpop.eup %535  ;;  %vm175_vm13 = vcmp.eq.f32.partialorder %v715_v63, inf }
  0x8a   :  { %v126_v10 = vmul.f32 %v125_v60, %v685_v36  ;;  %v77_v12 = vmul.f32 %v530_v44, %v76_v61  ;;  %v134_v13 = vmul.f32 %v532_v56, %v133_v62  ;;  %v85_v16 = vmul.f32 %v536_v9, %v701_v46  ;;  %v748_v45 = vpop.xlane.xlu0 %55 }
  0x8b   :  { %v102_v14 = vmul.f32 %v101_v3, %v687_v37  ;;  %v110_v15 = vmul.f32 %v534_v59, %v109_v5  ;;  %539 = vrsqrt.f32 %v720_v8  ;;  %vm177_vm14 = vcmp.eq.f32.partialorder %v715_v63, 0.0 }
  0x8c   :  { %v78_v17 = vmul.f32 %v77_v12, %v690_v38  ;;  %v135_v21 = vmul.f32 0.5, %v134_v13  ;;  %v128_v23 = vsel %vm127_vm1, %v685_v36, %v126_v10  ;;  %v86_v26 = vmul.f32 %v536_v9, %v85_v16 }
  0x8d   :  { %v104_v24 = vsel %vm103_vm2, %v687_v37, %v102_v14  ;;  %v111_v25 = vmul.f32 0.5, %v110_v15  ;;  %v131_v40 = vsel %vm129_vm3, %v130_v54, %v128_v23  ;;  %541 = vrsqrt.f32 %v748_v45 }
  0x8e   :  { %v80_v30 = vsel %vm79_vm5, %v690_v38, %v78_v17  ;;  %v136_v31 = vsub.f32 1.5, %v135_v21  ;;  %v107_v33 = vsel %vm105_vm4, %v106_v58, %v104_v24  ;;  %v87_v39 = vmul.f32 0.5, %v86_v26 }
  0x8f   :  { %v538_v32 = vpop.eup %537  ;;  %v112_v34 = vsub.f32 1.5, %v111_v25  ;;  %v83_v47 = vsel %vm81_vm6, %v82_v4, %v80_v30  ;;  %v753_v50 = vmax.f32 %v107_v33, 1e-12  ;;  %v757_v53 = vmax.f32 %v131_v40, 1e-12 }
  0x90   :  { %v137_v41 = vmul.f32 %v532_v56, %v136_v31  ;;  %v169_v44 = vmul.f32 %v538_v32, %v715_v63  ;;  %v88_v37 = vsub.f32 1.5, %v87_v39  ;;  %v761_v56 = vmax.f32 %v83_v47, 1e-12  ;;  %v784_v12 = vpop.xlane.xlu2 %70 }
  0x91   :  { %v113_v48 = vmul.f32 %v534_v59, %v112_v34  ;;  %v540_v49 = vpop.eup %539  ;;  %543 = vrcp.f32 %v753_v50  ;;  %v793_v16 = vpop.xlane.xlu1 %67  ;;  %vm163_vm15 = vcmp.eq.f32.partialorder %v720_v8, inf  ;;  %vm165_vm0 = vcmp.eq.f32.partialorder %v720_v8, 0.0 }
  0x92   :  { %v138_v36 = vmul.f32 %v137_v41, %v695_v42  ;;  %v170_v52 = vmul.f32 %v538_v32, %v169_v44  ;;  %v89_v55 = vmul.f32 %v536_v9, %v88_v37  ;;  %v157_v38 = vmul.f32 %v540_v49, %v720_v8 }
  0x93   :  { %v114_v54 = vmul.f32 %v113_v48, %v697_v43  ;;  %545 = vrcp.f32 %v757_v53  ;;  %v542_v17 = vpop.eup %541  ;;  %v166_v30 = vand.u32 2147483648, %v720_v8  ;;  %v154_v31 = vand.u32 2147483648, %v748_v45 }
  0x94   :  { %v140_v57 = vsel %vm139_vm7, %v695_v42, %v138_v36  ;;  %v171_v58 = vmul.f32 0.5, %v170_v52  ;;  %v90_v61 = vmul.f32 %v89_v55, %v701_v46  ;;  %v158_v62 = vmul.f32 %v540_v49, %v157_v38 }
  0x95   :  { %v143_v59 = vsel %vm141_vm8, %v142_v22, %v140_v57  ;;  %v116_v60 = vsel %vm115_vm9, %v697_v43, %v114_v54  ;;  %547 = vrcp.f32 %v761_v56  ;;  %v178_v43 = vand.u32 2147483648, %v715_v63 }
  0x96   :  { %v774_v3 = vmax.f32 %v143_v59, 1e-12  ;;  %v119_v4 = vsel %vm117_vm10, %v118_v35, %v116_v60  ;;  %v172_v5 = vsub.f32 1.5, %v171_v58  ;;  %v92_v42 = vsel %vm91_vm11, %v701_v46, %v90_v61  ;;  %v800_v46 = vpop.xlane.xlu0 %64 }
  0x97   :  { %v779_v9 = vmax.f32 %v119_v4, 1e-12  ;;  %v159_v10 = vmul.f32 0.5, %v158_v62  ;;  %v95_v13 = vsel %vm93_vm12, %v94_v51, %v92_v42  ;;  %v145_v24 = vmul.f32 %v542_v17, %v748_v45  ;;  %v805_v25 = vpop.eup %543 }
  0x98   :  { %v173_v14 = vmul.f32 %v538_v32, %v172_v5  ;;  %549 = vrcp.f32 %v774_v3  ;;  %v795_v21 = vmax.f32 %v95_v13, 1e-12  ;;  %vm151_vm1 = vcmp.eq.f32.partialorder %v748_v45, inf }
  0x99   :  { %v160_v15 = vsub.f32 1.5, %v159_v10  ;;  %551 = vrsqrt.f32 %v784_v12  ;;  %v813_v32 = vpop.eup %545  ;;  %v146_v35 = vmul.f32 %v542_v17, %v145_v24  ;;  %v214_v40 = vand.u32 2147483648, %v784_v12 }
  0x9a   :  { %v174_v22 = vmul.f32 %v173_v14, %v715_v63  ;;  %553 = vrcp.f32 %v779_v9  ;;  %v202_v41 = vand.u32 2147483648, %v793_v16  ;;  %vm153_vm2 = vcmp.eq.f32.partialorder %v748_v45, 0.0 }
  0x9b   :  { %v161_v23 = vmul.f32 %v540_v49, %v160_v15  ;;  %555 = vrsqrt.f32 %v793_v16  ;;  %v819_v39 = vpop.eup %547  ;;  %v147_v48 = vmul.f32 0.5, %v146_v35  ;;  %v573_v37 = vmov 0  }
  0x9c   :  { %v176_v26 = vsel %vm175_vm13, %v715_v63, %v174_v22  ;;  %557 = vrsqrt.f32 %v800_v46  ;;  %524 = vset.pattern.permute.xlu2 %v573_v37  ;;  %522 = vset.pattern.permute.xlu0 %v573_v37  ;;  %v271_v49 = vmul.f32 %v805_v25, %v753_v50  ;;  %v190_v52 = vand.u32 2147483648, %v800_v46 }
  0x9d   :  { %v179_v33 = vsel %vm177_vm14, %v178_v43, %v176_v26  ;;  %v162_v34 = vmul.f32 %v161_v23, %v720_v8  ;;  %559 = vrcp.f32 %v795_v21  ;;  %vm275_vm3 = vweird.f32 %v753_v50  ;;  %523 = vset.pattern.permute.xlu1 %v573_v37  ;;  %v218_v37 = vld [vmem:[%s1182_s1 + $0x10] sm:$0xff] }
  0x9e   :  { %v825_v44 = vpop.eup %549  ;;  %v827_v47 = vmax.f32 %v179_v33, 1e-12  ;;  %v279_v54 = vand.u32 2147483647, %v753_v50  ;;  %v148_v38 = vsub.f32 1.5, %v147_v48  ;;  %v272_v58 = vsub.f32 1.0, %v271_v49 }
  0x9f   :  { %v164_v63 = vsel %vm163_vm15, %v720_v8, %v162_v34  ;;  %v552_v36 = vpop.eup %551  ;;  %vm276_vm4 = vweird.f32 %v805_v25  ;;  %vm211_vm5 = vcmp.eq.f32.partialorder %v784_v12, inf  ;;  %v281_v61 = vand.u32 2147483648, %v753_v50 }
  0xa0   :  { %v167_v51 = vsel %vm165_vm0, %v166_v30, %v164_v63  ;;  %v840_v55 = vpop.eup %553  ;;  %v205_v57 = vmul.f32 %v552_v36, %v784_v12  ;;  %vm847_vm6 = vcmp.eq.f32.partialorder %v279_v54, 8.507059e+37  ;;  %v241_v62 = vmul.f32 %v819_v39, %v761_v56  ;;  %vm277_vm13 = vmor %vm275_vm3, %vm276_vm4 }
  0xa1   :  { %v556_v59 = vpop.eup %555  ;;  %v844_v60 = vmax.f32 %v167_v51, 1e-12  ;;  %v149_v5 = vmul.f32 %v542_v17, %v148_v38  ;;  %vm213_vm7 = vcmp.eq.f32.partialorder %v784_v12, 0.0  ;;  %vm245_vm8 = vweird.f32 %v761_v56 }
  0xa2   :  { %v558_v4 = vpop.eup %557  ;;  %v206_v42 = vmul.f32 %v552_v36, %v205_v57  ;;  %v193_v10 = vmul.f32 %v556_v59, %v793_v16  ;;  %v273_v43 = vmul.f32 %v805_v25, %v272_v58  ;;  %v282_v15 = vor.u32 1.1754944e-38, %v281_v61 }
  0xa3   :  { %v857_v13 = vpop.eup %559  ;;  %v181_v14 = vmul.f32 %v558_v4, %v800_v46  ;;  %v242_v22 = vsub.f32 1.0, %v241_v62  ;;  %v150_v23 = vmul.f32 %v149_v5, %v748_v45  ;;  %vm246_vm9 = vweird.f32 %v819_v39 }
  0xa4   :  { %v207_v24 = vmul.f32 0.5, %v206_v42  ;;  %v194_v26 = vmul.f32 %v556_v59, %v193_v10  ;;  %vm199_vm10 = vcmp.eq.f32.partialorder %v793_v16, inf  ;;  %v274_v30 = vadd.f32 %v805_v25, %v273_v43  ;;  %vm895_vm15 = vmor %vm245_vm8, %vm246_vm9 }
  0xa5   :  { %v182_v17 = vmul.f32 %v558_v4, %v181_v14  ;;  %v243_v33 = vmul.f32 %v819_v39, %v242_v22  ;;  %v249_v34 = vand.u32 2147483647, %v761_v56  ;;  %v152_v35 = vsel %vm151_vm1, %v748_v45, %v150_v23 }
  0xa6   :  { %v208_v63 = vsub.f32 1.5, %v207_v24  ;;  %v195_v48 = vmul.f32 0.5, %v194_v26  ;;  %vm201_vm11 = vcmp.eq.f32.partialorder %v793_v16, 0.0  ;;  %vm187_vm12 = vcmp.eq.f32.partialorder %v800_v46, inf }
  0xa7   :  { %v251_v49 = vand.u32 2147483648, %v761_v56  ;;  %v155_v51 = vsel %vm153_vm2, %v154_v31, %v152_v35  ;;  %v183_v54 = vmul.f32 0.5, %v182_v17  ;;  %vm189_vm14 = vcmp.eq.f32.partialorder %v800_v46, 0.0  ;;  %v216_v56 = vld [vmem:[%s1182_s1] sm:$0xff] }
  0xa8   :  { %v278_v38 = vsel %vm277_vm13, %v805_v25, %v274_v30  ;;  %v244_v57 = vadd.f32 %v819_v39, %v243_v33  ;;  %v887_v58 = vmax.f32 %v155_v51, 1e-12  ;;  %v209_v61 = vmul.f32 %v552_v36, %v208_v63 }
  0xa9   :  { %v196_v62 = vsub.f32 1.5, %v195_v48  ;;  %v283_v50 = vsel %vm847_vm6, %v282_v15, %v278_v38  ;;  %561 = vrcp.f32 %v827_v47  ;;  %v184_v25 = vsub.f32 1.5, %v183_v54 }
  0xaa   :  { %v284_v31 = vmul.f32 %v283_v50, %v218_v37  ;;  %v248_v36 = vsel %vm895_vm15, %v819_v39, %v244_v57  ;;  %563 = vrcp.f32 %v844_v60  ;;  %v210_v8 = vmul.f32 %v209_v61, %v784_v12 }
  0xab   :  { %v197_v5 = vmul.f32 %v556_v59, %v196_v62  ;;  %v252_v42 = vor.u32 1.1754944e-38, %v251_v49  ;;  %565 = vrcp.f32 %v887_v58  ;;  %v185_v10 = vmul.f32 %v558_v4, %v184_v25 }
  0xac   :  { %432 = vperm.xlu2 %524, %v284_v31   ;;  %vm250_vm0 = vcmp.eq.f32.partialorder %v249_v34, 8.507059e+37  ;;  %v286_v14 = vmul.f32 %v840_v55, %v779_v9  ;;  %v212_v39 = vsel %vm211_vm5, %v784_v12, %v210_v8  ;;  %v294_v15 = vand.u32 2147483647, %v779_v9  ;;  %v217_v31 = vld [vmem:[%s1182_s1 + $0x8] sm:$0xff] }
  0xad   :  { %v198_v43 = vmul.f32 %v197_v5, %v793_v16  ;;  %v253_v59 = vsel %vm250_vm0, %v252_v42, %v248_v36  ;;  %v215_v22 = vsel %vm213_vm7, %v214_v40, %v212_v39  ;;  %v186_v4 = vmul.f32 %v185_v10, %v800_v46 }
  0xae   :  { %v254_v23 = vmul.f32 %v253_v59, %v216_v56  ;;  %v287_v24 = vsub.f32 1.0, %v286_v14  ;;  %v921_v26 = vmax.f32 %v215_v22, 1e-12  ;;  %vm291_vm1 = vweird.f32 %v840_v55 }
  0xaf   :  { %v200_v17 = vsel %vm199_vm10, %v793_v16, %v198_v43  ;;  %v296_v30 = vand.u32 2147483648, %v779_v9  ;;  %v928_v33 = vpop.eup %561  ;;  %v188_v40 = vsel %vm187_vm12, %v800_v46, %v186_v4  ;;  %v256_v35 = vmul.f32 %v857_v13, %v795_v21  ;;  %v219_v46 = vld [vmem:[%s1182_s1 + $0x18] sm:$0xff] }
  0xb0   :  { %v203_v12 = vsel %vm201_vm11, %v202_v41, %v200_v17  ;;  %422 = vperm.xlu0 %522, %v254_v23   ;;  %v288_v34 = vmul.f32 %v840_v55, %v287_v24  ;;  %v940_v63 = vpop.eup %563  ;;  %v191_v16 = vsel %vm189_vm14, %v190_v52, %v188_v40  ;;  %vm290_vm2 = vweird.f32 %v779_v9 }
  0xb1   :  { %v942_v48 = vmax.f32 %v203_v12, 1e-12  ;;  %vm949_vm3 = vcmp.eq.f32.partialorder %v294_v15, 8.507059e+37  ;;  %v953_v37 = vpop.eup %565  ;;  %567 = vrcp.f32 %v921_v26  ;;  %v956_v49 = vmax.f32 %v191_v16, 1e-12  ;;  %vm292_vm4 = vmor %vm290_vm2, %vm291_vm1 }
  0xb2   :  { %v289_v51 = vadd.f32 %v840_v55, %v288_v34  ;;  %v257_v54 = vsub.f32 1.0, %v256_v35  ;;  %v297_v9 = vor.u32 1.1754944e-38, %v296_v30  ;;  %vm261_vm5 = vweird.f32 %v857_v13 }
  0xb3   :  { %569 = vrcp.f32 %v942_v48  ;;  %v266_v52 = vand.u32 2147483648, %v795_v21  ;;  %v264_v61 = vand.u32 2147483647, %v795_v21  ;;  %v316_v62 = vmul.f32 %v825_v44, %v774_v3 }
  0xb4   :  { %v293_v38 = vsel %vm292_vm4, %v840_v55, %v289_v51  ;;  %v258_v57 = vmul.f32 %v857_v13, %v257_v54  ;;  %571 = vrcp.f32 %v956_v49  ;;  %vm260_vm6 = vweird.f32 %v795_v21 }
  0xb5   :  { %v298_v50 = vsel %vm949_vm3, %v297_v9, %v293_v38  ;;  %vm320_vm7 = vweird.f32 %v774_v3  ;;  %v317_v55 = vsub.f32 1.0, %v316_v62  ;;  %vm321_vm8 = vweird.f32 %v825_v44  ;;  %vm262_vm9 = vmor %vm260_vm6, %vm261_vm5 }
  0xb6   :  { %v299_v45 = vmul.f32 %v298_v50, %v219_v46  ;;  %v259_v25 = vadd.f32 %v857_v13, %v258_v57  ;;  %v267_v36 = vor.u32 1.1754944e-38, %v266_v52  ;;  %v324_v8 = vand.u32 2147483647, %v774_v3  ;;  %vm999_vm11 = vmor %vm320_vm7, %vm321_vm8  ;;  %v223_v46 = vld [vmem:[%s1182_s1 + $0x38] sm:$0xff] }
  0xb7   :  { %v326_v21 = vand.u32 2147483648, %v774_v3  ;;  %v346_v5 = vmul.f32 %v940_v63, %v844_v60  ;;  %v988_v56 = vpop.eup %567  ;;  %vm265_vm10 = vcmp.eq.f32.partialorder %v264_v61, 8.507059e+37  ;;  %v318_v10 = vmul.f32 %v825_v44, %v317_v55  ;;  %v221_v3 = vld [vmem:[%s1182_s1 + $0x28] sm:$0xff]  ;;  %v220_v55 = vld [vmem:[%s1182_s1 + $0x20] sm:$0xff] }
  0xb8   :  { %437 = vperm.xlu2 %524, %v299_v45   ;;  %v263_v42 = vsel %vm262_vm9, %v857_v13, %v259_v25  ;;  %v354_v14 = vand.u32 2147483647, %v844_v60  ;;  %vm350_vm12 = vweird.f32 %v844_v60  ;;  %vm325_vm13 = vcmp.eq.f32.partialorder %v324_v8, 8.507059e+37 }
  0xb9   :  { %v993_v39 = vpop.eup %569  ;;  %v268_v43 = vsel %vm265_vm10, %v267_v36, %v263_v42  ;;  %v327_v15 = vor.u32 1.1754944e-38, %v326_v21  ;;  %v347_v22 = vsub.f32 1.0, %v346_v5  ;;  %v319_v4 = vadd.f32 %v825_v44, %v318_v10 }
  0xba   :  { %v269_v13 = vmul.f32 %v268_v43, %v217_v31  ;;  %v356_v23 = vand.u32 2147483648, %v844_v60  ;;  %v1006_v24 = vpop.eup %571  ;;  %vm351_vm14 = vweird.f32 %v940_v63  ;;  %vm1013_vm15 = vcmp.eq.f32.partialorder %v354_v14, 8.507059e+37  ;;  %v224_v43 = vld [vmem:[%s1182_s1 + $0x40] sm:$0xff] }
  0xbb   :  { %v348_v17 = vmul.f32 %v940_v63, %v347_v22  ;;  %v301_v12 = vmul.f32 %v813_v32, %v757_v53  ;;  %v323_v40 = vsel %vm999_vm11, %v825_v44, %v319_v4  ;;  %vm305_vm0 = vweird.f32 %v757_v53  ;;  %vm352_vm2 = vmor %vm350_vm12, %vm351_vm14 }
  0xbc   :  { %427 = vperm.xlu1 %523, %v269_v13   ;;  %vm306_vm1 = vweird.f32 %v813_v32  ;;  %v309_v34 = vand.u32 2147483647, %v757_v53  ;;  %v328_v35 = vsel %vm325_vm13, %v327_v15, %v323_v40  ;;  %v361_v51 = vmul.f32 %v928_v33, %v827_v47 }
  0xbd   :  { %v349_v16 = vadd.f32 %v940_v63, %v348_v17  ;;  %v302_v41 = vsub.f32 1.0, %v301_v12  ;;  %v329_v54 = vmul.f32 %v328_v35, %v221_v3  ;;  %v357_v44 = vor.u32 1.1754944e-38, %v356_v23  ;;  %vm307_vm5 = vmor %vm305_vm0, %vm306_vm1  ;;  %v226_v17 = vld [vmem:[%s1182_s1 + $0x50] sm:$0xff] }
  0xbe   :  { %v311_v9 = vand.u32 2147483648, %v757_v53  ;;  %vm365_vm3 = vweird.f32 %v827_v47  ;;  %v362_v57 = vsub.f32 1.0, %v361_v51  ;;  %vm366_vm4 = vweird.f32 %v928_v33 }
  0xbf   :  { %v353_v52 = vsel %vm352_vm2, %v940_v63, %v349_v16  ;;  %v303_v38 = vmul.f32 %v813_v32, %v302_v41  ;;  %v369_v62 = vand.u32 2147483647, %v827_v47  ;;  %v371_v60 = vand.u32 2147483648, %v827_v47  ;;  %vm1055_vm7 = vmor %vm365_vm3, %vm366_vm4 }
  0xc0   :  { %447 = vperm.xlu2 %524, %v329_v54   ;;  %v358_v61 = vsel %vm1013_vm15, %v357_v44, %v353_v52  ;;  %v391_v50 = vmul.f32 %v993_v39, %v942_v48  ;;  %vm310_vm6 = vcmp.eq.f32.partialorder %v309_v34, 8.507059e+37  ;;  %v363_v63 = vmul.f32 %v928_v33, %v362_v57 }
  0xc1   :  { %v359_v45 = vmul.f32 %v358_v61, %v223_v46  ;;  %v304_v25 = vadd.f32 %v813_v32, %v303_v38  ;;  %v312_v31 = vor.u32 1.1754944e-38, %v311_v9  ;;  %vm1059_vm8 = vcmp.eq.f32.partialorder %v369_v62, 8.507059e+37  ;;  %v222_v46 = vld [vmem:[%s1182_s1 + $0x30] sm:$0xff] }
  0xc2   :  { %v372_v53 = vor.u32 1.1754944e-38, %v371_v60  ;;  %v392_v21 = vsub.f32 1.0, %v391_v50  ;;  %v364_v42 = vadd.f32 %v928_v33, %v363_v63  ;;  %v399_v10 = vand.u32 2147483647, %v942_v48 }
  0xc3   :  { %457 = vperm.xlu0 %522, %v359_v45   ;;  %v308_v5 = vsel %vm307_vm5, %v813_v32, %v304_v25  ;;  %v401_v14 = vand.u32 2147483648, %v942_v48  ;;  %vm396_vm9 = vweird.f32 %v993_v39  ;;  %v331_v15 = vmul.f32 %v953_v37, %v887_v58 }
  0xc4   :  { %v313_v47 = vsel %vm310_vm6, %v312_v31, %v308_v5  ;;  %v393_v59 = vmul.f32 %v993_v39, %v392_v21  ;;  %v368_v32 = vsel %vm1055_vm7, %v928_v33, %v364_v42  ;;  %vm395_vm10 = vweird.f32 %v942_v48 }
  0xc5   :  { %v314_v22 = vmul.f32 %v313_v47, %v220_v55  ;;  %vm335_vm11 = vweird.f32 %v887_v58  ;;  %v373_v13 = vsel %vm1059_vm8, %v372_v53, %v368_v32  ;;  %vm400_vm12 = vcmp.eq.f32.partialorder %v399_v10, 8.507059e+37  ;;  %vm397_vm13 = vmor %vm395_vm10, %vm396_vm9 }
  0xc6   :  { %v394_v4 = vadd.f32 %v993_v39, %v393_v59  ;;  %v332_v23 = vsub.f32 1.0, %v331_v15  ;;  %v374_v3 = vmul.f32 %v373_v13, %v224_v43  ;;  %v402_v30 = vor.u32 1.1754944e-38, %v401_v14 }
  0xc7   :  { %442 = vperm.xlu1 %523, %v314_v22   ;;  %v341_v33 = vand.u32 2147483648, %v887_v58  ;;  %v406_v48 = vmul.f32 %v988_v56, %v921_v26  ;;  %vm336_vm14 = vweird.f32 %v953_v37  ;;  %v339_v34 = vand.u32 2147483647, %v887_v58  ;;  %v227_v58 = vld [vmem:[%s1182_s1 + $0x58] sm:$0xff] }
  0xc8   :  { %v398_v12 = vsel %vm397_vm13, %v993_v39, %v394_v4  ;;  %v333_v40 = vmul.f32 %v953_v37, %v332_v23  ;;  %462 = vperm.xlu2 %524, %v374_v3   ;;  %vm410_vm15 = vweird.f32 %v921_v26  ;;  %vm411_vm0 = vweird.f32 %v988_v56  ;;  %vm337_vm1 = vmor %vm335_vm11, %vm336_vm14 }
  0xc9   :  { %v403_v35 = vsel %vm400_vm12, %v402_v30, %v398_v12  ;;  %v407_v16 = vsub.f32 1.0, %v406_v48  ;;  %v414_v54 = vand.u32 2147483647, %v921_v26  ;;  %v416_v39 = vand.u32 2147483648, %v921_v26  ;;  %vm412_vm3 = vmor %vm410_vm15, %vm411_vm0 }
  0xca   :  { %v404_v41 = vmul.f32 %v403_v35, %v226_v17  ;;  %v334_v51 = vadd.f32 %v953_v37, %v333_v40  ;;  %v342_v44 = vor.u32 1.1754944e-38, %v341_v33  ;;  %v376_v52 = vmul.f32 %v1006_v24, %v956_v49 }
  0xcb   :  { %v408_v9 = vmul.f32 %v988_v56, %v407_v16  ;;  %vm340_vm2 = vcmp.eq.f32.partialorder %v339_v34, 8.507059e+37  ;;  %v417_v57 = vor.u32 1.1754944e-38, %v416_v39  ;;  %vm415_vm4 = vcmp.eq.f32.partialorder %v414_v54, 8.507059e+37 }
  0xcc   :  { %472 = vperm.xlu0 %522, %v404_v41   ;;  %v338_v38 = vsel %vm337_vm1, %v953_v37, %v334_v51  ;;  %v377_v62 = vsub.f32 1.0, %v376_v52  ;;  %v386_v50 = vand.u32 2147483648, %v956_v49  ;;  %vm381_vm5 = vweird.f32 %v1006_v24 }
  0xcd   :  { %v343_v26 = vsel %vm340_vm2, %v342_v44, %v338_v38  ;;  %v409_v61 = vadd.f32 %v988_v56, %v408_v9  ;;  %v384_v37 = vand.u32 2147483647, %v956_v49  ;;  %vm380_vm6 = vweird.f32 %v956_v49 }
  0xce   :  { %v344_v60 = vmul.f32 %v343_v26, %v222_v46  ;;  %v378_v25 = vmul.f32 %v1006_v24, %v377_v62  ;;  %vm382_vm7 = vmor %vm380_vm6, %vm381_vm5  ;;  %v387_v36 = vor.u32 1.1754944e-38, %v386_v50  ;;  %vm504_vm9 = vcmask 519168  }
  0xcf   :  { %v413_v45 = vsel %vm412_vm3, %v988_v56, %v409_v61  ;;  %v225_v56 = vld [vmem:[%s1182_s1 + $0x48] sm:$0xff]  ;;  %vm385_vm8 = vcmp.eq.f32.partialorder %v384_v37, 8.507059e+37 }
  0xd0   :  { %452 = vperm.xlu1 %523, %v344_v60   ;;  %v418_v63 = vsel %vm415_vm4, %v417_v57, %v413_v45  ;;  %v379_v31 = vadd.f32 %v1006_v24, %v378_v25 }
  0xd1   :  { %v419_v55 = vmul.f32 %v418_v63, %v227_v58 }
  0xd2   :  { %v383_v8 = vsel %vm382_vm7, %v1006_v24, %v379_v31 }
  0xd3   :  { %477 = vperm.xlu2 %524, %v419_v55   ;;  %v388_v53 = vsel %vm385_vm8, %v387_v36, %v383_v8 }
  0xd4   :  { %v389_v21 = vmul.f32 %v388_v53, %v225_v56 }
  0xd8   :  { %467 = vperm.xlu1 %523, %v389_v21  }
 0x106   :  { %v433_v5 = vpop.permute.xlu2 %432 }
 0x107   :  { %v482_v42 = vmul.f32 %v433_v5, %v597_v1 }
 0x109   :  { %v494_v10 = vpack.c.bf16 %v482_v42, %v482_v42 }
 0x10b   :  { %507 = vst.msk [vmem:[%s1183_s2 + $0x8] sm:$0xf] %vm504_vm9, %v494_v10 }
 0x112   :  { %v438_v49 = vpop.permute.xlu2 %437 }
 0x113   :  { %v483_v14 = vmul.f32 %v438_v49, %v618_v7 }
 0x115   :  { %v495_v47 = vpack.c.bf16 %v483_v14, %v483_v14 }
 0x117   :  { %508 = vst.msk [vmem:[%s1183_s2 + $0xc] sm:$0xf] %vm504_vm9, %v495_v47 }
 0x11a   :  { %v448_v24 = vpop.permute.xlu2 %447 }
 0x11b   :  { %v485_v43 = vmul.f32 %v448_v24, %v613_v6 }
 0x11d   :  { %v497_v1 = vpack.c.bf16 %v485_v43, %v485_v43 }
 0x11f   :  { %510 = vst.msk [vmem:[%s1183_s2 + $0x14] sm:$0xf] %vm504_vm9, %v497_v1 }
 0x122   :  { %v423_v59 = vpop.permute.xlu0 %422  ;;  %v463_v15 = vpop.permute.xlu2 %462 }
 0x123   :  { %v480_v22 = vmul.f32 %v423_v59, %v602_v2  ;;  %v488_v7 = vmul.f32 %v463_v15, %v640_v18 }
 0x125   :  { %v492_v32 = vpack.c.bf16 %v480_v22, %v480_v22  ;;  %v500_v13 = vpack.c.bf16 %v488_v7, %v488_v7 }
 0x127   :  { %505 = vst.msk [vmem:[%s1183_s2] sm:$0xf] %vm504_vm9, %v492_v32 }
 0x128   :  { %513 = vst.msk [vmem:[%s1183_s2 + $0x20] sm:$0xf] %vm504_vm9, %v500_v13 }
 0x12d   :  { %v478_v6 = vpop.permute.xlu2 %477 }
 0x12e   :  { %v491_v4 = vmul.f32 %v478_v6, %v664_v27  ;;  %v428_v23 = vpop.permute.xlu1 %427 }
 0x12f   :  { %v481_v2 = vmul.f32 %v428_v23, %v626_v11 }
 0x130   :  { %v503_v3 = vpack.c.bf16 %v491_v4, %v491_v4 }
 0x131   :  { %v493_v18 = vpack.c.bf16 %v481_v2, %v481_v2 }
 0x132   :  { %516 = vst.msk [vmem:[%s1183_s2 + $0x2c] sm:$0xf] %vm504_vm9, %v503_v3 }
 0x133   :  { %506 = vst.msk [vmem:[%s1183_s2 + $0x4] sm:$0xf] %vm504_vm9, %v493_v18 }
 0x135   :  { %v458_v17 = vpop.permute.xlu0 %457 }
 0x136   :  { %v487_v30 = vmul.f32 %v458_v17, %v645_v19 }
 0x138   :  { %v499_v33 = vpack.c.bf16 %v487_v30, %v487_v30 }
 0x139   :  { %v443_v27 = vpop.permute.xlu1 %442 }
 0x13a   :  { %v484_v48 = vmul.f32 %v443_v27, %v592_v0  ;;  %512 = vst.msk [vmem:[%s1183_s2 + $0x1c] sm:$0xf] %vm504_vm9, %v499_v33 }
 0x13c   :  { %v496_v11 = vpack.c.bf16 %v484_v48, %v484_v48 }
 0x13e   :  { %509 = vst.msk [vmem:[%s1183_s2 + $0x10] sm:$0xf] %vm504_vm9, %v496_v11  ;;  %v473_v12 = vpop.permute.xlu0 %472 }
 0x13f   :  { %v490_v40 = vmul.f32 %v473_v12, %v669_v28 }
 0x141   :  { %v502_v34 = vpack.c.bf16 %v490_v40, %v490_v40 }
 0x142   :  { %v453_v19 = vpop.permute.xlu1 %452 }
 0x143   :  { %v486_v35 = vmul.f32 %v453_v19, %v650_v20  ;;  %515 = vst.msk [vmem:[%s1183_s2 + $0x28] sm:$0xf] %vm504_vm9, %v502_v34 }
 0x145   :  { %v498_v0 = vpack.c.bf16 %v486_v35, %v486_v35 }
 0x147   :  { %511 = vst.msk [vmem:[%s1183_s2 + $0x18] sm:$0xf] %vm504_vm9, %v498_v0 }
 0x14a   :  { %v468_v16 = vpop.permute.xlu1 %467 }
 0x14b   :  { %v489_v41 = vmul.f32 %v468_v16, %v674_v29 }
 0x14d   :  { %v501_v51 = vpack.c.bf16 %v489_v41, %v489_v41 }
 0x14f   :  { %514 = vst.msk [vmem:[%s1183_s2 + $0x24] sm:$0xf] %vm504_vm9, %v501_v51 }

</bundles_post_ra>
